<compile_context>
chip_gen: v6e
topology: v6e:2x2x1
jax: 0.10.0
libtpu: 0.0.40
codegen_flags: <defaults>
</compile_context>

<pallas_src>
import numpy as np
import jax
import jax.numpy as jnp
from jax.experimental import pallas as pl
from jax.experimental.pallas import tpu as pltpu  # noqa: F401  (TPU backend assumed)


def _round_up(x, m):
    return ((x + m - 1) // m) * m


# ------------------------------ fused kernel --------------------------------

def _build_decoder_kernel(num_layers, T):
    """Returns the fused decoder kernel body (fully unrolled over layers/time)."""

    def kernel(*refs):
        (feat_ref, emb_ref, mask_ref, ftw_ref, ftb_ref, h0_ref,
         outw_ref, outb_ref) = refs[:8]
        layer_refs = refs[8:8 + 4 * num_layers]
        out_ref = refs[8 + 4 * num_layers]

        B = feat_ref.shape[0]                       # padded batch (sublane-aligned)

        # feature_transformer: first timestep input (weights pre-transposed)
        x0 = (jnp.dot(feat_ref[...], ftw_ref[...],
                      preferred_element_type=jnp.float32) + ftb_ref[...])   # [B, E]

        # layer-0 inputs, one [B, E] value per timestep (t=0 is the feature emb)
        xs = [x0] + [emb_ref[t] for t in range(T - 1)]

        for l in range(num_layers):
            wih_ref = layer_refs[4 * l + 0]         # [3, in, H]  gate order r, z, n
            bih_ref = layer_refs[4 * l + 1]         # [3, 1, H]
            whh_ref = layer_refs[4 * l + 2]         # [3, H, H]
            bhh_ref = layer_refs[4 * l + 3]         # [3, 1, H]

            # per-gate x projections for ALL timesteps in one MXU matmul each
            X = jnp.concatenate(xs, axis=0)         # [T*B, in]   (t-major rows)
            gx_r = jnp.dot(X, wih_ref[0], preferred_element_type=jnp.float32) + bih_ref[0]
            gx_z = jnp.dot(X, wih_ref[1], preferred_element_type=jnp.float32) + bih_ref[1]
            gx_n = jnp.dot(X, wih_ref[2], preferred_element_type=jnp.float32) + bih_ref[2]

            whh_r, whh_z, whh_n = whh_ref[0], whh_ref[1], whh_ref[2]
            bhh_r, bhh_z, bhh_n = bhh_ref[0], bhh_ref[1], bhh_ref[2]

            h = h0_ref[l]                           # [B, H]
            ys = []
            for t in range(T):                      # static unroll; h carried in values
                gh_r = jnp.dot(h, whh_r, preferred_element_type=jnp.float32) + bhh_r
                gh_z = jnp.dot(h, whh_z, preferred_element_type=jnp.float32) + bhh_z
                gh_n = jnp.dot(h, whh_n, preferred_element_type=jnp.float32) + bhh_n
                r = jax.nn.sigmoid(gx_r[t * B:(t + 1) * B, :] + gh_r)
                z = jax.nn.sigmoid(gx_z[t * B:(t + 1) * B, :] + gh_z)
                n = jnp.tanh(gx_n[t * B:(t + 1) * B, :] + r * gh_n)
                h_new = (1.0 - z) * n + z * h
                m = mask_ref[t]                     # [B, H] f32 {0,1}: freeze past length
                h = m * h_new + (1.0 - m) * h
                ys.append(h)
            xs = ys                                 # becomes next layer's input

        # output projection: one lane-dense [T*B, V_pad] slab, written once
        hseq = jnp.concatenate(xs, axis=0)          # [T*B, H]
        out_ref[...] = (jnp.dot(hseq, outw_ref[...],
                                preferred_element_type=jnp.float32) + outb_ref[...])

    return kernel


# ------------------------------- forward pass -------------------------------

def decoder_forward(params, context_vector, sequence_features, stories, lengths_list):
    """Mirrors Decoder.forward (num_layers GRU, dropout=0.0 -> identity)."""
    B = stories.shape[0]
    num_layers = len(params["gru"])
    H = params["gru"][0]["w_hh"].shape[1]
    E = params["embed"].shape[1]
    V = params["out_w"].shape[0]

    B_pad = _round_up(max(B, 8), 8)                 # full sublane tile
    V_pad = _round_up(max(V, 128), 128)             # lane-dense output slab

    # ---- plain-JAX glue: embedding gather, padding, weight layout plumbing
    stories_t = stories[:, :-1]                                   # [B, L-1]
    embeddings = jnp.take(params["embed"], stories_t, axis=0)     # [B, L-1, E]
    T = embeddings.shape[1] + 1                                   # GRU sequence length

    emb_tm = jnp.transpose(embeddings, (1, 0, 2))                 # [T-1, B, E]
    emb_tm = jnp.pad(emb_tm, ((0, 0), (0, B_pad - B), (0, 0)))

    feat = sequence_features.reshape(B, -1)                       # [B, input_size*5]
    feat = jnp.pad(feat, ((0, B_pad - B), (0, 0)))

    h0 = jnp.pad(context_vector, ((0, 0), (0, B_pad - B), (0, 0)))  # [L, B_pad, H]

    # packed-sequence freeze mask (lengths are static; padded rows get 0 -> frozen)
    mask_np = np.zeros((T, B_pad, H), np.float32)
    for b, ln in enumerate(lengths_list):
        mask_np[:int(ln), b, :] = 1.0
    mask = jnp.asarray(mask_np)

    # pre-transposed / per-gate-split weights (host-side layout plumbing)
    ft_w = jnp.transpose(params["ft_w"]).astype(jnp.float32)       # [F5, E]
    ft_b = params["ft_b"].reshape(1, E).astype(jnp.float32)
    out_w = jnp.pad(jnp.transpose(params["out_w"]),
                    ((0, 0), (0, V_pad - V))).astype(jnp.float32)  # [H, V_pad]
    out_b = jnp.pad(params["out_b"], (0, V_pad - V)).reshape(1, V_pad).astype(jnp.float32)

    args = [feat.astype(jnp.float32), emb_tm.astype(jnp.float32), mask,
            ft_w, ft_b, h0.astype(jnp.float32), out_w, out_b]
    for lp in params["gru"]:
        in_dim = lp["w_ih"].shape[1]
        args.append(jnp.transpose(lp["w_ih"].reshape(3, H, in_dim), (0, 2, 1))
                    .astype(jnp.float32))                           # [3, in, H]
        args.append(lp["b_ih"].reshape(3, 1, H).astype(jnp.float32))
        args.append(jnp.transpose(lp["w_hh"].reshape(3, H, H), (0, 2, 1))
                    .astype(jnp.float32))                           # [3, H, H]
        args.append(lp["b_hh"].reshape(3, 1, H).astype(jnp.float32))

    out_pad = pl.pallas_call(
        _build_decoder_kernel(num_layers, T),
        out_shape=jax.ShapeDtypeStruct((T * B_pad, V_pad), jnp.float32),
    )(*args)

    # pack_padded_sequence ordering (time-major over valid (t, b)); drop padding
    rows = [t * B_pad + b
            for t in range(T) for b in range(B) if lengths_list[b] > t]
    return out_pad[jnp.asarray(rows, jnp.int32), :V]


# --------------------------- pure-JAX reference -----------------------------

def decoder_forward_ref(params, context_vector, sequence_features, stories, lengths_list):
    B = stories.shape[0]
    H = params["gru"][0]["w_hh"].shape[1]
    stories_t = stories[:, :-1]
    embeddings = jnp.take(params["embed"], stories_t, axis=0)
    feat = sequence_features.reshape(B, -1)
    feat_emb = feat @ params["ft_w"].T + params["ft_b"]
    x = jnp.concatenate([feat_emb[:, None, :], embeddings], axis=1)
    T = x.shape[1]
    layer_in = jnp.transpose(x, (1, 0, 2))
    lens = jnp.asarray(lengths_list)[:, None]
    for l, lp in enumerate(params["gru"]):
        h = context_vector[l]
        outs = []
        for t in range(T):
            gx = layer_in[t] @ lp["w_ih"].T + lp["b_ih"]
            gh = h @ lp["w_hh"].T + lp["b_hh"]
            r = jax.nn.sigmoid(gx[:, :H] + gh[:, :H])
            z = jax.nn.sigmoid(gx[:, H:2 * H] + gh[:, H:2 * H])
            n = jnp.tanh(gx[:, 2 * H:] + r * gh[:, 2 * H:])
            h_new = (1.0 - z) * n + z * h
            h = jnp.where(lens > t, h_new, h)
            outs.append(h)
        layer_in = jnp.stack(outs, 0)
    idx_t, idx_b = [], []
    for t in range(T):
        for b in range(B):
            if lengths_list[b] > t:
                idx_t.append(t)
                idx_b.append(b)
    packed_h = layer_in[jnp.asarray(idx_t), jnp.asarray(idx_b)]
    return packed_h @ params["out_w"].T + params["out_b"]


# ----------------------------------- main -----------------------------------

if __name__ == "__main__":
    # hyper-parameters (p)
    vocab_size, embed_size, hidden_size = 50, 32, 32
    num_layers, input_size, dropout = 2, 16, 0.0   # dropout=0 -> nn.Dropout is identity
    B, L = 2, 8                                    # stories: [B, L]; GRU seq len T = L
    lengths = [8, 6]                               # sorted descending (enforce_sorted=True)

    key = jax.random.PRNGKey(0)
    ks = jax.random.split(key, 16)

    def init(k, shape, scale=0.1):
        return scale * jax.random.normal(k, shape, jnp.float32)

    params = {
        "embed": init(ks[0], (vocab_size, embed_size)),
        "ft_w": init(ks[1], (embed_size, input_size * 5)),
        "ft_b": init(ks[2], (embed_size,)),
        "out_w": init(ks[3], (vocab_size, hidden_size)),
        "out_b": init(ks[4], (vocab_size,)),
        "gru": [],
    }
    for l in range(num_layers):
        in_dim = embed_size if l == 0 else hidden_size
        params["gru"].append({
            "w_ih": init(ks[5 + 4 * l], (3 * hidden_size, in_dim)),
            "b_ih": init(ks[6 + 4 * l], (3 * hidden_size,)),
            "w_hh": init(ks[7 + 4 * l], (3 * hidden_size, hidden_size)),
            "b_hh": init(ks[8 + 4 * l], (3 * hidden_size,)),
        })

    kd = jax.random.split(jax.random.PRNGKey(1), 3)
    context_vector = 0.1 * jax.random.normal(kd[0], (num_layers, B, hidden_size), jnp.float32)
    sequence_features = jax.random.normal(kd[1], (B, 5, input_size), jnp.float32)
    stories = jax.random.randint(kd[2], (B, L), 0, vocab_size, jnp.int32)

    out = decoder_forward(params, context_vector, sequence_features, stories, lengths)
    out = jax.block_until_ready(out)

    ref = decoder_forward_ref(params, context_vector, sequence_features, stories, lengths)
    assert out.shape == (sum(lengths), vocab_size)
    np.testing.assert_allclose(np.asarray(out), np.asarray(ref), rtol=2e-4, atol=2e-4)

    print("KERNEL_OK")
</pallas_src>

<mosaic_0001>
module attributes {stable_mosaic.version = 11 : i64} {
  func.func @kernel(%arg0: memref<8x80xf32, #tpu.memory_space<vmem>>, %arg1: memref<7x8x32xf32, #tpu.memory_space<vmem>>, %arg2: memref<8x8x32xf32, #tpu.memory_space<vmem>>, %arg3: memref<80x32xf32, #tpu.memory_space<vmem>>, %arg4: memref<1x32xf32, #tpu.memory_space<vmem>>, %arg5: memref<2x8x32xf32, #tpu.memory_space<vmem>>, %arg6: memref<32x128xf32, #tpu.memory_space<vmem>>, %arg7: memref<1x128xf32, #tpu.memory_space<vmem>>, %arg8: memref<3x32x32xf32, #tpu.memory_space<vmem>>, %arg9: memref<3x1x32xf32, #tpu.memory_space<vmem>>, %arg10: memref<3x32x32xf32, #tpu.memory_space<vmem>>, %arg11: memref<3x1x32xf32, #tpu.memory_space<vmem>>, %arg12: memref<3x32x32xf32, #tpu.memory_space<vmem>>, %arg13: memref<3x1x32xf32, #tpu.memory_space<vmem>>, %arg14: memref<3x32x32xf32, #tpu.memory_space<vmem>>, %arg15: memref<3x1x32xf32, #tpu.memory_space<vmem>>, %arg16: memref<64x128xf32, #tpu.memory_space<vmem>>) attributes {dimension_semantics = [], scalar_prefetch = 0 : i64, scratch_operands = 0 : i64, tpu.core_type = #tpu.core_type<tc>} {
    %c0 = arith.constant 0 : index
    %c0_0 = arith.constant 0 : index
    %0 = vector.load %arg0[%c0, %c0_0] : memref<8x80xf32, #tpu.memory_space<vmem>>, vector<8x80xf32>
    %c0_1 = arith.constant 0 : index
    %c0_2 = arith.constant 0 : index
    %1 = vector.load %arg3[%c0_1, %c0_2] : memref<80x32xf32, #tpu.memory_space<vmem>>, vector<80x32xf32>
    %cst = arith.constant dense<0.000000e+00> : vector<8x32xf32>
    %2 = tpu.matmul %0, %1, %cst {dimension_numbers = #tpu.dot_dimension_numbers<[1], [0], [0], [1], [0, 0, 1, 1], [], []>} : vector<8x80xf32>, vector<80x32xf32>, vector<8x32xf32> -> vector<8x32xf32>
    %c0_3 = arith.constant 0 : index
    %c0_4 = arith.constant 0 : index
    %3 = vector.load %arg4[%c0_3, %c0_4] : memref<1x32xf32, #tpu.memory_space<vmem>>, vector<1x32xf32>
    %4 = vector.broadcast %3 : vector<1x32xf32> to vector<8x32xf32>
    %5 = arith.addf %2, %4 : vector<8x32xf32>
    %c0_5 = arith.constant 0 : index
    %c0_6 = arith.constant 0 : index
    %c0_7 = arith.constant 0 : index
    %6 = vector.load %arg1[%c0_5, %c0_6, %c0_7] : memref<7x8x32xf32, #tpu.memory_space<vmem>>, vector<1x8x32xf32>
    %7 = vector.shape_cast %6 : vector<1x8x32xf32> to vector<8x32xf32>
    %c1 = arith.constant 1 : index
    %c0_8 = arith.constant 0 : index
    %c0_9 = arith.constant 0 : index
    %8 = vector.load %arg1[%c1, %c0_8, %c0_9] : memref<7x8x32xf32, #tpu.memory_space<vmem>>, vector<1x8x32xf32>
    %9 = vector.shape_cast %8 : vector<1x8x32xf32> to vector<8x32xf32>
    %c2 = arith.constant 2 : index
    %c0_10 = arith.constant 0 : index
    %c0_11 = arith.constant 0 : index
    %10 = vector.load %arg1[%c2, %c0_10, %c0_11] : memref<7x8x32xf32, #tpu.memory_space<vmem>>, vector<1x8x32xf32>
    %11 = vector.shape_cast %10 : vector<1x8x32xf32> to vector<8x32xf32>
    %c3 = arith.constant 3 : index
    %c0_12 = arith.constant 0 : index
    %c0_13 = arith.constant 0 : index
    %12 = vector.load %arg1[%c3, %c0_12, %c0_13] : memref<7x8x32xf32, #tpu.memory_space<vmem>>, vector<1x8x32xf32>
    %13 = vector.shape_cast %12 : vector<1x8x32xf32> to vector<8x32xf32>
    %c4 = arith.constant 4 : index
    %c0_14 = arith.constant 0 : index
    %c0_15 = arith.constant 0 : index
    %14 = vector.load %arg1[%c4, %c0_14, %c0_15] : memref<7x8x32xf32, #tpu.memory_space<vmem>>, vector<1x8x32xf32>
    %15 = vector.shape_cast %14 : vector<1x8x32xf32> to vector<8x32xf32>
    %c5 = arith.constant 5 : index
    %c0_16 = arith.constant 0 : index
    %c0_17 = arith.constant 0 : index
    %16 = vector.load %arg1[%c5, %c0_16, %c0_17] : memref<7x8x32xf32, #tpu.memory_space<vmem>>, vector<1x8x32xf32>
    %17 = vector.shape_cast %16 : vector<1x8x32xf32> to vector<8x32xf32>
    %c6 = arith.constant 6 : index
    %c0_18 = arith.constant 0 : index
    %c0_19 = arith.constant 0 : index
    %18 = vector.load %arg1[%c6, %c0_18, %c0_19] : memref<7x8x32xf32, #tpu.memory_space<vmem>>, vector<1x8x32xf32>
    %19 = vector.shape_cast %18 : vector<1x8x32xf32> to vector<8x32xf32>
    %20 = tpu.concatenate %5, %7, %9, %11, %13, %15, %17, %19 in 0 : vector<8x32xf32>, vector<8x32xf32>, vector<8x32xf32>, vector<8x32xf32>, vector<8x32xf32>, vector<8x32xf32>, vector<8x32xf32>, vector<8x32xf32> -> vector<64x32xf32>
    %c0_20 = arith.constant 0 : index
    %c0_21 = arith.constant 0 : index
    %c0_22 = arith.constant 0 : index
    %21 = vector.load %arg8[%c0_20, %c0_21, %c0_22] : memref<3x32x32xf32, #tpu.memory_space<vmem>>, vector<1x32x32xf32>
    %22 = vector.shape_cast %21 : vector<1x32x32xf32> to vector<32x32xf32>
    %cst_23 = arith.constant dense<0.000000e+00> : vector<64x32xf32>
    %23 = tpu.matmul %20, %22, %cst_23 {dimension_numbers = #tpu.dot_dimension_numbers<[1], [0], [0], [1], [0, 0, 1, 1], [], []>} : vector<64x32xf32>, vector<32x32xf32>, vector<64x32xf32> -> vector<64x32xf32>
    %c0_24 = arith.constant 0 : index
    %c0_25 = arith.constant 0 : index
    %c0_26 = arith.constant 0 : index
    %24 = vector.load %arg9[%c0_24, %c0_25, %c0_26] : memref<3x1x32xf32, #tpu.memory_space<vmem>>, vector<1x1x32xf32>
    %25 = vector.shape_cast %24 : vector<1x1x32xf32> to vector<1x32xf32>
    %26 = vector.broadcast %25 : vector<1x32xf32> to vector<64x32xf32>
    %27 = arith.addf %23, %26 : vector<64x32xf32>
    %c1_27 = arith.constant 1 : index
    %c0_28 = arith.constant 0 : index
    %c0_29 = arith.constant 0 : index
    %28 = vector.load %arg8[%c1_27, %c0_28, %c0_29] : memref<3x32x32xf32, #tpu.memory_space<vmem>>, vector<1x32x32xf32>
    %29 = vector.shape_cast %28 : vector<1x32x32xf32> to vector<32x32xf32>
    %cst_30 = arith.constant dense<0.000000e+00> : vector<64x32xf32>
    %30 = tpu.matmul %20, %29, %cst_30 {dimension_numbers = #tpu.dot_dimension_numbers<[1], [0], [0], [1], [0, 0, 1, 1], [], []>} : vector<64x32xf32>, vector<32x32xf32>, vector<64x32xf32> -> vector<64x32xf32>
    %c1_31 = arith.constant 1 : index
    %c0_32 = arith.constant 0 : index
    %c0_33 = arith.constant 0 : index
    %31 = vector.load %arg9[%c1_31, %c0_32, %c0_33] : memref<3x1x32xf32, #tpu.memory_space<vmem>>, vector<1x1x32xf32>
    %32 = vector.shape_cast %31 : vector<1x1x32xf32> to vector<1x32xf32>
    %33 = vector.broadcast %32 : vector<1x32xf32> to vector<64x32xf32>
    %34 = arith.addf %30, %33 : vector<64x32xf32>
    %c2_34 = arith.constant 2 : index
    %c0_35 = arith.constant 0 : index
    %c0_36 = arith.constant 0 : index
    %35 = vector.load %arg8[%c2_34, %c0_35, %c0_36] : memref<3x32x32xf32, #tpu.memory_space<vmem>>, vector<1x32x32xf32>
    %36 = vector.shape_cast %35 : vector<1x32x32xf32> to vector<32x32xf32>
    %cst_37 = arith.constant dense<0.000000e+00> : vector<64x32xf32>
    %37 = tpu.matmul %20, %36, %cst_37 {dimension_numbers = #tpu.dot_dimension_numbers<[1], [0], [0], [1], [0, 0, 1, 1], [], []>} : vector<64x32xf32>, vector<32x32xf32>, vector<64x32xf32> -> vector<64x32xf32>
    %c2_38 = arith.constant 2 : index
    %c0_39 = arith.constant 0 : index
    %c0_40 = arith.constant 0 : index
    %38 = vector.load %arg9[%c2_38, %c0_39, %c0_40] : memref<3x1x32xf32, #tpu.memory_space<vmem>>, vector<1x1x32xf32>
    %39 = vector.shape_cast %38 : vector<1x1x32xf32> to vector<1x32xf32>
    %40 = vector.broadcast %39 : vector<1x32xf32> to vector<64x32xf32>
    %41 = arith.addf %37, %40 : vector<64x32xf32>
    %c0_41 = arith.constant 0 : index
    %c0_42 = arith.constant 0 : index
    %c0_43 = arith.constant 0 : index
    %42 = vector.load %arg10[%c0_41, %c0_42, %c0_43] : memref<3x32x32xf32, #tpu.memory_space<vmem>>, vector<1x32x32xf32>
    %43 = vector.shape_cast %42 : vector<1x32x32xf32> to vector<32x32xf32>
    %c1_44 = arith.constant 1 : index
    %c0_45 = arith.constant 0 : index
    %c0_46 = arith.constant 0 : index
    %44 = vector.load %arg10[%c1_44, %c0_45, %c0_46] : memref<3x32x32xf32, #tpu.memory_space<vmem>>, vector<1x32x32xf32>
    %45 = vector.shape_cast %44 : vector<1x32x32xf32> to vector<32x32xf32>
    %c2_47 = arith.constant 2 : index
    %c0_48 = arith.constant 0 : index
    %c0_49 = arith.constant 0 : index
    %46 = vector.load %arg10[%c2_47, %c0_48, %c0_49] : memref<3x32x32xf32, #tpu.memory_space<vmem>>, vector<1x32x32xf32>
    %47 = vector.shape_cast %46 : vector<1x32x32xf32> to vector<32x32xf32>
    %c0_50 = arith.constant 0 : index
    %c0_51 = arith.constant 0 : index
    %c0_52 = arith.constant 0 : index
    %48 = vector.load %arg11[%c0_50, %c0_51, %c0_52] : memref<3x1x32xf32, #tpu.memory_space<vmem>>, vector<1x1x32xf32>
    %49 = vector.shape_cast %48 : vector<1x1x32xf32> to vector<1x32xf32>
    %c1_53 = arith.constant 1 : index
    %c0_54 = arith.constant 0 : index
    %c0_55 = arith.constant 0 : index
    %50 = vector.load %arg11[%c1_53, %c0_54, %c0_55] : memref<3x1x32xf32, #tpu.memory_space<vmem>>, vector<1x1x32xf32>
    %51 = vector.shape_cast %50 : vector<1x1x32xf32> to vector<1x32xf32>
    %c2_56 = arith.constant 2 : index
    %c0_57 = arith.constant 0 : index
    %c0_58 = arith.constant 0 : index
    %52 = vector.load %arg11[%c2_56, %c0_57, %c0_58] : memref<3x1x32xf32, #tpu.memory_space<vmem>>, vector<1x1x32xf32>
    %53 = vector.shape_cast %52 : vector<1x1x32xf32> to vector<1x32xf32>
    %c0_59 = arith.constant 0 : index
    %c0_60 = arith.constant 0 : index
    %c0_61 = arith.constant 0 : index
    %54 = vector.load %arg5[%c0_59, %c0_60, %c0_61] : memref<2x8x32xf32, #tpu.memory_space<vmem>>, vector<1x8x32xf32>
    %55 = vector.shape_cast %54 : vector<1x8x32xf32> to vector<8x32xf32>
    %cst_62 = arith.constant dense<0.000000e+00> : vector<8x32xf32>
    %56 = tpu.matmul %55, %43, %cst_62 {dimension_numbers = #tpu.dot_dimension_numbers<[1], [0], [0], [1], [0, 0, 1, 1], [], []>} : vector<8x32xf32>, vector<32x32xf32>, vector<8x32xf32> -> vector<8x32xf32>
    %57 = vector.broadcast %49 : vector<1x32xf32> to vector<8x32xf32>
    %58 = arith.addf %56, %57 : vector<8x32xf32>
    %cst_63 = arith.constant dense<0.000000e+00> : vector<8x32xf32>
    %59 = tpu.matmul %55, %45, %cst_63 {dimension_numbers = #tpu.dot_dimension_numbers<[1], [0], [0], [1], [0, 0, 1, 1], [], []>} : vector<8x32xf32>, vector<32x32xf32>, vector<8x32xf32> -> vector<8x32xf32>
    %60 = vector.broadcast %51 : vector<1x32xf32> to vector<8x32xf32>
    %61 = arith.addf %59, %60 : vector<8x32xf32>
    %cst_64 = arith.constant dense<0.000000e+00> : vector<8x32xf32>
    %62 = tpu.matmul %55, %47, %cst_64 {dimension_numbers = #tpu.dot_dimension_numbers<[1], [0], [0], [1], [0, 0, 1, 1], [], []>} : vector<8x32xf32>, vector<32x32xf32>, vector<8x32xf32> -> vector<8x32xf32>
    %63 = vector.broadcast %53 : vector<1x32xf32> to vector<8x32xf32>
    %64 = arith.addf %62, %63 : vector<8x32xf32>
    %65 = vector.extract_strided_slice %27 {offsets = [0, 0], sizes = [8, 32], strides = [1, 1]} : vector<64x32xf32> to vector<8x32xf32>
    %66 = arith.addf %65, %58 : vector<8x32xf32>
    %67 = arith.negf %66 : vector<8x32xf32>
    %68 = math.exp %67 : vector<8x32xf32>
    %cst_65 = arith.constant 1.000000e+00 : f32
    %69 = vector.broadcast %cst_65 : f32 to vector<8x32xf32>
    %70 = arith.addf %69, %68 : vector<8x32xf32>
    %71 = arith.divf %69, %70 : vector<8x32xf32>
    %72 = vector.extract_strided_slice %34 {offsets = [0, 0], sizes = [8, 32], strides = [1, 1]} : vector<64x32xf32> to vector<8x32xf32>
    %73 = arith.addf %72, %61 : vector<8x32xf32>
    %74 = arith.negf %73 : vector<8x32xf32>
    %75 = math.exp %74 : vector<8x32xf32>
    %cst_66 = arith.constant 1.000000e+00 : f32
    %76 = vector.broadcast %cst_66 : f32 to vector<8x32xf32>
    %77 = arith.addf %76, %75 : vector<8x32xf32>
    %78 = arith.divf %76, %77 : vector<8x32xf32>
    %79 = vector.extract_strided_slice %41 {offsets = [0, 0], sizes = [8, 32], strides = [1, 1]} : vector<64x32xf32> to vector<8x32xf32>
    %80 = arith.mulf %71, %64 : vector<8x32xf32>
    %81 = arith.addf %79, %80 : vector<8x32xf32>
    %82 = math.tanh %81 : vector<8x32xf32>
    %cst_67 = arith.constant 1.000000e+00 : f32
    %83 = vector.broadcast %cst_67 : f32 to vector<8x32xf32>
    %84 = arith.subf %83, %78 : vector<8x32xf32>
    %85 = arith.mulf %84, %82 : vector<8x32xf32>
    %86 = arith.mulf %78, %55 : vector<8x32xf32>
    %87 = arith.addf %85, %86 : vector<8x32xf32>
    %c0_68 = arith.constant 0 : index
    %c0_69 = arith.constant 0 : index
    %c0_70 = arith.constant 0 : index
    %88 = vector.load %arg2[%c0_68, %c0_69, %c0_70] : memref<8x8x32xf32, #tpu.memory_space<vmem>>, vector<1x8x32xf32>
    %89 = vector.shape_cast %88 : vector<1x8x32xf32> to vector<8x32xf32>
    %90 = arith.mulf %89, %87 : vector<8x32xf32>
    %cst_71 = arith.constant 1.000000e+00 : f32
    %91 = vector.broadcast %cst_71 : f32 to vector<8x32xf32>
    %92 = arith.subf %91, %89 : vector<8x32xf32>
    %93 = arith.mulf %92, %55 : vector<8x32xf32>
    %94 = arith.addf %90, %93 : vector<8x32xf32>
    %cst_72 = arith.constant dense<0.000000e+00> : vector<8x32xf32>
    %95 = tpu.matmul %94, %43, %cst_72 {dimension_numbers = #tpu.dot_dimension_numbers<[1], [0], [0], [1], [0, 0, 1, 1], [], []>} : vector<8x32xf32>, vector<32x32xf32>, vector<8x32xf32> -> vector<8x32xf32>
    %96 = vector.broadcast %49 : vector<1x32xf32> to vector<8x32xf32>
    %97 = arith.addf %95, %96 : vector<8x32xf32>
    %cst_73 = arith.constant dense<0.000000e+00> : vector<8x32xf32>
    %98 = tpu.matmul %94, %45, %cst_73 {dimension_numbers = #tpu.dot_dimension_numbers<[1], [0], [0], [1], [0, 0, 1, 1], [], []>} : vector<8x32xf32>, vector<32x32xf32>, vector<8x32xf32> -> vector<8x32xf32>
    %99 = vector.broadcast %51 : vector<1x32xf32> to vector<8x32xf32>
    %100 = arith.addf %98, %99 : vector<8x32xf32>
    %cst_74 = arith.constant dense<0.000000e+00> : vector<8x32xf32>
    %101 = tpu.matmul %94, %47, %cst_74 {dimension_numbers = #tpu.dot_dimension_numbers<[1], [0], [0], [1], [0, 0, 1, 1], [], []>} : vector<8x32xf32>, vector<32x32xf32>, vector<8x32xf32> -> vector<8x32xf32>
    %102 = vector.broadcast %53 : vector<1x32xf32> to vector<8x32xf32>
    %103 = arith.addf %101, %102 : vector<8x32xf32>
    %104 = vector.extract_strided_slice %27 {offsets = [8, 0], sizes = [8, 32], strides = [1, 1]} : vector<64x32xf32> to vector<8x32xf32>
    %105 = arith.addf %104, %97 : vector<8x32xf32>
    %106 = arith.negf %105 : vector<8x32xf32>
    %107 = math.exp %106 : vector<8x32xf32>
    %cst_75 = arith.constant 1.000000e+00 : f32
    %108 = vector.broadcast %cst_75 : f32 to vector<8x32xf32>
    %109 = arith.addf %108, %107 : vector<8x32xf32>
    %110 = arith.divf %108, %109 : vector<8x32xf32>
    %111 = vector.extract_strided_slice %34 {offsets = [8, 0], sizes = [8, 32], strides = [1, 1]} : vector<64x32xf32> to vector<8x32xf32>
    %112 = arith.addf %111, %100 : vector<8x32xf32>
    %113 = arith.negf %112 : vector<8x32xf32>
    %114 = math.exp %113 : vector<8x32xf32>
    %cst_76 = arith.constant 1.000000e+00 : f32
    %115 = vector.broadcast %cst_76 : f32 to vector<8x32xf32>
    %116 = arith.addf %115, %114 : vector<8x32xf32>
    %117 = arith.divf %115, %116 : vector<8x32xf32>
    %118 = vector.extract_strided_slice %41 {offsets = [8, 0], sizes = [8, 32], strides = [1, 1]} : vector<64x32xf32> to vector<8x32xf32>
    %119 = arith.mulf %110, %103 : vector<8x32xf32>
    %120 = arith.addf %118, %119 : vector<8x32xf32>
    %121 = math.tanh %120 : vector<8x32xf32>
    %cst_77 = arith.constant 1.000000e+00 : f32
    %122 = vector.broadcast %cst_77 : f32 to vector<8x32xf32>
    %123 = arith.subf %122, %117 : vector<8x32xf32>
    %124 = arith.mulf %123, %121 : vector<8x32xf32>
    %125 = arith.mulf %117, %94 : vector<8x32xf32>
    %126 = arith.addf %124, %125 : vector<8x32xf32>
    %c1_78 = arith.constant 1 : index
    %c0_79 = arith.constant 0 : index
    %c0_80 = arith.constant 0 : index
    %127 = vector.load %arg2[%c1_78, %c0_79, %c0_80] : memref<8x8x32xf32, #tpu.memory_space<vmem>>, vector<1x8x32xf32>
    %128 = vector.shape_cast %127 : vector<1x8x32xf32> to vector<8x32xf32>
    %129 = arith.mulf %128, %126 : vector<8x32xf32>
    %cst_81 = arith.constant 1.000000e+00 : f32
    %130 = vector.broadcast %cst_81 : f32 to vector<8x32xf32>
    %131 = arith.subf %130, %128 : vector<8x32xf32>
    %132 = arith.mulf %131, %94 : vector<8x32xf32>
    %133 = arith.addf %129, %132 : vector<8x32xf32>
    %cst_82 = arith.constant dense<0.000000e+00> : vector<8x32xf32>
    %134 = tpu.matmul %133, %43, %cst_82 {dimension_numbers = #tpu.dot_dimension_numbers<[1], [0], [0], [1], [0, 0, 1, 1], [], []>} : vector<8x32xf32>, vector<32x32xf32>, vector<8x32xf32> -> vector<8x32xf32>
    %135 = vector.broadcast %49 : vector<1x32xf32> to vector<8x32xf32>
    %136 = arith.addf %134, %135 : vector<8x32xf32>
    %cst_83 = arith.constant dense<0.000000e+00> : vector<8x32xf32>
    %137 = tpu.matmul %133, %45, %cst_83 {dimension_numbers = #tpu.dot_dimension_numbers<[1], [0], [0], [1], [0, 0, 1, 1], [], []>} : vector<8x32xf32>, vector<32x32xf32>, vector<8x32xf32> -> vector<8x32xf32>
    %138 = vector.broadcast %51 : vector<1x32xf32> to vector<8x32xf32>
    %139 = arith.addf %137, %138 : vector<8x32xf32>
    %cst_84 = arith.constant dense<0.000000e+00> : vector<8x32xf32>
    %140 = tpu.matmul %133, %47, %cst_84 {dimension_numbers = #tpu.dot_dimension_numbers<[1], [0], [0], [1], [0, 0, 1, 1], [], []>} : vector<8x32xf32>, vector<32x32xf32>, vector<8x32xf32> -> vector<8x32xf32>
    %141 = vector.broadcast %53 : vector<1x32xf32> to vector<8x32xf32>
    %142 = arith.addf %140, %141 : vector<8x32xf32>
    %143 = vector.extract_strided_slice %27 {offsets = [16, 0], sizes = [8, 32], strides = [1, 1]} : vector<64x32xf32> to vector<8x32xf32>
    %144 = arith.addf %143, %136 : vector<8x32xf32>
    %145 = arith.negf %144 : vector<8x32xf32>
    %146 = math.exp %145 : vector<8x32xf32>
    %cst_85 = arith.constant 1.000000e+00 : f32
    %147 = vector.broadcast %cst_85 : f32 to vector<8x32xf32>
    %148 = arith.addf %147, %146 : vector<8x32xf32>
    %149 = arith.divf %147, %148 : vector<8x32xf32>
    %150 = vector.extract_strided_slice %34 {offsets = [16, 0], sizes = [8, 32], strides = [1, 1]} : vector<64x32xf32> to vector<8x32xf32>
    %151 = arith.addf %150, %139 : vector<8x32xf32>
    %152 = arith.negf %151 : vector<8x32xf32>
    %153 = math.exp %152 : vector<8x32xf32>
    %cst_86 = arith.constant 1.000000e+00 : f32
    %154 = vector.broadcast %cst_86 : f32 to vector<8x32xf32>
    %155 = arith.addf %154, %153 : vector<8x32xf32>
    %156 = arith.divf %154, %155 : vector<8x32xf32>
    %157 = vector.extract_strided_slice %41 {offsets = [16, 0], sizes = [8, 32], strides = [1, 1]} : vector<64x32xf32> to vector<8x32xf32>
    %158 = arith.mulf %149, %142 : vector<8x32xf32>
    %159 = arith.addf %157, %158 : vector<8x32xf32>
    %160 = math.tanh %159 : vector<8x32xf32>
    %cst_87 = arith.constant 1.000000e+00 : f32
    %161 = vector.broadcast %cst_87 : f32 to vector<8x32xf32>
    %162 = arith.subf %161, %156 : vector<8x32xf32>
    %163 = arith.mulf %162, %160 : vector<8x32xf32>
    %164 = arith.mulf %156, %133 : vector<8x32xf32>
    %165 = arith.addf %163, %164 : vector<8x32xf32>
    %c2_88 = arith.constant 2 : index
    %c0_89 = arith.constant 0 : index
    %c0_90 = arith.constant 0 : index
    %166 = vector.load %arg2[%c2_88, %c0_89, %c0_90] : memref<8x8x32xf32, #tpu.memory_space<vmem>>, vector<1x8x32xf32>
    %167 = vector.shape_cast %166 : vector<1x8x32xf32> to vector<8x32xf32>
    %168 = arith.mulf %167, %165 : vector<8x32xf32>
    %cst_91 = arith.constant 1.000000e+00 : f32
    %169 = vector.broadcast %cst_91 : f32 to vector<8x32xf32>
    %170 = arith.subf %169, %167 : vector<8x32xf32>
    %171 = arith.mulf %170, %133 : vector<8x32xf32>
    %172 = arith.addf %168, %171 : vector<8x32xf32>
    %cst_92 = arith.constant dense<0.000000e+00> : vector<8x32xf32>
    %173 = tpu.matmul %172, %43, %cst_92 {dimension_numbers = #tpu.dot_dimension_numbers<[1], [0], [0], [1], [0, 0, 1, 1], [], []>} : vector<8x32xf32>, vector<32x32xf32>, vector<8x32xf32> -> vector<8x32xf32>
    %174 = vector.broadcast %49 : vector<1x32xf32> to vector<8x32xf32>
    %175 = arith.addf %173, %174 : vector<8x32xf32>
    %cst_93 = arith.constant dense<0.000000e+00> : vector<8x32xf32>
    %176 = tpu.matmul %172, %45, %cst_93 {dimension_numbers = #tpu.dot_dimension_numbers<[1], [0], [0], [1], [0, 0, 1, 1], [], []>} : vector<8x32xf32>, vector<32x32xf32>, vector<8x32xf32> -> vector<8x32xf32>
    %177 = vector.broadcast %51 : vector<1x32xf32> to vector<8x32xf32>
    %178 = arith.addf %176, %177 : vector<8x32xf32>
    %cst_94 = arith.constant dense<0.000000e+00> : vector<8x32xf32>
    %179 = tpu.matmul %172, %47, %cst_94 {dimension_numbers = #tpu.dot_dimension_numbers<[1], [0], [0], [1], [0, 0, 1, 1], [], []>} : vector<8x32xf32>, vector<32x32xf32>, vector<8x32xf32> -> vector<8x32xf32>
    %180 = vector.broadcast %53 : vector<1x32xf32> to vector<8x32xf32>
    %181 = arith.addf %179, %180 : vector<8x32xf32>
    %182 = vector.extract_strided_slice %27 {offsets = [24, 0], sizes = [8, 32], strides = [1, 1]} : vector<64x32xf32> to vector<8x32xf32>
    %183 = arith.addf %182, %175 : vector<8x32xf32>
    %184 = arith.negf %183 : vector<8x32xf32>
    %185 = math.exp %184 : vector<8x32xf32>
    %cst_95 = arith.constant 1.000000e+00 : f32
    %186 = vector.broadcast %cst_95 : f32 to vector<8x32xf32>
    %187 = arith.addf %186, %185 : vector<8x32xf32>
    %188 = arith.divf %186, %187 : vector<8x32xf32>
    %189 = vector.extract_strided_slice %34 {offsets = [24, 0], sizes = [8, 32], strides = [1, 1]} : vector<64x32xf32> to vector<8x32xf32>
    %190 = arith.addf %189, %178 : vector<8x32xf32>
    %191 = arith.negf %190 : vector<8x32xf32>
    %192 = math.exp %191 : vector<8x32xf32>
    %cst_96 = arith.constant 1.000000e+00 : f32
    %193 = vector.broadcast %cst_96 : f32 to vector<8x32xf32>
    %194 = arith.addf %193, %192 : vector<8x32xf32>
    %195 = arith.divf %193, %194 : vector<8x32xf32>
    %196 = vector.extract_strided_slice %41 {offsets = [24, 0], sizes = [8, 32], strides = [1, 1]} : vector<64x32xf32> to vector<8x32xf32>
    %197 = arith.mulf %188, %181 : vector<8x32xf32>
    %198 = arith.addf %196, %197 : vector<8x32xf32>
    %199 = math.tanh %198 : vector<8x32xf32>
    %cst_97 = arith.constant 1.000000e+00 : f32
    %200 = vector.broadcast %cst_97 : f32 to vector<8x32xf32>
    %201 = arith.subf %200, %195 : vector<8x32xf32>
    %202 = arith.mulf %201, %199 : vector<8x32xf32>
    %203 = arith.mulf %195, %172 : vector<8x32xf32>
    %204 = arith.addf %202, %203 : vector<8x32xf32>
    %c3_98 = arith.constant 3 : index
    %c0_99 = arith.constant 0 : index
    %c0_100 = arith.constant 0 : index
    %205 = vector.load %arg2[%c3_98, %c0_99, %c0_100] : memref<8x8x32xf32, #tpu.memory_space<vmem>>, vector<1x8x32xf32>
    %206 = vector.shape_cast %205 : vector<1x8x32xf32> to vector<8x32xf32>
    %207 = arith.mulf %206, %204 : vector<8x32xf32>
    %cst_101 = arith.constant 1.000000e+00 : f32
    %208 = vector.broadcast %cst_101 : f32 to vector<8x32xf32>
    %209 = arith.subf %208, %206 : vector<8x32xf32>
    %210 = arith.mulf %209, %172 : vector<8x32xf32>
    %211 = arith.addf %207, %210 : vector<8x32xf32>
    %cst_102 = arith.constant dense<0.000000e+00> : vector<8x32xf32>
    %212 = tpu.matmul %211, %43, %cst_102 {dimension_numbers = #tpu.dot_dimension_numbers<[1], [0], [0], [1], [0, 0, 1, 1], [], []>} : vector<8x32xf32>, vector<32x32xf32>, vector<8x32xf32> -> vector<8x32xf32>
    %213 = vector.broadcast %49 : vector<1x32xf32> to vector<8x32xf32>
    %214 = arith.addf %212, %213 : vector<8x32xf32>
    %cst_103 = arith.constant dense<0.000000e+00> : vector<8x32xf32>
    %215 = tpu.matmul %211, %45, %cst_103 {dimension_numbers = #tpu.dot_dimension_numbers<[1], [0], [0], [1], [0, 0, 1, 1], [], []>} : vector<8x32xf32>, vector<32x32xf32>, vector<8x32xf32> -> vector<8x32xf32>
    %216 = vector.broadcast %51 : vector<1x32xf32> to vector<8x32xf32>
    %217 = arith.addf %215, %216 : vector<8x32xf32>
    %cst_104 = arith.constant dense<0.000000e+00> : vector<8x32xf32>
    %218 = tpu.matmul %211, %47, %cst_104 {dimension_numbers = #tpu.dot_dimension_numbers<[1], [0], [0], [1], [0, 0, 1, 1], [], []>} : vector<8x32xf32>, vector<32x32xf32>, vector<8x32xf32> -> vector<8x32xf32>
    %219 = vector.broadcast %53 : vector<1x32xf32> to vector<8x32xf32>
    %220 = arith.addf %218, %219 : vector<8x32xf32>
    %221 = vector.extract_strided_slice %27 {offsets = [32, 0], sizes = [8, 32], strides = [1, 1]} : vector<64x32xf32> to vector<8x32xf32>
    %222 = arith.addf %221, %214 : vector<8x32xf32>
    %223 = arith.negf %222 : vector<8x32xf32>
    %224 = math.exp %223 : vector<8x32xf32>
    %cst_105 = arith.constant 1.000000e+00 : f32
    %225 = vector.broadcast %cst_105 : f32 to vector<8x32xf32>
    %226 = arith.addf %225, %224 : vector<8x32xf32>
    %227 = arith.divf %225, %226 : vector<8x32xf32>
    %228 = vector.extract_strided_slice %34 {offsets = [32, 0], sizes = [8, 32], strides = [1, 1]} : vector<64x32xf32> to vector<8x32xf32>
    %229 = arith.addf %228, %217 : vector<8x32xf32>
    %230 = arith.negf %229 : vector<8x32xf32>
    %231 = math.exp %230 : vector<8x32xf32>
    %cst_106 = arith.constant 1.000000e+00 : f32
    %232 = vector.broadcast %cst_106 : f32 to vector<8x32xf32>
    %233 = arith.addf %232, %231 : vector<8x32xf32>
    %234 = arith.divf %232, %233 : vector<8x32xf32>
    %235 = vector.extract_strided_slice %41 {offsets = [32, 0], sizes = [8, 32], strides = [1, 1]} : vector<64x32xf32> to vector<8x32xf32>
    %236 = arith.mulf %227, %220 : vector<8x32xf32>
    %237 = arith.addf %235, %236 : vector<8x32xf32>
    %238 = math.tanh %237 : vector<8x32xf32>
    %cst_107 = arith.constant 1.000000e+00 : f32
    %239 = vector.broadcast %cst_107 : f32 to vector<8x32xf32>
    %240 = arith.subf %239, %234 : vector<8x32xf32>
    %241 = arith.mulf %240, %238 : vector<8x32xf32>
    %242 = arith.mulf %234, %211 : vector<8x32xf32>
    %243 = arith.addf %241, %242 : vector<8x32xf32>
    %c4_108 = arith.constant 4 : index
    %c0_109 = arith.constant 0 : index
    %c0_110 = arith.constant 0 : index
    %244 = vector.load %arg2[%c4_108, %c0_109, %c0_110] : memref<8x8x32xf32, #tpu.memory_space<vmem>>, vector<1x8x32xf32>
    %245 = vector.shape_cast %244 : vector<1x8x32xf32> to vector<8x32xf32>
    %246 = arith.mulf %245, %243 : vector<8x32xf32>
    %cst_111 = arith.constant 1.000000e+00 : f32
    %247 = vector.broadcast %cst_111 : f32 to vector<8x32xf32>
    %248 = arith.subf %247, %245 : vector<8x32xf32>
    %249 = arith.mulf %248, %211 : vector<8x32xf32>
    %250 = arith.addf %246, %249 : vector<8x32xf32>
    %cst_112 = arith.constant dense<0.000000e+00> : vector<8x32xf32>
    %251 = tpu.matmul %250, %43, %cst_112 {dimension_numbers = #tpu.dot_dimension_numbers<[1], [0], [0], [1], [0, 0, 1, 1], [], []>} : vector<8x32xf32>, vector<32x32xf32>, vector<8x32xf32> -> vector<8x32xf32>
    %252 = vector.broadcast %49 : vector<1x32xf32> to vector<8x32xf32>
    %253 = arith.addf %251, %252 : vector<8x32xf32>
    %cst_113 = arith.constant dense<0.000000e+00> : vector<8x32xf32>
    %254 = tpu.matmul %250, %45, %cst_113 {dimension_numbers = #tpu.dot_dimension_numbers<[1], [0], [0], [1], [0, 0, 1, 1], [], []>} : vector<8x32xf32>, vector<32x32xf32>, vector<8x32xf32> -> vector<8x32xf32>
    %255 = vector.broadcast %51 : vector<1x32xf32> to vector<8x32xf32>
    %256 = arith.addf %254, %255 : vector<8x32xf32>
    %cst_114 = arith.constant dense<0.000000e+00> : vector<8x32xf32>
    %257 = tpu.matmul %250, %47, %cst_114 {dimension_numbers = #tpu.dot_dimension_numbers<[1], [0], [0], [1], [0, 0, 1, 1], [], []>} : vector<8x32xf32>, vector<32x32xf32>, vector<8x32xf32> -> vector<8x32xf32>
    %258 = vector.broadcast %53 : vector<1x32xf32> to vector<8x32xf32>
    %259 = arith.addf %257, %258 : vector<8x32xf32>
    %260 = vector.extract_strided_slice %27 {offsets = [40, 0], sizes = [8, 32], strides = [1, 1]} : vector<64x32xf32> to vector<8x32xf32>
    %261 = arith.addf %260, %253 : vector<8x32xf32>
    %262 = arith.negf %261 : vector<8x32xf32>
    %263 = math.exp %262 : vector<8x32xf32>
    %cst_115 = arith.constant 1.000000e+00 : f32
    %264 = vector.broadcast %cst_115 : f32 to vector<8x32xf32>
    %265 = arith.addf %264, %263 : vector<8x32xf32>
    %266 = arith.divf %264, %265 : vector<8x32xf32>
    %267 = vector.extract_strided_slice %34 {offsets = [40, 0], sizes = [8, 32], strides = [1, 1]} : vector<64x32xf32> to vector<8x32xf32>
    %268 = arith.addf %267, %256 : vector<8x32xf32>
    %269 = arith.negf %268 : vector<8x32xf32>
    %270 = math.exp %269 : vector<8x32xf32>
    %cst_116 = arith.constant 1.000000e+00 : f32
    %271 = vector.broadcast %cst_116 : f32 to vector<8x32xf32>
    %272 = arith.addf %271, %270 : vector<8x32xf32>
    %273 = arith.divf %271, %272 : vector<8x32xf32>
    %274 = vector.extract_strided_slice %41 {offsets = [40, 0], sizes = [8, 32], strides = [1, 1]} : vector<64x32xf32> to vector<8x32xf32>
    %275 = arith.mulf %266, %259 : vector<8x32xf32>
    %276 = arith.addf %274, %275 : vector<8x32xf32>
    %277 = math.tanh %276 : vector<8x32xf32>
    %cst_117 = arith.constant 1.000000e+00 : f32
    %278 = vector.broadcast %cst_117 : f32 to vector<8x32xf32>
    %279 = arith.subf %278, %273 : vector<8x32xf32>
    %280 = arith.mulf %279, %277 : vector<8x32xf32>
    %281 = arith.mulf %273, %250 : vector<8x32xf32>
    %282 = arith.addf %280, %281 : vector<8x32xf32>
    %c5_118 = arith.constant 5 : index
    %c0_119 = arith.constant 0 : index
    %c0_120 = arith.constant 0 : index
    %283 = vector.load %arg2[%c5_118, %c0_119, %c0_120] : memref<8x8x32xf32, #tpu.memory_space<vmem>>, vector<1x8x32xf32>
    %284 = vector.shape_cast %283 : vector<1x8x32xf32> to vector<8x32xf32>
    %285 = arith.mulf %284, %282 : vector<8x32xf32>
    %cst_121 = arith.constant 1.000000e+00 : f32
    %286 = vector.broadcast %cst_121 : f32 to vector<8x32xf32>
    %287 = arith.subf %286, %284 : vector<8x32xf32>
    %288 = arith.mulf %287, %250 : vector<8x32xf32>
    %289 = arith.addf %285, %288 : vector<8x32xf32>
    %cst_122 = arith.constant dense<0.000000e+00> : vector<8x32xf32>
    %290 = tpu.matmul %289, %43, %cst_122 {dimension_numbers = #tpu.dot_dimension_numbers<[1], [0], [0], [1], [0, 0, 1, 1], [], []>} : vector<8x32xf32>, vector<32x32xf32>, vector<8x32xf32> -> vector<8x32xf32>
    %291 = vector.broadcast %49 : vector<1x32xf32> to vector<8x32xf32>
    %292 = arith.addf %290, %291 : vector<8x32xf32>
    %cst_123 = arith.constant dense<0.000000e+00> : vector<8x32xf32>
    %293 = tpu.matmul %289, %45, %cst_123 {dimension_numbers = #tpu.dot_dimension_numbers<[1], [0], [0], [1], [0, 0, 1, 1], [], []>} : vector<8x32xf32>, vector<32x32xf32>, vector<8x32xf32> -> vector<8x32xf32>
    %294 = vector.broadcast %51 : vector<1x32xf32> to vector<8x32xf32>
    %295 = arith.addf %293, %294 : vector<8x32xf32>
    %cst_124 = arith.constant dense<0.000000e+00> : vector<8x32xf32>
    %296 = tpu.matmul %289, %47, %cst_124 {dimension_numbers = #tpu.dot_dimension_numbers<[1], [0], [0], [1], [0, 0, 1, 1], [], []>} : vector<8x32xf32>, vector<32x32xf32>, vector<8x32xf32> -> vector<8x32xf32>
    %297 = vector.broadcast %53 : vector<1x32xf32> to vector<8x32xf32>
    %298 = arith.addf %296, %297 : vector<8x32xf32>
    %299 = vector.extract_strided_slice %27 {offsets = [48, 0], sizes = [8, 32], strides = [1, 1]} : vector<64x32xf32> to vector<8x32xf32>
    %300 = arith.addf %299, %292 : vector<8x32xf32>
    %301 = arith.negf %300 : vector<8x32xf32>
    %302 = math.exp %301 : vector<8x32xf32>
    %cst_125 = arith.constant 1.000000e+00 : f32
    %303 = vector.broadcast %cst_125 : f32 to vector<8x32xf32>
    %304 = arith.addf %303, %302 : vector<8x32xf32>
    %305 = arith.divf %303, %304 : vector<8x32xf32>
    %306 = vector.extract_strided_slice %34 {offsets = [48, 0], sizes = [8, 32], strides = [1, 1]} : vector<64x32xf32> to vector<8x32xf32>
    %307 = arith.addf %306, %295 : vector<8x32xf32>
    %308 = arith.negf %307 : vector<8x32xf32>
    %309 = math.exp %308 : vector<8x32xf32>
    %cst_126 = arith.constant 1.000000e+00 : f32
    %310 = vector.broadcast %cst_126 : f32 to vector<8x32xf32>
    %311 = arith.addf %310, %309 : vector<8x32xf32>
    %312 = arith.divf %310, %311 : vector<8x32xf32>
    %313 = vector.extract_strided_slice %41 {offsets = [48, 0], sizes = [8, 32], strides = [1, 1]} : vector<64x32xf32> to vector<8x32xf32>
    %314 = arith.mulf %305, %298 : vector<8x32xf32>
    %315 = arith.addf %313, %314 : vector<8x32xf32>
    %316 = math.tanh %315 : vector<8x32xf32>
    %cst_127 = arith.constant 1.000000e+00 : f32
    %317 = vector.broadcast %cst_127 : f32 to vector<8x32xf32>
    %318 = arith.subf %317, %312 : vector<8x32xf32>
    %319 = arith.mulf %318, %316 : vector<8x32xf32>
    %320 = arith.mulf %312, %289 : vector<8x32xf32>
    %321 = arith.addf %319, %320 : vector<8x32xf32>
    %c6_128 = arith.constant 6 : index
    %c0_129 = arith.constant 0 : index
    %c0_130 = arith.constant 0 : index
    %322 = vector.load %arg2[%c6_128, %c0_129, %c0_130] : memref<8x8x32xf32, #tpu.memory_space<vmem>>, vector<1x8x32xf32>
    %323 = vector.shape_cast %322 : vector<1x8x32xf32> to vector<8x32xf32>
    %324 = arith.mulf %323, %321 : vector<8x32xf32>
    %cst_131 = arith.constant 1.000000e+00 : f32
    %325 = vector.broadcast %cst_131 : f32 to vector<8x32xf32>
    %326 = arith.subf %325, %323 : vector<8x32xf32>
    %327 = arith.mulf %326, %289 : vector<8x32xf32>
    %328 = arith.addf %324, %327 : vector<8x32xf32>
    %cst_132 = arith.constant dense<0.000000e+00> : vector<8x32xf32>
    %329 = tpu.matmul %328, %43, %cst_132 {dimension_numbers = #tpu.dot_dimension_numbers<[1], [0], [0], [1], [0, 0, 1, 1], [], []>} : vector<8x32xf32>, vector<32x32xf32>, vector<8x32xf32> -> vector<8x32xf32>
    %330 = vector.broadcast %49 : vector<1x32xf32> to vector<8x32xf32>
    %331 = arith.addf %329, %330 : vector<8x32xf32>
    %cst_133 = arith.constant dense<0.000000e+00> : vector<8x32xf32>
    %332 = tpu.matmul %328, %45, %cst_133 {dimension_numbers = #tpu.dot_dimension_numbers<[1], [0], [0], [1], [0, 0, 1, 1], [], []>} : vector<8x32xf32>, vector<32x32xf32>, vector<8x32xf32> -> vector<8x32xf32>
    %333 = vector.broadcast %51 : vector<1x32xf32> to vector<8x32xf32>
    %334 = arith.addf %332, %333 : vector<8x32xf32>
    %cst_134 = arith.constant dense<0.000000e+00> : vector<8x32xf32>
    %335 = tpu.matmul %328, %47, %cst_134 {dimension_numbers = #tpu.dot_dimension_numbers<[1], [0], [0], [1], [0, 0, 1, 1], [], []>} : vector<8x32xf32>, vector<32x32xf32>, vector<8x32xf32> -> vector<8x32xf32>
    %336 = vector.broadcast %53 : vector<1x32xf32> to vector<8x32xf32>
    %337 = arith.addf %335, %336 : vector<8x32xf32>
    %338 = vector.extract_strided_slice %27 {offsets = [56, 0], sizes = [8, 32], strides = [1, 1]} : vector<64x32xf32> to vector<8x32xf32>
    %339 = arith.addf %338, %331 : vector<8x32xf32>
    %340 = arith.negf %339 : vector<8x32xf32>
    %341 = math.exp %340 : vector<8x32xf32>
    %cst_135 = arith.constant 1.000000e+00 : f32
    %342 = vector.broadcast %cst_135 : f32 to vector<8x32xf32>
    %343 = arith.addf %342, %341 : vector<8x32xf32>
    %344 = arith.divf %342, %343 : vector<8x32xf32>
    %345 = vector.extract_strided_slice %34 {offsets = [56, 0], sizes = [8, 32], strides = [1, 1]} : vector<64x32xf32> to vector<8x32xf32>
    %346 = arith.addf %345, %334 : vector<8x32xf32>
    %347 = arith.negf %346 : vector<8x32xf32>
    %348 = math.exp %347 : vector<8x32xf32>
    %cst_136 = arith.constant 1.000000e+00 : f32
    %349 = vector.broadcast %cst_136 : f32 to vector<8x32xf32>
    %350 = arith.addf %349, %348 : vector<8x32xf32>
    %351 = arith.divf %349, %350 : vector<8x32xf32>
    %352 = vector.extract_strided_slice %41 {offsets = [56, 0], sizes = [8, 32], strides = [1, 1]} : vector<64x32xf32> to vector<8x32xf32>
    %353 = arith.mulf %344, %337 : vector<8x32xf32>
    %354 = arith.addf %352, %353 : vector<8x32xf32>
    %355 = math.tanh %354 : vector<8x32xf32>
    %cst_137 = arith.constant 1.000000e+00 : f32
    %356 = vector.broadcast %cst_137 : f32 to vector<8x32xf32>
    %357 = arith.subf %356, %351 : vector<8x32xf32>
    %358 = arith.mulf %357, %355 : vector<8x32xf32>
    %359 = arith.mulf %351, %328 : vector<8x32xf32>
    %360 = arith.addf %358, %359 : vector<8x32xf32>
    %c7 = arith.constant 7 : index
    %c0_138 = arith.constant 0 : index
    %c0_139 = arith.constant 0 : index
    %361 = vector.load %arg2[%c7, %c0_138, %c0_139] : memref<8x8x32xf32, #tpu.memory_space<vmem>>, vector<1x8x32xf32>
    %362 = vector.shape_cast %361 : vector<1x8x32xf32> to vector<8x32xf32>
    %363 = arith.mulf %362, %360 : vector<8x32xf32>
    %cst_140 = arith.constant 1.000000e+00 : f32
    %364 = vector.broadcast %cst_140 : f32 to vector<8x32xf32>
    %365 = arith.subf %364, %362 : vector<8x32xf32>
    %366 = arith.mulf %365, %328 : vector<8x32xf32>
    %367 = arith.addf %363, %366 : vector<8x32xf32>
    %368 = tpu.concatenate %94, %133, %172, %211, %250, %289, %328, %367 in 0 : vector<8x32xf32>, vector<8x32xf32>, vector<8x32xf32>, vector<8x32xf32>, vector<8x32xf32>, vector<8x32xf32>, vector<8x32xf32>, vector<8x32xf32> -> vector<64x32xf32>
    %c0_141 = arith.constant 0 : index
    %c0_142 = arith.constant 0 : index
    %c0_143 = arith.constant 0 : index
    %369 = vector.load %arg12[%c0_141, %c0_142, %c0_143] : memref<3x32x32xf32, #tpu.memory_space<vmem>>, vector<1x32x32xf32>
    %370 = vector.shape_cast %369 : vector<1x32x32xf32> to vector<32x32xf32>
    %cst_144 = arith.constant dense<0.000000e+00> : vector<64x32xf32>
    %371 = tpu.matmul %368, %370, %cst_144 {dimension_numbers = #tpu.dot_dimension_numbers<[1], [0], [0], [1], [0, 0, 1, 1], [], []>} : vector<64x32xf32>, vector<32x32xf32>, vector<64x32xf32> -> vector<64x32xf32>
    %c0_145 = arith.constant 0 : index
    %c0_146 = arith.constant 0 : index
    %c0_147 = arith.constant 0 : index
    %372 = vector.load %arg13[%c0_145, %c0_146, %c0_147] : memref<3x1x32xf32, #tpu.memory_space<vmem>>, vector<1x1x32xf32>
    %373 = vector.shape_cast %372 : vector<1x1x32xf32> to vector<1x32xf32>
    %374 = vector.broadcast %373 : vector<1x32xf32> to vector<64x32xf32>
    %375 = arith.addf %371, %374 : vector<64x32xf32>
    %c1_148 = arith.constant 1 : index
    %c0_149 = arith.constant 0 : index
    %c0_150 = arith.constant 0 : index
    %376 = vector.load %arg12[%c1_148, %c0_149, %c0_150] : memref<3x32x32xf32, #tpu.memory_space<vmem>>, vector<1x32x32xf32>
    %377 = vector.shape_cast %376 : vector<1x32x32xf32> to vector<32x32xf32>
    %cst_151 = arith.constant dense<0.000000e+00> : vector<64x32xf32>
    %378 = tpu.matmul %368, %377, %cst_151 {dimension_numbers = #tpu.dot_dimension_numbers<[1], [0], [0], [1], [0, 0, 1, 1], [], []>} : vector<64x32xf32>, vector<32x32xf32>, vector<64x32xf32> -> vector<64x32xf32>
    %c1_152 = arith.constant 1 : index
    %c0_153 = arith.constant 0 : index
    %c0_154 = arith.constant 0 : index
    %379 = vector.load %arg13[%c1_152, %c0_153, %c0_154] : memref<3x1x32xf32, #tpu.memory_space<vmem>>, vector<1x1x32xf32>
    %380 = vector.shape_cast %379 : vector<1x1x32xf32> to vector<1x32xf32>
    %381 = vector.broadcast %380 : vector<1x32xf32> to vector<64x32xf32>
    %382 = arith.addf %378, %381 : vector<64x32xf32>
    %c2_155 = arith.constant 2 : index
    %c0_156 = arith.constant 0 : index
    %c0_157 = arith.constant 0 : index
    %383 = vector.load %arg12[%c2_155, %c0_156, %c0_157] : memref<3x32x32xf32, #tpu.memory_space<vmem>>, vector<1x32x32xf32>
    %384 = vector.shape_cast %383 : vector<1x32x32xf32> to vector<32x32xf32>
    %cst_158 = arith.constant dense<0.000000e+00> : vector<64x32xf32>
    %385 = tpu.matmul %368, %384, %cst_158 {dimension_numbers = #tpu.dot_dimension_numbers<[1], [0], [0], [1], [0, 0, 1, 1], [], []>} : vector<64x32xf32>, vector<32x32xf32>, vector<64x32xf32> -> vector<64x32xf32>
    %c2_159 = arith.constant 2 : index
    %c0_160 = arith.constant 0 : index
    %c0_161 = arith.constant 0 : index
    %386 = vector.load %arg13[%c2_159, %c0_160, %c0_161] : memref<3x1x32xf32, #tpu.memory_space<vmem>>, vector<1x1x32xf32>
    %387 = vector.shape_cast %386 : vector<1x1x32xf32> to vector<1x32xf32>
    %388 = vector.broadcast %387 : vector<1x32xf32> to vector<64x32xf32>
    %389 = arith.addf %385, %388 : vector<64x32xf32>
    %c0_162 = arith.constant 0 : index
    %c0_163 = arith.constant 0 : index
    %c0_164 = arith.constant 0 : index
    %390 = vector.load %arg14[%c0_162, %c0_163, %c0_164] : memref<3x32x32xf32, #tpu.memory_space<vmem>>, vector<1x32x32xf32>
    %391 = vector.shape_cast %390 : vector<1x32x32xf32> to vector<32x32xf32>
    %c1_165 = arith.constant 1 : index
    %c0_166 = arith.constant 0 : index
    %c0_167 = arith.constant 0 : index
    %392 = vector.load %arg14[%c1_165, %c0_166, %c0_167] : memref<3x32x32xf32, #tpu.memory_space<vmem>>, vector<1x32x32xf32>
    %393 = vector.shape_cast %392 : vector<1x32x32xf32> to vector<32x32xf32>
    %c2_168 = arith.constant 2 : index
    %c0_169 = arith.constant 0 : index
    %c0_170 = arith.constant 0 : index
    %394 = vector.load %arg14[%c2_168, %c0_169, %c0_170] : memref<3x32x32xf32, #tpu.memory_space<vmem>>, vector<1x32x32xf32>
    %395 = vector.shape_cast %394 : vector<1x32x32xf32> to vector<32x32xf32>
    %c0_171 = arith.constant 0 : index
    %c0_172 = arith.constant 0 : index
    %c0_173 = arith.constant 0 : index
    %396 = vector.load %arg15[%c0_171, %c0_172, %c0_173] : memref<3x1x32xf32, #tpu.memory_space<vmem>>, vector<1x1x32xf32>
    %397 = vector.shape_cast %396 : vector<1x1x32xf32> to vector<1x32xf32>
    %c1_174 = arith.constant 1 : index
    %c0_175 = arith.constant 0 : index
    %c0_176 = arith.constant 0 : index
    %398 = vector.load %arg15[%c1_174, %c0_175, %c0_176] : memref<3x1x32xf32, #tpu.memory_space<vmem>>, vector<1x1x32xf32>
    %399 = vector.shape_cast %398 : vector<1x1x32xf32> to vector<1x32xf32>
    %c2_177 = arith.constant 2 : index
    %c0_178 = arith.constant 0 : index
    %c0_179 = arith.constant 0 : index
    %400 = vector.load %arg15[%c2_177, %c0_178, %c0_179] : memref<3x1x32xf32, #tpu.memory_space<vmem>>, vector<1x1x32xf32>
    %401 = vector.shape_cast %400 : vector<1x1x32xf32> to vector<1x32xf32>
    %c1_180 = arith.constant 1 : index
    %c0_181 = arith.constant 0 : index
    %c0_182 = arith.constant 0 : index
    %402 = vector.load %arg5[%c1_180, %c0_181, %c0_182] : memref<2x8x32xf32, #tpu.memory_space<vmem>>, vector<1x8x32xf32>
    %403 = vector.shape_cast %402 : vector<1x8x32xf32> to vector<8x32xf32>
    %cst_183 = arith.constant dense<0.000000e+00> : vector<8x32xf32>
    %404 = tpu.matmul %403, %391, %cst_183 {dimension_numbers = #tpu.dot_dimension_numbers<[1], [0], [0], [1], [0, 0, 1, 1], [], []>} : vector<8x32xf32>, vector<32x32xf32>, vector<8x32xf32> -> vector<8x32xf32>
    %405 = vector.broadcast %397 : vector<1x32xf32> to vector<8x32xf32>
    %406 = arith.addf %404, %405 : vector<8x32xf32>
    %cst_184 = arith.constant dense<0.000000e+00> : vector<8x32xf32>
    %407 = tpu.matmul %403, %393, %cst_184 {dimension_numbers = #tpu.dot_dimension_numbers<[1], [0], [0], [1], [0, 0, 1, 1], [], []>} : vector<8x32xf32>, vector<32x32xf32>, vector<8x32xf32> -> vector<8x32xf32>
    %408 = vector.broadcast %399 : vector<1x32xf32> to vector<8x32xf32>
    %409 = arith.addf %407, %408 : vector<8x32xf32>
    %cst_185 = arith.constant dense<0.000000e+00> : vector<8x32xf32>
    %410 = tpu.matmul %403, %395, %cst_185 {dimension_numbers = #tpu.dot_dimension_numbers<[1], [0], [0], [1], [0, 0, 1, 1], [], []>} : vector<8x32xf32>, vector<32x32xf32>, vector<8x32xf32> -> vector<8x32xf32>
    %411 = vector.broadcast %401 : vector<1x32xf32> to vector<8x32xf32>
    %412 = arith.addf %410, %411 : vector<8x32xf32>
    %413 = vector.extract_strided_slice %375 {offsets = [0, 0], sizes = [8, 32], strides = [1, 1]} : vector<64x32xf32> to vector<8x32xf32>
    %414 = arith.addf %413, %406 : vector<8x32xf32>
    %415 = arith.negf %414 : vector<8x32xf32>
    %416 = math.exp %415 : vector<8x32xf32>
    %cst_186 = arith.constant 1.000000e+00 : f32
    %417 = vector.broadcast %cst_186 : f32 to vector<8x32xf32>
    %418 = arith.addf %417, %416 : vector<8x32xf32>
    %419 = arith.divf %417, %418 : vector<8x32xf32>
    %420 = vector.extract_strided_slice %382 {offsets = [0, 0], sizes = [8, 32], strides = [1, 1]} : vector<64x32xf32> to vector<8x32xf32>
    %421 = arith.addf %420, %409 : vector<8x32xf32>
    %422 = arith.negf %421 : vector<8x32xf32>
    %423 = math.exp %422 : vector<8x32xf32>
    %cst_187 = arith.constant 1.000000e+00 : f32
    %424 = vector.broadcast %cst_187 : f32 to vector<8x32xf32>
    %425 = arith.addf %424, %423 : vector<8x32xf32>
    %426 = arith.divf %424, %425 : vector<8x32xf32>
    %427 = vector.extract_strided_slice %389 {offsets = [0, 0], sizes = [8, 32], strides = [1, 1]} : vector<64x32xf32> to vector<8x32xf32>
    %428 = arith.mulf %419, %412 : vector<8x32xf32>
    %429 = arith.addf %427, %428 : vector<8x32xf32>
    %430 = math.tanh %429 : vector<8x32xf32>
    %cst_188 = arith.constant 1.000000e+00 : f32
    %431 = vector.broadcast %cst_188 : f32 to vector<8x32xf32>
    %432 = arith.subf %431, %426 : vector<8x32xf32>
    %433 = arith.mulf %432, %430 : vector<8x32xf32>
    %434 = arith.mulf %426, %403 : vector<8x32xf32>
    %435 = arith.addf %433, %434 : vector<8x32xf32>
    %c0_189 = arith.constant 0 : index
    %c0_190 = arith.constant 0 : index
    %c0_191 = arith.constant 0 : index
    %436 = vector.load %arg2[%c0_189, %c0_190, %c0_191] : memref<8x8x32xf32, #tpu.memory_space<vmem>>, vector<1x8x32xf32>
    %437 = vector.shape_cast %436 : vector<1x8x32xf32> to vector<8x32xf32>
    %438 = arith.mulf %437, %435 : vector<8x32xf32>
    %cst_192 = arith.constant 1.000000e+00 : f32
    %439 = vector.broadcast %cst_192 : f32 to vector<8x32xf32>
    %440 = arith.subf %439, %437 : vector<8x32xf32>
    %441 = arith.mulf %440, %403 : vector<8x32xf32>
    %442 = arith.addf %438, %441 : vector<8x32xf32>
    %cst_193 = arith.constant dense<0.000000e+00> : vector<8x32xf32>
    %443 = tpu.matmul %442, %391, %cst_193 {dimension_numbers = #tpu.dot_dimension_numbers<[1], [0], [0], [1], [0, 0, 1, 1], [], []>} : vector<8x32xf32>, vector<32x32xf32>, vector<8x32xf32> -> vector<8x32xf32>
    %444 = vector.broadcast %397 : vector<1x32xf32> to vector<8x32xf32>
    %445 = arith.addf %443, %444 : vector<8x32xf32>
    %cst_194 = arith.constant dense<0.000000e+00> : vector<8x32xf32>
    %446 = tpu.matmul %442, %393, %cst_194 {dimension_numbers = #tpu.dot_dimension_numbers<[1], [0], [0], [1], [0, 0, 1, 1], [], []>} : vector<8x32xf32>, vector<32x32xf32>, vector<8x32xf32> -> vector<8x32xf32>
    %447 = vector.broadcast %399 : vector<1x32xf32> to vector<8x32xf32>
    %448 = arith.addf %446, %447 : vector<8x32xf32>
    %cst_195 = arith.constant dense<0.000000e+00> : vector<8x32xf32>
    %449 = tpu.matmul %442, %395, %cst_195 {dimension_numbers = #tpu.dot_dimension_numbers<[1], [0], [0], [1], [0, 0, 1, 1], [], []>} : vector<8x32xf32>, vector<32x32xf32>, vector<8x32xf32> -> vector<8x32xf32>
    %450 = vector.broadcast %401 : vector<1x32xf32> to vector<8x32xf32>
    %451 = arith.addf %449, %450 : vector<8x32xf32>
    %452 = vector.extract_strided_slice %375 {offsets = [8, 0], sizes = [8, 32], strides = [1, 1]} : vector<64x32xf32> to vector<8x32xf32>
    %453 = arith.addf %452, %445 : vector<8x32xf32>
    %454 = arith.negf %453 : vector<8x32xf32>
    %455 = math.exp %454 : vector<8x32xf32>
    %cst_196 = arith.constant 1.000000e+00 : f32
    %456 = vector.broadcast %cst_196 : f32 to vector<8x32xf32>
    %457 = arith.addf %456, %455 : vector<8x32xf32>
    %458 = arith.divf %456, %457 : vector<8x32xf32>
    %459 = vector.extract_strided_slice %382 {offsets = [8, 0], sizes = [8, 32], strides = [1, 1]} : vector<64x32xf32> to vector<8x32xf32>
    %460 = arith.addf %459, %448 : vector<8x32xf32>
    %461 = arith.negf %460 : vector<8x32xf32>
    %462 = math.exp %461 : vector<8x32xf32>
    %cst_197 = arith.constant 1.000000e+00 : f32
    %463 = vector.broadcast %cst_197 : f32 to vector<8x32xf32>
    %464 = arith.addf %463, %462 : vector<8x32xf32>
    %465 = arith.divf %463, %464 : vector<8x32xf32>
    %466 = vector.extract_strided_slice %389 {offsets = [8, 0], sizes = [8, 32], strides = [1, 1]} : vector<64x32xf32> to vector<8x32xf32>
    %467 = arith.mulf %458, %451 : vector<8x32xf32>
    %468 = arith.addf %466, %467 : vector<8x32xf32>
    %469 = math.tanh %468 : vector<8x32xf32>
    %cst_198 = arith.constant 1.000000e+00 : f32
    %470 = vector.broadcast %cst_198 : f32 to vector<8x32xf32>
    %471 = arith.subf %470, %465 : vector<8x32xf32>
    %472 = arith.mulf %471, %469 : vector<8x32xf32>
    %473 = arith.mulf %465, %442 : vector<8x32xf32>
    %474 = arith.addf %472, %473 : vector<8x32xf32>
    %c1_199 = arith.constant 1 : index
    %c0_200 = arith.constant 0 : index
    %c0_201 = arith.constant 0 : index
    %475 = vector.load %arg2[%c1_199, %c0_200, %c0_201] : memref<8x8x32xf32, #tpu.memory_space<vmem>>, vector<1x8x32xf32>
    %476 = vector.shape_cast %475 : vector<1x8x32xf32> to vector<8x32xf32>
    %477 = arith.mulf %476, %474 : vector<8x32xf32>
    %cst_202 = arith.constant 1.000000e+00 : f32
    %478 = vector.broadcast %cst_202 : f32 to vector<8x32xf32>
    %479 = arith.subf %478, %476 : vector<8x32xf32>
    %480 = arith.mulf %479, %442 : vector<8x32xf32>
    %481 = arith.addf %477, %480 : vector<8x32xf32>
    %cst_203 = arith.constant dense<0.000000e+00> : vector<8x32xf32>
    %482 = tpu.matmul %481, %391, %cst_203 {dimension_numbers = #tpu.dot_dimension_numbers<[1], [0], [0], [1], [0, 0, 1, 1], [], []>} : vector<8x32xf32>, vector<32x32xf32>, vector<8x32xf32> -> vector<8x32xf32>
    %483 = vector.broadcast %397 : vector<1x32xf32> to vector<8x32xf32>
    %484 = arith.addf %482, %483 : vector<8x32xf32>
    %cst_204 = arith.constant dense<0.000000e+00> : vector<8x32xf32>
    %485 = tpu.matmul %481, %393, %cst_204 {dimension_numbers = #tpu.dot_dimension_numbers<[1], [0], [0], [1], [0, 0, 1, 1], [], []>} : vector<8x32xf32>, vector<32x32xf32>, vector<8x32xf32> -> vector<8x32xf32>
    %486 = vector.broadcast %399 : vector<1x32xf32> to vector<8x32xf32>
    %487 = arith.addf %485, %486 : vector<8x32xf32>
    %cst_205 = arith.constant dense<0.000000e+00> : vector<8x32xf32>
    %488 = tpu.matmul %481, %395, %cst_205 {dimension_numbers = #tpu.dot_dimension_numbers<[1], [0], [0], [1], [0, 0, 1, 1], [], []>} : vector<8x32xf32>, vector<32x32xf32>, vector<8x32xf32> -> vector<8x32xf32>
    %489 = vector.broadcast %401 : vector<1x32xf32> to vector<8x32xf32>
    %490 = arith.addf %488, %489 : vector<8x32xf32>
    %491 = vector.extract_strided_slice %375 {offsets = [16, 0], sizes = [8, 32], strides = [1, 1]} : vector<64x32xf32> to vector<8x32xf32>
    %492 = arith.addf %491, %484 : vector<8x32xf32>
    %493 = arith.negf %492 : vector<8x32xf32>
    %494 = math.exp %493 : vector<8x32xf32>
    %cst_206 = arith.constant 1.000000e+00 : f32
    %495 = vector.broadcast %cst_206 : f32 to vector<8x32xf32>
    %496 = arith.addf %495, %494 : vector<8x32xf32>
    %497 = arith.divf %495, %496 : vector<8x32xf32>
    %498 = vector.extract_strided_slice %382 {offsets = [16, 0], sizes = [8, 32], strides = [1, 1]} : vector<64x32xf32> to vector<8x32xf32>
    %499 = arith.addf %498, %487 : vector<8x32xf32>
    %500 = arith.negf %499 : vector<8x32xf32>
    %501 = math.exp %500 : vector<8x32xf32>
    %cst_207 = arith.constant 1.000000e+00 : f32
    %502 = vector.broadcast %cst_207 : f32 to vector<8x32xf32>
    %503 = arith.addf %502, %501 : vector<8x32xf32>
    %504 = arith.divf %502, %503 : vector<8x32xf32>
    %505 = vector.extract_strided_slice %389 {offsets = [16, 0], sizes = [8, 32], strides = [1, 1]} : vector<64x32xf32> to vector<8x32xf32>
    %506 = arith.mulf %497, %490 : vector<8x32xf32>
    %507 = arith.addf %505, %506 : vector<8x32xf32>
    %508 = math.tanh %507 : vector<8x32xf32>
    %cst_208 = arith.constant 1.000000e+00 : f32
    %509 = vector.broadcast %cst_208 : f32 to vector<8x32xf32>
    %510 = arith.subf %509, %504 : vector<8x32xf32>
    %511 = arith.mulf %510, %508 : vector<8x32xf32>
    %512 = arith.mulf %504, %481 : vector<8x32xf32>
    %513 = arith.addf %511, %512 : vector<8x32xf32>
    %c2_209 = arith.constant 2 : index
    %c0_210 = arith.constant 0 : index
    %c0_211 = arith.constant 0 : index
    %514 = vector.load %arg2[%c2_209, %c0_210, %c0_211] : memref<8x8x32xf32, #tpu.memory_space<vmem>>, vector<1x8x32xf32>
    %515 = vector.shape_cast %514 : vector<1x8x32xf32> to vector<8x32xf32>
    %516 = arith.mulf %515, %513 : vector<8x32xf32>
    %cst_212 = arith.constant 1.000000e+00 : f32
    %517 = vector.broadcast %cst_212 : f32 to vector<8x32xf32>
    %518 = arith.subf %517, %515 : vector<8x32xf32>
    %519 = arith.mulf %518, %481 : vector<8x32xf32>
    %520 = arith.addf %516, %519 : vector<8x32xf32>
    %cst_213 = arith.constant dense<0.000000e+00> : vector<8x32xf32>
    %521 = tpu.matmul %520, %391, %cst_213 {dimension_numbers = #tpu.dot_dimension_numbers<[1], [0], [0], [1], [0, 0, 1, 1], [], []>} : vector<8x32xf32>, vector<32x32xf32>, vector<8x32xf32> -> vector<8x32xf32>
    %522 = vector.broadcast %397 : vector<1x32xf32> to vector<8x32xf32>
    %523 = arith.addf %521, %522 : vector<8x32xf32>
    %cst_214 = arith.constant dense<0.000000e+00> : vector<8x32xf32>
    %524 = tpu.matmul %520, %393, %cst_214 {dimension_numbers = #tpu.dot_dimension_numbers<[1], [0], [0], [1], [0, 0, 1, 1], [], []>} : vector<8x32xf32>, vector<32x32xf32>, vector<8x32xf32> -> vector<8x32xf32>
    %525 = vector.broadcast %399 : vector<1x32xf32> to vector<8x32xf32>
    %526 = arith.addf %524, %525 : vector<8x32xf32>
    %cst_215 = arith.constant dense<0.000000e+00> : vector<8x32xf32>
    %527 = tpu.matmul %520, %395, %cst_215 {dimension_numbers = #tpu.dot_dimension_numbers<[1], [0], [0], [1], [0, 0, 1, 1], [], []>} : vector<8x32xf32>, vector<32x32xf32>, vector<8x32xf32> -> vector<8x32xf32>
    %528 = vector.broadcast %401 : vector<1x32xf32> to vector<8x32xf32>
    %529 = arith.addf %527, %528 : vector<8x32xf32>
    %530 = vector.extract_strided_slice %375 {offsets = [24, 0], sizes = [8, 32], strides = [1, 1]} : vector<64x32xf32> to vector<8x32xf32>
    %531 = arith.addf %530, %523 : vector<8x32xf32>
    %532 = arith.negf %531 : vector<8x32xf32>
    %533 = math.exp %532 : vector<8x32xf32>
    %cst_216 = arith.constant 1.000000e+00 : f32
    %534 = vector.broadcast %cst_216 : f32 to vector<8x32xf32>
    %535 = arith.addf %534, %533 : vector<8x32xf32>
    %536 = arith.divf %534, %535 : vector<8x32xf32>
    %537 = vector.extract_strided_slice %382 {offsets = [24, 0], sizes = [8, 32], strides = [1, 1]} : vector<64x32xf32> to vector<8x32xf32>
    %538 = arith.addf %537, %526 : vector<8x32xf32>
    %539 = arith.negf %538 : vector<8x32xf32>
    %540 = math.exp %539 : vector<8x32xf32>
    %cst_217 = arith.constant 1.000000e+00 : f32
    %541 = vector.broadcast %cst_217 : f32 to vector<8x32xf32>
    %542 = arith.addf %541, %540 : vector<8x32xf32>
    %543 = arith.divf %541, %542 : vector<8x32xf32>
    %544 = vector.extract_strided_slice %389 {offsets = [24, 0], sizes = [8, 32], strides = [1, 1]} : vector<64x32xf32> to vector<8x32xf32>
    %545 = arith.mulf %536, %529 : vector<8x32xf32>
    %546 = arith.addf %544, %545 : vector<8x32xf32>
    %547 = math.tanh %546 : vector<8x32xf32>
    %cst_218 = arith.constant 1.000000e+00 : f32
    %548 = vector.broadcast %cst_218 : f32 to vector<8x32xf32>
    %549 = arith.subf %548, %543 : vector<8x32xf32>
    %550 = arith.mulf %549, %547 : vector<8x32xf32>
    %551 = arith.mulf %543, %520 : vector<8x32xf32>
    %552 = arith.addf %550, %551 : vector<8x32xf32>
    %c3_219 = arith.constant 3 : index
    %c0_220 = arith.constant 0 : index
    %c0_221 = arith.constant 0 : index
    %553 = vector.load %arg2[%c3_219, %c0_220, %c0_221] : memref<8x8x32xf32, #tpu.memory_space<vmem>>, vector<1x8x32xf32>
    %554 = vector.shape_cast %553 : vector<1x8x32xf32> to vector<8x32xf32>
    %555 = arith.mulf %554, %552 : vector<8x32xf32>
    %cst_222 = arith.constant 1.000000e+00 : f32
    %556 = vector.broadcast %cst_222 : f32 to vector<8x32xf32>
    %557 = arith.subf %556, %554 : vector<8x32xf32>
    %558 = arith.mulf %557, %520 : vector<8x32xf32>
    %559 = arith.addf %555, %558 : vector<8x32xf32>
    %cst_223 = arith.constant dense<0.000000e+00> : vector<8x32xf32>
    %560 = tpu.matmul %559, %391, %cst_223 {dimension_numbers = #tpu.dot_dimension_numbers<[1], [0], [0], [1], [0, 0, 1, 1], [], []>} : vector<8x32xf32>, vector<32x32xf32>, vector<8x32xf32> -> vector<8x32xf32>
    %561 = vector.broadcast %397 : vector<1x32xf32> to vector<8x32xf32>
    %562 = arith.addf %560, %561 : vector<8x32xf32>
    %cst_224 = arith.constant dense<0.000000e+00> : vector<8x32xf32>
    %563 = tpu.matmul %559, %393, %cst_224 {dimension_numbers = #tpu.dot_dimension_numbers<[1], [0], [0], [1], [0, 0, 1, 1], [], []>} : vector<8x32xf32>, vector<32x32xf32>, vector<8x32xf32> -> vector<8x32xf32>
    %564 = vector.broadcast %399 : vector<1x32xf32> to vector<8x32xf32>
    %565 = arith.addf %563, %564 : vector<8x32xf32>
    %cst_225 = arith.constant dense<0.000000e+00> : vector<8x32xf32>
    %566 = tpu.matmul %559, %395, %cst_225 {dimension_numbers = #tpu.dot_dimension_numbers<[1], [0], [0], [1], [0, 0, 1, 1], [], []>} : vector<8x32xf32>, vector<32x32xf32>, vector<8x32xf32> -> vector<8x32xf32>
    %567 = vector.broadcast %401 : vector<1x32xf32> to vector<8x32xf32>
    %568 = arith.addf %566, %567 : vector<8x32xf32>
    %569 = vector.extract_strided_slice %375 {offsets = [32, 0], sizes = [8, 32], strides = [1, 1]} : vector<64x32xf32> to vector<8x32xf32>
    %570 = arith.addf %569, %562 : vector<8x32xf32>
    %571 = arith.negf %570 : vector<8x32xf32>
    %572 = math.exp %571 : vector<8x32xf32>
    %cst_226 = arith.constant 1.000000e+00 : f32
    %573 = vector.broadcast %cst_226 : f32 to vector<8x32xf32>
    %574 = arith.addf %573, %572 : vector<8x32xf32>
    %575 = arith.divf %573, %574 : vector<8x32xf32>
    %576 = vector.extract_strided_slice %382 {offsets = [32, 0], sizes = [8, 32], strides = [1, 1]} : vector<64x32xf32> to vector<8x32xf32>
    %577 = arith.addf %576, %565 : vector<8x32xf32>
    %578 = arith.negf %577 : vector<8x32xf32>
    %579 = math.exp %578 : vector<8x32xf32>
    %cst_227 = arith.constant 1.000000e+00 : f32
    %580 = vector.broadcast %cst_227 : f32 to vector<8x32xf32>
    %581 = arith.addf %580, %579 : vector<8x32xf32>
    %582 = arith.divf %580, %581 : vector<8x32xf32>
    %583 = vector.extract_strided_slice %389 {offsets = [32, 0], sizes = [8, 32], strides = [1, 1]} : vector<64x32xf32> to vector<8x32xf32>
    %584 = arith.mulf %575, %568 : vector<8x32xf32>
    %585 = arith.addf %583, %584 : vector<8x32xf32>
    %586 = math.tanh %585 : vector<8x32xf32>
    %cst_228 = arith.constant 1.000000e+00 : f32
    %587 = vector.broadcast %cst_228 : f32 to vector<8x32xf32>
    %588 = arith.subf %587, %582 : vector<8x32xf32>
    %589 = arith.mulf %588, %586 : vector<8x32xf32>
    %590 = arith.mulf %582, %559 : vector<8x32xf32>
    %591 = arith.addf %589, %590 : vector<8x32xf32>
    %c4_229 = arith.constant 4 : index
    %c0_230 = arith.constant 0 : index
    %c0_231 = arith.constant 0 : index
    %592 = vector.load %arg2[%c4_229, %c0_230, %c0_231] : memref<8x8x32xf32, #tpu.memory_space<vmem>>, vector<1x8x32xf32>
    %593 = vector.shape_cast %592 : vector<1x8x32xf32> to vector<8x32xf32>
    %594 = arith.mulf %593, %591 : vector<8x32xf32>
    %cst_232 = arith.constant 1.000000e+00 : f32
    %595 = vector.broadcast %cst_232 : f32 to vector<8x32xf32>
    %596 = arith.subf %595, %593 : vector<8x32xf32>
    %597 = arith.mulf %596, %559 : vector<8x32xf32>
    %598 = arith.addf %594, %597 : vector<8x32xf32>
    %cst_233 = arith.constant dense<0.000000e+00> : vector<8x32xf32>
    %599 = tpu.matmul %598, %391, %cst_233 {dimension_numbers = #tpu.dot_dimension_numbers<[1], [0], [0], [1], [0, 0, 1, 1], [], []>} : vector<8x32xf32>, vector<32x32xf32>, vector<8x32xf32> -> vector<8x32xf32>
    %600 = vector.broadcast %397 : vector<1x32xf32> to vector<8x32xf32>
    %601 = arith.addf %599, %600 : vector<8x32xf32>
    %cst_234 = arith.constant dense<0.000000e+00> : vector<8x32xf32>
    %602 = tpu.matmul %598, %393, %cst_234 {dimension_numbers = #tpu.dot_dimension_numbers<[1], [0], [0], [1], [0, 0, 1, 1], [], []>} : vector<8x32xf32>, vector<32x32xf32>, vector<8x32xf32> -> vector<8x32xf32>
    %603 = vector.broadcast %399 : vector<1x32xf32> to vector<8x32xf32>
    %604 = arith.addf %602, %603 : vector<8x32xf32>
    %cst_235 = arith.constant dense<0.000000e+00> : vector<8x32xf32>
    %605 = tpu.matmul %598, %395, %cst_235 {dimension_numbers = #tpu.dot_dimension_numbers<[1], [0], [0], [1], [0, 0, 1, 1], [], []>} : vector<8x32xf32>, vector<32x32xf32>, vector<8x32xf32> -> vector<8x32xf32>
    %606 = vector.broadcast %401 : vector<1x32xf32> to vector<8x32xf32>
    %607 = arith.addf %605, %606 : vector<8x32xf32>
    %608 = vector.extract_strided_slice %375 {offsets = [40, 0], sizes = [8, 32], strides = [1, 1]} : vector<64x32xf32> to vector<8x32xf32>
    %609 = arith.addf %608, %601 : vector<8x32xf32>
    %610 = arith.negf %609 : vector<8x32xf32>
    %611 = math.exp %610 : vector<8x32xf32>
    %cst_236 = arith.constant 1.000000e+00 : f32
    %612 = vector.broadcast %cst_236 : f32 to vector<8x32xf32>
    %613 = arith.addf %612, %611 : vector<8x32xf32>
    %614 = arith.divf %612, %613 : vector<8x32xf32>
    %615 = vector.extract_strided_slice %382 {offsets = [40, 0], sizes = [8, 32], strides = [1, 1]} : vector<64x32xf32> to vector<8x32xf32>
    %616 = arith.addf %615, %604 : vector<8x32xf32>
    %617 = arith.negf %616 : vector<8x32xf32>
    %618 = math.exp %617 : vector<8x32xf32>
    %cst_237 = arith.constant 1.000000e+00 : f32
    %619 = vector.broadcast %cst_237 : f32 to vector<8x32xf32>
    %620 = arith.addf %619, %618 : vector<8x32xf32>
    %621 = arith.divf %619, %620 : vector<8x32xf32>
    %622 = vector.extract_strided_slice %389 {offsets = [40, 0], sizes = [8, 32], strides = [1, 1]} : vector<64x32xf32> to vector<8x32xf32>
    %623 = arith.mulf %614, %607 : vector<8x32xf32>
    %624 = arith.addf %622, %623 : vector<8x32xf32>
    %625 = math.tanh %624 : vector<8x32xf32>
    %cst_238 = arith.constant 1.000000e+00 : f32
    %626 = vector.broadcast %cst_238 : f32 to vector<8x32xf32>
    %627 = arith.subf %626, %621 : vector<8x32xf32>
    %628 = arith.mulf %627, %625 : vector<8x32xf32>
    %629 = arith.mulf %621, %598 : vector<8x32xf32>
    %630 = arith.addf %628, %629 : vector<8x32xf32>
    %c5_239 = arith.constant 5 : index
    %c0_240 = arith.constant 0 : index
    %c0_241 = arith.constant 0 : index
    %631 = vector.load %arg2[%c5_239, %c0_240, %c0_241] : memref<8x8x32xf32, #tpu.memory_space<vmem>>, vector<1x8x32xf32>
    %632 = vector.shape_cast %631 : vector<1x8x32xf32> to vector<8x32xf32>
    %633 = arith.mulf %632, %630 : vector<8x32xf32>
    %cst_242 = arith.constant 1.000000e+00 : f32
    %634 = vector.broadcast %cst_242 : f32 to vector<8x32xf32>
    %635 = arith.subf %634, %632 : vector<8x32xf32>
    %636 = arith.mulf %635, %598 : vector<8x32xf32>
    %637 = arith.addf %633, %636 : vector<8x32xf32>
    %cst_243 = arith.constant dense<0.000000e+00> : vector<8x32xf32>
    %638 = tpu.matmul %637, %391, %cst_243 {dimension_numbers = #tpu.dot_dimension_numbers<[1], [0], [0], [1], [0, 0, 1, 1], [], []>} : vector<8x32xf32>, vector<32x32xf32>, vector<8x32xf32> -> vector<8x32xf32>
    %639 = vector.broadcast %397 : vector<1x32xf32> to vector<8x32xf32>
    %640 = arith.addf %638, %639 : vector<8x32xf32>
    %cst_244 = arith.constant dense<0.000000e+00> : vector<8x32xf32>
    %641 = tpu.matmul %637, %393, %cst_244 {dimension_numbers = #tpu.dot_dimension_numbers<[1], [0], [0], [1], [0, 0, 1, 1], [], []>} : vector<8x32xf32>, vector<32x32xf32>, vector<8x32xf32> -> vector<8x32xf32>
    %642 = vector.broadcast %399 : vector<1x32xf32> to vector<8x32xf32>
    %643 = arith.addf %641, %642 : vector<8x32xf32>
    %cst_245 = arith.constant dense<0.000000e+00> : vector<8x32xf32>
    %644 = tpu.matmul %637, %395, %cst_245 {dimension_numbers = #tpu.dot_dimension_numbers<[1], [0], [0], [1], [0, 0, 1, 1], [], []>} : vector<8x32xf32>, vector<32x32xf32>, vector<8x32xf32> -> vector<8x32xf32>
    %645 = vector.broadcast %401 : vector<1x32xf32> to vector<8x32xf32>
    %646 = arith.addf %644, %645 : vector<8x32xf32>
    %647 = vector.extract_strided_slice %375 {offsets = [48, 0], sizes = [8, 32], strides = [1, 1]} : vector<64x32xf32> to vector<8x32xf32>
    %648 = arith.addf %647, %640 : vector<8x32xf32>
    %649 = arith.negf %648 : vector<8x32xf32>
    %650 = math.exp %649 : vector<8x32xf32>
    %cst_246 = arith.constant 1.000000e+00 : f32
    %651 = vector.broadcast %cst_246 : f32 to vector<8x32xf32>
    %652 = arith.addf %651, %650 : vector<8x32xf32>
    %653 = arith.divf %651, %652 : vector<8x32xf32>
    %654 = vector.extract_strided_slice %382 {offsets = [48, 0], sizes = [8, 32], strides = [1, 1]} : vector<64x32xf32> to vector<8x32xf32>
    %655 = arith.addf %654, %643 : vector<8x32xf32>
    %656 = arith.negf %655 : vector<8x32xf32>
    %657 = math.exp %656 : vector<8x32xf32>
    %cst_247 = arith.constant 1.000000e+00 : f32
    %658 = vector.broadcast %cst_247 : f32 to vector<8x32xf32>
    %659 = arith.addf %658, %657 : vector<8x32xf32>
    %660 = arith.divf %658, %659 : vector<8x32xf32>
    %661 = vector.extract_strided_slice %389 {offsets = [48, 0], sizes = [8, 32], strides = [1, 1]} : vector<64x32xf32> to vector<8x32xf32>
    %662 = arith.mulf %653, %646 : vector<8x32xf32>
    %663 = arith.addf %661, %662 : vector<8x32xf32>
    %664 = math.tanh %663 : vector<8x32xf32>
    %cst_248 = arith.constant 1.000000e+00 : f32
    %665 = vector.broadcast %cst_248 : f32 to vector<8x32xf32>
    %666 = arith.subf %665, %660 : vector<8x32xf32>
    %667 = arith.mulf %666, %664 : vector<8x32xf32>
    %668 = arith.mulf %660, %637 : vector<8x32xf32>
    %669 = arith.addf %667, %668 : vector<8x32xf32>
    %c6_249 = arith.constant 6 : index
    %c0_250 = arith.constant 0 : index
    %c0_251 = arith.constant 0 : index
    %670 = vector.load %arg2[%c6_249, %c0_250, %c0_251] : memref<8x8x32xf32, #tpu.memory_space<vmem>>, vector<1x8x32xf32>
    %671 = vector.shape_cast %670 : vector<1x8x32xf32> to vector<8x32xf32>
    %672 = arith.mulf %671, %669 : vector<8x32xf32>
    %cst_252 = arith.constant 1.000000e+00 : f32
    %673 = vector.broadcast %cst_252 : f32 to vector<8x32xf32>
    %674 = arith.subf %673, %671 : vector<8x32xf32>
    %675 = arith.mulf %674, %637 : vector<8x32xf32>
    %676 = arith.addf %672, %675 : vector<8x32xf32>
    %cst_253 = arith.constant dense<0.000000e+00> : vector<8x32xf32>
    %677 = tpu.matmul %676, %391, %cst_253 {dimension_numbers = #tpu.dot_dimension_numbers<[1], [0], [0], [1], [0, 0, 1, 1], [], []>} : vector<8x32xf32>, vector<32x32xf32>, vector<8x32xf32> -> vector<8x32xf32>
    %678 = vector.broadcast %397 : vector<1x32xf32> to vector<8x32xf32>
    %679 = arith.addf %677, %678 : vector<8x32xf32>
    %cst_254 = arith.constant dense<0.000000e+00> : vector<8x32xf32>
    %680 = tpu.matmul %676, %393, %cst_254 {dimension_numbers = #tpu.dot_dimension_numbers<[1], [0], [0], [1], [0, 0, 1, 1], [], []>} : vector<8x32xf32>, vector<32x32xf32>, vector<8x32xf32> -> vector<8x32xf32>
    %681 = vector.broadcast %399 : vector<1x32xf32> to vector<8x32xf32>
    %682 = arith.addf %680, %681 : vector<8x32xf32>
    %cst_255 = arith.constant dense<0.000000e+00> : vector<8x32xf32>
    %683 = tpu.matmul %676, %395, %cst_255 {dimension_numbers = #tpu.dot_dimension_numbers<[1], [0], [0], [1], [0, 0, 1, 1], [], []>} : vector<8x32xf32>, vector<32x32xf32>, vector<8x32xf32> -> vector<8x32xf32>
    %684 = vector.broadcast %401 : vector<1x32xf32> to vector<8x32xf32>
    %685 = arith.addf %683, %684 : vector<8x32xf32>
    %686 = vector.extract_strided_slice %375 {offsets = [56, 0], sizes = [8, 32], strides = [1, 1]} : vector<64x32xf32> to vector<8x32xf32>
    %687 = arith.addf %686, %679 : vector<8x32xf32>
    %688 = arith.negf %687 : vector<8x32xf32>
    %689 = math.exp %688 : vector<8x32xf32>
    %cst_256 = arith.constant 1.000000e+00 : f32
    %690 = vector.broadcast %cst_256 : f32 to vector<8x32xf32>
    %691 = arith.addf %690, %689 : vector<8x32xf32>
    %692 = arith.divf %690, %691 : vector<8x32xf32>
    %693 = vector.extract_strided_slice %382 {offsets = [56, 0], sizes = [8, 32], strides = [1, 1]} : vector<64x32xf32> to vector<8x32xf32>
    %694 = arith.addf %693, %682 : vector<8x32xf32>
    %695 = arith.negf %694 : vector<8x32xf32>
    %696 = math.exp %695 : vector<8x32xf32>
    %cst_257 = arith.constant 1.000000e+00 : f32
    %697 = vector.broadcast %cst_257 : f32 to vector<8x32xf32>
    %698 = arith.addf %697, %696 : vector<8x32xf32>
    %699 = arith.divf %697, %698 : vector<8x32xf32>
    %700 = vector.extract_strided_slice %389 {offsets = [56, 0], sizes = [8, 32], strides = [1, 1]} : vector<64x32xf32> to vector<8x32xf32>
    %701 = arith.mulf %692, %685 : vector<8x32xf32>
    %702 = arith.addf %700, %701 : vector<8x32xf32>
    %703 = math.tanh %702 : vector<8x32xf32>
    %cst_258 = arith.constant 1.000000e+00 : f32
    %704 = vector.broadcast %cst_258 : f32 to vector<8x32xf32>
    %705 = arith.subf %704, %699 : vector<8x32xf32>
    %706 = arith.mulf %705, %703 : vector<8x32xf32>
    %707 = arith.mulf %699, %676 : vector<8x32xf32>
    %708 = arith.addf %706, %707 : vector<8x32xf32>
    %c7_259 = arith.constant 7 : index
    %c0_260 = arith.constant 0 : index
    %c0_261 = arith.constant 0 : index
    %709 = vector.load %arg2[%c7_259, %c0_260, %c0_261] : memref<8x8x32xf32, #tpu.memory_space<vmem>>, vector<1x8x32xf32>
    %710 = vector.shape_cast %709 : vector<1x8x32xf32> to vector<8x32xf32>
    %711 = arith.mulf %710, %708 : vector<8x32xf32>
    %cst_262 = arith.constant 1.000000e+00 : f32
    %712 = vector.broadcast %cst_262 : f32 to vector<8x32xf32>
    %713 = arith.subf %712, %710 : vector<8x32xf32>
    %714 = arith.mulf %713, %676 : vector<8x32xf32>
    %715 = arith.addf %711, %714 : vector<8x32xf32>
    %716 = tpu.concatenate %442, %481, %520, %559, %598, %637, %676, %715 in 0 : vector<8x32xf32>, vector<8x32xf32>, vector<8x32xf32>, vector<8x32xf32>, vector<8x32xf32>, vector<8x32xf32>, vector<8x32xf32>, vector<8x32xf32> -> vector<64x32xf32>
    %c0_263 = arith.constant 0 : index
    %c0_264 = arith.constant 0 : index
    %717 = vector.load %arg6[%c0_263, %c0_264] : memref<32x128xf32, #tpu.memory_space<vmem>>, vector<32x128xf32>
    %cst_265 = arith.constant dense<0.000000e+00> : vector<64x128xf32>
    %718 = tpu.matmul %716, %717, %cst_265 {dimension_numbers = #tpu.dot_dimension_numbers<[1], [0], [0], [1], [0, 0, 1, 1], [], []>} : vector<64x32xf32>, vector<32x128xf32>, vector<64x128xf32> -> vector<64x128xf32>
    %c0_266 = arith.constant 0 : index
    %c0_267 = arith.constant 0 : index
    %719 = vector.load %arg7[%c0_266, %c0_267] : memref<1x128xf32, #tpu.memory_space<vmem>>, vector<1x128xf32>
    %720 = vector.broadcast %719 : vector<1x128xf32> to vector<64x128xf32>
    %721 = arith.addf %718, %720 : vector<64x128xf32>
    %c0_268 = arith.constant 0 : index
    %c0_269 = arith.constant 0 : index
    %722 = vector.load %arg16[%c0_268, %c0_269] : memref<64x128xf32, #tpu.memory_space<vmem>>, vector<64x128xf32>
    tpu.vector_store %arg16[%c0_268, %c0_269], %721 {strides = array<i32>} : memref<64x128xf32, #tpu.memory_space<vmem>>, vector<64x128xf32>,
    return
  }
}

</mosaic_0001>

<bundles_post_ra>
// kernel: tpu_custom_call.1
= control target key start
LH: loop header
LB: loop body
LE: loop exit
PB: predicated region body
PF: predicated region fallthrough
CT: control target
= control target key end

     0   :  { %s7964_s0 = inlined_call_operand.vmem [shape: f32[8,80], index: 0, kind: input, shape index: {}]   ;;  %s7965_s1 = inlined_call_operand.hbm [shape: f32[7,8,32], index: 1, kind: input, shape index: {}]   ;;  %s7966_s2 = inlined_call_operand.hbm [shape: f32[8,8,32], index: 2, kind: input, shape index: {}]   ;;  %s7967_s3 = inlined_call_operand.vmem [shape: f32[80,32], index: 3, kind: input, shape index: {}]   ;;  %s7968_s4 = inlined_call_operand.hbm [shape: f32[1,32], index: 4, kind: input, shape index: {}]   ;;  %s7969_s5 = inlined_call_operand.vmem [shape: f32[2,8,32], index: 5, kind: input, shape index: {}]   ;;  %s7970_s6 = inlined_call_operand.hbm [shape: f32[32,128], index: 6, kind: input, shape index: {}]   ;;  %s7971_s7 = inlined_call_operand.hbm [shape: f32[1,128], index: 7, kind: input, shape index: {}]   ;;  %s7972_s8 = inlined_call_operand.vmem [shape: f32[3,32,32], index: 8, kind: input, shape index: {}]   ;;  %s7973_s9 = inlined_call_operand.vmem [shape: f32[3,1,32], index: 9, kind: input, shape index: {}]   ;;  %s7974_s10 = inlined_call_operand.hbm [shape: f32[3,32,32], index: 10, kind: input, shape index: {}]   ;;  %s7975_s11 = inlined_call_operand.vmem [shape: f32[3,1,32], index: 11, kind: input, shape index: {}]   ;;  %s7976_s12 = inlined_call_operand.hbm [shape: f32[3,32,32], index: 12, kind: input, shape index: {}]   ;;  %s7977_s13 = inlined_call_operand.vmem [shape: f32[3,1,32], index: 13, kind: input, shape index: {}]   ;;  %s7978_s14 = inlined_call_operand.hbm [shape: f32[3,32,32], index: 14, kind: input, shape index: {}]   ;;  %s7979_s15 = inlined_call_operand.vmem [shape: f32[3,1,32], index: 15, kind: input, shape index: {}]   ;;  %s7980_s16 = inlined_call_operand.hbm [shape: f32[64,128], index: 16, kind: output, shape index: {}]  }
   0x1   :  { %7991 = sst [smem:[#allocation25_spill]] %s7964_s0 }
   0x2   :  { %21 = vsyncpa [#allocation3], 0 }
   0x3   :  { %22 = vsyncpa [#allocation6], 0 }
   0x4   :  { %23 = vsyncpa [#allocation9], 0 }
   0x5   :  { %24 = vsyncpa [#allocation12], 0 }
   0x6   :  { %25 = vsyncpa [#allocation15], 0 }
   0x7   :  { %26 = vsyncpa [#allocation4], 0  ;;  %s6628_s21 = smov [#allocation5]   ;;  %s6629_s23 = smov [#allocation8]  }
   0x8   :  { %s46_s22 = sshll.u32 %s6628_s21, 4  ;;  %s72_s24 = sshll.u32 %s6629_s23, 4  ;;  %s47_s22 = int_to_ptr.vmem [resolvable:$true] %s46_s22  ;;  %s73_s24 = int_to_ptr.vmem [resolvable:$true] %s72_s24 }
   0x9   :  { %s6444_s25 = scalar_lea.vmem %s47_s22, 1024  ;;  %p6449_p1 = scmp.lt.s32.totalorder %s47_s22, %s47_s22 }
   0xa   :  { %p6445_p0 = scmp.ne.s32.totalorder %s47_s22, %s6444_s25  ;;  %p6450_p2 = scmp.lt.s32.totalorder %s6444_s25, %s6444_s25 }
   0xc   :  { %p6451_p3 = por %p6450_p2, %p6449_p1 }
   0xe   :  { %p6452_p4 = pnand %p6451_p3, %p6445_p0 }
  0x10   :  { %6455 = shalt.err (!%p6452_p4)
}
  0x11   :  { %s6630_s26 = smov 128   ;;  %s6631_s27 = smov 8  }
  0x12   :  { %52 = dma.hbm_to_vmem [thread:$0]  %s7966_s2, 1024, %s47_s22, [#allocation6], %s6630_s26, %s6630_s26, %s6631_s27  }
  0x13   :  { %s6464_s30 = scalar_lea.vmem %s73_s24, 512  ;;  %p6469_p6 = scmp.lt.s32.totalorder %s73_s24, %s73_s24 }
  0x14   :  { %p6465_p5 = scmp.ne.s32.totalorder %s73_s24, %s6464_s30  ;;  %p6470_p7 = scmp.lt.s32.totalorder %s6464_s30, %s6464_s30 }
  0x16   :  { %p6471_p8 = por %p6470_p7, %p6469_p6 }
  0x18   :  { %p6472_p9 = pnand %p6471_p8, %p6465_p5 }
  0x1a   :  { %6475 = shalt.err (!%p6472_p9)
}
  0x1b   :  { %78 = dma.hbm_to_vmem [thread:$0]  %s7970_s6, 512, %s73_s24, [#allocation9], %s6630_s26, %s6630_s26, %s6631_s27  }
  0x1c   :  { %s6632_s18 = smov [#allocation11]   ;;  %s6633_s20 = smov [#allocation2]  }
  0x1d   :  { %s98_s19 = sshll.u32 %s6632_s18, 4  ;;  %s34_s21 = sshll.u32 %s6633_s20, 4  ;;  %s99_s19 = int_to_ptr.vmem [resolvable:$true] %s98_s19  ;;  %s35_s21 = int_to_ptr.vmem [resolvable:$true] %s34_s21 }
  0x1e   :  { %s6484_s2 = scalar_lea.vmem %s99_s19, 1536  ;;  %p6489_p11 = scmp.lt.s32.totalorder %s99_s19, %s99_s19 }
  0x1f   :  { %p6485_p10 = scmp.ne.s32.totalorder %s99_s19, %s6484_s2  ;;  %p6490_p12 = scmp.lt.s32.totalorder %s6484_s2, %s6484_s2 }
  0x21   :  { %p6491_p13 = por %p6490_p12, %p6489_p11 }
  0x23   :  { %p6492_p0 = pnand %p6491_p13, %p6485_p10 }
  0x25   :  { %6495 = shalt.err (!%p6492_p0)
}
  0x26   :  { %104 = dma.hbm_to_vmem [thread:$0]  %s7974_s10, 1536, %s99_s19, [#allocation12], %s6630_s26, %s6630_s26, %s6631_s27  }
  0x27   :  { %s6504_s6 = scalar_lea.vmem %s35_s21, 896  ;;  %p6509_p2 = scmp.lt.s32.totalorder %s35_s21, %s35_s21 }
  0x28   :  { %p6505_p1 = scmp.ne.s32.totalorder %s35_s21, %s6504_s6  ;;  %p6510_p3 = scmp.lt.s32.totalorder %s6504_s6, %s6504_s6 }
  0x2a   :  { %p6511_p4 = por %p6510_p3, %p6509_p2 }
  0x2c   :  { %p6512_p5 = pnand %p6511_p4, %p6505_p1 }
  0x2e   :  { %6515 = shalt.err (!%p6512_p5)
}
  0x2f   :  { %40 = dma.hbm_to_vmem [thread:$0]  %s7965_s1, 896, %s35_s21, [#allocation3], %s6630_s26, %s6630_s26, %s6631_s27  }
  0x30   :  { %s6634_s28 = smov [#allocation7]   ;;  %s6635_s30 = smov [#allocation10]  }
  0x31   :  { %s61_s29 = sshll.u32 %s6634_s28, 4  ;;  %s85_s0 = sshll.u32 %s6635_s30, 4  ;;  %s62_s29 = int_to_ptr.vmem [resolvable:$true] %s61_s29  ;;  %s86_s0 = int_to_ptr.vmem [resolvable:$true] %s85_s0 }
  0x32   :  { %s6524_s10 = scalar_lea.vmem %s62_s29, 16  ;;  %s6528_s17 = scalar_lea.vmem %s62_s29, 32 }
  0x33   :  { %p6525_p6 = scmp.ne.s32.totalorder %s62_s29, %s6524_s10  ;;  %p6529_p7 = scmp.lt.s32.totalorder %s62_s29, %s62_s29 }
  0x34   :  { %p6530_p8 = scmp.lt.s32.totalorder %s6528_s17, %s6524_s10 }
  0x36   :  { %p6531_p9 = por %p6530_p8, %p6529_p7 }
  0x38   :  { %p6532_p10 = pnand %p6531_p9, %p6525_p6 }
  0x3a   :  { %6535 = shalt.err (!%p6532_p10)
}
  0x3b   :  { %64 = dma.hbm_to_vmem [thread:$0]  %s7968_s4, 16, %s62_s29, [#allocation6]  }
  0x3c   :  { %s6544_s20 = scalar_lea.vmem %s86_s0, 16  ;;  %s6548_s1 = scalar_lea.vmem %s86_s0, 32 }
  0x3d   :  { %p6545_p11 = scmp.ne.s32.totalorder %s86_s0, %s6544_s20  ;;  %p6549_p12 = scmp.lt.s32.totalorder %s86_s0, %s86_s0 }
  0x3e   :  { %p6550_p13 = scmp.lt.s32.totalorder %s6548_s1, %s6544_s20 }
  0x40   :  { %p6551_p0 = por %p6550_p13, %p6549_p12 }
  0x42   :  { %p6552_p1 = pnand %p6551_p0, %p6545_p11 }
  0x44   :  { %6555 = shalt.err (!%p6552_p1)
}
  0x45   :  { %88 = dma.hbm_to_vmem [thread:$0]  %s7971_s7, 16, %s86_s0, [#allocation9]  }
  0x46   :  { %s6636_s22 = smov [#allocation13]   ;;  %s6637_s6 = smov [#allocation14]  }
  0x47   :  { %s112_s23 = sshll.u32 %s6636_s22, 4  ;;  %s126_s24 = sshll.u32 %s6637_s6, 4  ;;  %s113_s23 = int_to_ptr.vmem [resolvable:$true] %s112_s23  ;;  %s127_s24 = int_to_ptr.vmem [resolvable:$true] %s126_s24 }
  0x48   :  { %s6564_s25 = scalar_lea.vmem %s113_s23, 1536  ;;  %p6569_p3 = scmp.lt.s32.totalorder %s113_s23, %s113_s23 }
  0x49   :  { %p6565_p2 = scmp.ne.s32.totalorder %s113_s23, %s6564_s25  ;;  %p6570_p4 = scmp.lt.s32.totalorder %s6564_s25, %s6564_s25 }
  0x4b   :  { %p6571_p5 = por %p6570_p4, %p6569_p3 }
  0x4d   :  { %p6572_p6 = pnand %p6571_p5, %p6565_p2 }
  0x4f   :  { %6575 = shalt.err (!%p6572_p6)
}
  0x50   :  { %118 = dma.hbm_to_vmem [thread:$0]  %s7976_s12, 1536, %s113_s23, [#allocation12], %s6630_s26, %s6630_s26, %s6631_s27  }
  0x51   :  { %s6584_s7 = scalar_lea.vmem %s127_s24, 1536  ;;  %p6589_p8 = scmp.lt.s32.totalorder %s127_s24, %s127_s24 }
  0x52   :  { %p6585_p7 = scmp.ne.s32.totalorder %s127_s24, %s6584_s7  ;;  %p6590_p9 = scmp.lt.s32.totalorder %s6584_s7, %s6584_s7 }
  0x54   :  { %p6591_p10 = por %p6590_p9, %p6589_p8 }
  0x56   :  { %p6592_p11 = pnand %p6591_p10, %p6585_p7 }
  0x58   :  { %6595 = shalt.err (!%p6592_p11)
}
  0x59   :  { %132 = dma.hbm_to_vmem [thread:$0]  %s7978_s14, 1536, %s127_s24, [#allocation15], %s6630_s26, %s6630_s26, %s6631_s27  }
  0x5a   :  { %6616 = dma.done.wait [#allocation3], 896  }
  0x5b   :  { %6617 = vsyncadd [#allocation3], 4294966400 }
  0x5c   :  { %6618 = dma.done.wait [#allocation6], 1040  }
  0x5d   :  { %6619 = vsyncadd [#allocation6], 4294966256 }
  0x5e   :  { %6620 = dma.done.wait [#allocation9], 528  }
  0x5f   :  { %6621 = vsyncadd [#allocation9], 4294966768 }
  0x60   :  { %6622 = dma.done.wait [#allocation12], 3072  }
  0x61   :  { %6623 = vsyncadd [#allocation12], 4294964224 }
  0x62   :  { %6624 = dma.done.wait [#allocation15], 1536  }
  0x63   :  { %6625 = vsyncadd [#allocation15], 4294965760  ;;  %v7988_v0 = vmov 0.0   ;;  %vm6639_vm0 = vmmov 0   ;;  %v169_v1 = vld [vmem:[%s7967_s3 + $0x48] sm:$0xff]  ;;  %v168_v2 = vld [vmem:[%s7967_s3 + $0x40] sm:$0xff] }
  0x64   :  { %5539 = vmatprep.subr.mxu0 %v7988_v0  ;;  %5559 = vmatprep.mubr.msk.f32.mxu0 %vm6639_vm0, %v7988_v0  ;;  %v167_v3 = vld [vmem:[%s7967_s3 + $0x38] sm:$0xff]  ;;  %v166_v5 = vld [vmem:[%s7967_s3 + $0x30] sm:$0xff]  ;;  %v265_v7 = vld [vmem:[%s7972_s8 + $0x8] sm:$0xff]  ;;  %vm275_vm1 = vcmask 261120   ;;  %s7992_s6 = sld [smem:[#allocation25_spill]]  ;;  %vm177_vm2 = vcmask 654336  }
  0x65   :  { %5540 = vmatpush3.msra.mxu0 %v169_v1  ;;  %v267_v4 = vld [vmem:[%s7972_s8 + $0x18] sm:$0xff]  ;;  %v266_v6 = vld [vmem:[%s7972_s8 + $0x10] sm:$0xff]  ;;  %v165_v8 = vld [vmem:[%s7967_s3 + $0x28] sm:$0xff] }
  0x66   :  { %5541 = vmatprep.subr.mxu0 %v7988_v0  ;;  %6230 = vmatprep.subr.mxu1 %v267_v4  ;;  %v264_v9 = vld [vmem:[%s7972_s8] sm:$0xff]  ;;  %v6805_v11 = vld [vmem:[#allocation2 + $0x18] sm:$0xff]  ;;  %v162_v15 = vld [vmem:[%s7967_s3 + $0x10] sm:$0xff] }
  0x67   :  { %5542 = vmatpush3.msra.mxu0 %v168_v2  ;;  %6234 = vmatpush3.msra.mxu1 %v267_v4  ;;  %v164_v10 = vld [vmem:[%s7967_s3 + $0x20] sm:$0xff]  ;;  %v163_v12 = vld [vmem:[%s7967_s3 + $0x18] sm:$0xff]  ;;  %v6824_v16 = vld [vmem:[#allocation2 + $0x28] sm:$0xff] }
  0x68   :  { %5543 = vmatprep.subr.mxu0 %v7988_v0  ;;  %6231 = vmatprep.subr.mxu1 %v266_v6  ;;  %v6811_v13 = vld [vmem:[#allocation2 + $0x20] sm:$0xff]  ;;  %v5050_v14 = vld [vmem:[%s7972_s8 + $0x38] sm:$0xff]  ;;  %v161_v17 = vld [vmem:[%s7967_s3 + $0x8] sm:$0xff] }
  0x69   :  { %5544 = vmatpush3.msra.mxu0 %v167_v3  ;;  %6235 = vmatpush3.msra.mxu1 %v266_v6  ;;  %v5049_v18 = vld [vmem:[%s7972_s8 + $0x30] sm:$0xff]  ;;  %v160_v20 = vld [vmem:[%s7967_s3] sm:$0xff]  ;;  %v5048_v22 = vld [vmem:[%s7972_s8 + $0x28] sm:$0xff] }
  0x6a   :  { %5545 = vmatprep.subr.mxu0 %v7988_v0  ;;  %6232 = vmatprep.subr.mxu1 %v265_v7  ;;  %v6833_v19 = vld [vmem:[#allocation2 + $0x30] sm:$0xff]  ;;  %v159_v21 = vld [vmem:[%s7992_s6] sm:$0xff]  ;;  %v5064_v24 = vld [vmem:[%s7972_s8 + $0x58] sm:$0xff] }
  0x6b   :  { %5546 = vmatpush3.msra.mxu0 %v166_v5  ;;  %6236 = vmatpush3.msra.mxu1 %v265_v7  ;;  %v5047_v23 = vld [vmem:[%s7972_s8 + $0x20] sm:$0xff]  ;;  %v5036_v25 = vld [vmem:[#allocation7] ss:$0 sm:$0xff]  ;;  %v5063_v31 = vld [vmem:[%s7972_s8 + $0x50] sm:$0xff] }
  0x6c   :  { %5547 = vmatprep.subr.mxu0 %v7988_v0  ;;  %6233 = vmatprep.subr.mxu1 %v264_v9  ;;  %v251_v28 = vld [vmem:[#allocation2] sm:$0xff]  ;;  %v6857_v30 = vld [vmem:[#allocation11 + $0x18] sm:$0xff]  ;;  %v253_v32 = vld [vmem:[#allocation2 + $0x8] sm:$0xff] }
  0x6d   :  { %5548 = vmatpush3.msra.mxu0 %v165_v8  ;;  %6237 = vmatpush3.msra.mxu1 %v264_v9  ;;  %v255_v33 = vld [vmem:[#allocation2 + $0x10] sm:$0xff]  ;;  %v5062_v34 = vld [vmem:[%s7972_s8 + $0x48] sm:$0xff]  ;;  %v5061_v36 = vld [vmem:[%s7972_s8 + $0x40] sm:$0xff] }
  0x6e   :  { %5549 = vmatprep.subr.mxu0 %v7988_v0  ;;  %5576 = vmatprep.mubr.msk.f32.mxu1 %vm275_vm1, %v6805_v11  ;;  %v6872_v35 = vld [vmem:[#allocation11 + $0x10] sm:$0xff]  ;;  %v6882_v37 = vld [vmem:[#allocation11 + $0x8] sm:$0xff]  ;;  %v6891_v38 = vld [vmem:[#allocation11 + $0x38] sm:$0xff] }
  0x6f   :  { %5550 = vmatpush3.msra.mxu0 %v164_v10  ;;  %5577 = vmatmul.mubr.msk.f32.vlgmr.msra.gmra.mxu1 %vm275_vm1, %v6811_v13  ;;  %v6896_v39 = vld [vmem:[#allocation11] sm:$0xff]  ;;  %v6910_v41 = vld [vmem:[#allocation11 + $0x30] sm:$0xff]  ;;  %v6917_v42 = vld [vmem:[#allocation11 + $0x28] sm:$0xff] }
  0x70   :  { %5551 = vmatprep.subr.mxu0 %v7988_v0  ;;  %5582 = vmatprep.subr.mxu1 %v5050_v14  ;;  %v6908_v40 = vld [vmem:[%s7969_s5] sm:$0xff]  ;;  %v6923_v43 = vld [vmem:[#allocation11 + $0x58] sm:$0xff]  ;;  %v6933_v45 = vld [vmem:[#allocation11 + $0x50] sm:$0xff] }
  0x71   :  { %5552 = vmatpush3.msra.mxu0 %v163_v12  ;;  %5583 = vmatpush3.msra.mxu1 %v5050_v14  ;;  %v6928_v44 = vld [vmem:[#allocation11 + $0x20] sm:$0xff]  ;;  %v6939_v46 = vld [vmem:[#allocation11 + $0x48] sm:$0xff] }
  0x72   :  { %5553 = vmatprep.subr.mxu0 %v7988_v0  ;;  %5579 = vmatprep.mubr.msk.f32.mxu1 %vm275_vm1, %v6824_v16  ;;  %v6947_v47 = vld [vmem:[#allocation11 + $0x40] sm:$0xff] }
  0x73   :  { %5554 = vmatpush3.msra.mxu0 %v162_v15  ;;  %5584 = vmatprep.subr.mxu1 %v5049_v18  ;;  %v5052_v52 = vld [vmem:[%s7973_s9 + $0x1] ss:$0 sm:$0xff]  ;;  %v5066_v1 = vld [vmem:[%s7973_s9 + $0x2] ss:$0 sm:$0xff]  ;;  %v7019_v14 = vld [vmem:[%s7975_s11] ss:$0 sm:$0xff] }
  0x74   :  { %5555 = vmatprep.subr.mxu0 %v7988_v0  ;;  %5580 = vmatmul.mubr.msk.f32.gmra.mxu1 %vm275_vm1, %v6833_v19 }
  0x75   :  { %5556 = vmatpush3.msra.mxu0 %v161_v17  ;;  %5585 = vmatpush3.msra.mxu1 %v5049_v18  ;;  %v7026_v17 = vld [vmem:[%s7973_s9] ss:$0 sm:$0xff] }
  0x76   :  { %5557 = vmatprep.subr.mxu0 %v7988_v0  ;;  %5586 = vmatprep.subr.mxu1 %v5048_v22 }
  0x77   :  { %5558 = vmatpush3.msra.mxu0 %v160_v20  ;;  %5587 = vmatpush3.msra.mxu1 %v5048_v22 }
  0x78   :  { %5560 = vmatmul.mubr.msk.f32.vlgmr.msra.gmra.mxu0 %vm177_vm2, %v159_v21  ;;  %5562 = vmatprep.subr.mxu0 %v267_v4 }
  0x79   :  { %5563 = vmatpush3.msra.mxu0 %v267_v4  ;;  %5588 = vmatprep.subr.mxu1 %v5047_v23 }
  0x7a   :  { %5564 = vmatprep.subr.mxu0 %v266_v6  ;;  %5589 = vmatpush3.msra.mxu1 %v5047_v23 }
  0x7b   :  { %5565 = vmatpush3.msra.mxu0 %v266_v6  ;;  %5622 = vmatprep.subr.mxu1 %v7988_v0 }
  0x7c   :  { %5566 = vmatprep.subr.mxu0 %v265_v7 }
  0x7d   :  { %5567 = vmatpush3.msra.mxu0 %v265_v7 }
  0x7e   :  { %5568 = vmatprep.subr.mxu0 %v264_v9 }
  0x7f   :  { %5569 = vmatpush3.msra.mxu0 %v264_v9 }
  0x80   :  { %5602 = vmatprep.subr.mxu0 %v5064_v24 }
 0x12f   :  { %v6980_v48 = vpop.f32.mrf.mxu1 }
 0x131   :  { %v6982_v49 = vpop.f32.mrf.mxu1 }
 0x134   :  { %v6984_v50 = vpop.f32.mrf.mxu1 }
 0x136   :  { %v6986_v51 = vpop.f32.mrf.mxu1 }
 0x138   :  { %v247_v26 = vpop.f32.mrf.mxu0 }
 0x139   :  { %v248_v27 = vadd.f32 %v5036_v25, %v247_v26 }
 0x13a   :  { %v5561_v29 = vpop.f32.mrf.mxu0 }
 0x13b   :  { %5570 = vmatprep.mubr.msk.f32.mxu0 %vm275_vm1, %v248_v27  ;;  %5590 = vmatprep.mubr.msk.f32.mxu1 %vm275_vm1, %v248_v27 }
 0x13c   :  { %5571 = vmatmul.mubr.msk.f32.vlgmr.msra.gmra.mxu0 %vm275_vm1, %v251_v28  ;;  %5591 = vmatmul.mubr.msk.f32.vlgmr.msra.gmra.mxu1 %vm275_vm1, %v251_v28 }
 0x13d   :  { %5623 = vmatpush3.msra.mxu1 %v6857_v30  ;;  %5603 = vmatpush3.msra.mxu0 %v5064_v24 }
 0x13e   :  { %5604 = vmatprep.subr.mxu0 %v5063_v31  ;;  %5573 = vmatprep.mubr.msk.f32.mxu0 %vm275_vm1, %v253_v32 }
 0x13f   :  { %5593 = vmatprep.mubr.msk.f32.mxu1 %vm275_vm1, %v253_v32  ;;  %5605 = vmatpush3.msra.mxu0 %v5063_v31 }
 0x140   :  { %5624 = vmatprep.subr.mxu1 %v7988_v0  ;;  %5574 = vmatmul.mubr.msk.f32.gmra.mxu0 %vm275_vm1, %v255_v33 }
 0x141   :  { %5594 = vmatmul.mubr.msk.f32.gmra.mxu1 %vm275_vm1, %v255_v33  ;;  %5606 = vmatprep.subr.mxu0 %v5062_v34 }
 0x142   :  { %5625 = vmatpush3.msra.mxu1 %v6872_v35  ;;  %5607 = vmatpush3.msra.mxu0 %v5062_v34 }
 0x143   :  { %5610 = vmatprep.mubr.msk.f32.mxu0 %vm275_vm1, %v248_v27  ;;  %5608 = vmatprep.subr.mxu0 %v5061_v36 }
 0x144   :  { %5596 = vmatprep.mubr.msk.f32.mxu1 %vm275_vm1, %v6805_v11  ;;  %5609 = vmatpush3.msra.mxu0 %v5061_v36 }
 0x145   :  { %5626 = vmatprep.subr.mxu1 %v7988_v0  ;;  %5597 = vmatmul.mubr.msk.f32.gmra.mxu1 %vm275_vm1, %v6811_v13 }
 0x146   :  { %5611 = vmatmul.mubr.msk.f32.vlgmr.msra.gmra.mxu0 %vm275_vm1, %v251_v28  ;;  %5627 = vmatpush3.msra.mxu1 %v6882_v37 }
 0x147   :  { %5599 = vmatprep.mubr.msk.f32.mxu1 %vm275_vm1, %v6824_v16  ;;  %5613 = vmatprep.mubr.msk.f32.mxu0 %vm275_vm1, %v253_v32 }
 0x148   :  { %5628 = vmatprep.subr.mxu1 %v7988_v0  ;;  %5633 = vmatprep.subr.mxu0 %v7988_v0 }
 0x149   :  { %5600 = vmatmul.mubr.msk.f32.gmra.mxu1 %vm275_vm1, %v6833_v19  ;;  %5634 = vmatpush3.msra.mxu0 %v6891_v38 }
 0x14a   :  { %5614 = vmatmul.mubr.msk.f32.gmra.mxu0 %vm275_vm1, %v255_v33  ;;  %5629 = vmatpush3.msra.mxu1 %v6896_v39  ;;  %v7041_v33 = vld [vmem:[%s7975_s11 + $0x1] ss:$0 sm:$0xff] }
 0x14b   :  { %5616 = vmatprep.mubr.msk.f32.mxu0 %vm275_vm1, %v6805_v11  ;;  %5630 = vmatprep.mubr.msk.f32.mxu1 %vm6639_vm0, %v7988_v0 }
 0x14c   :  { %5635 = vmatprep.subr.mxu0 %v7988_v0  ;;  %5644 = vmatprep.subr.mxu1 %v7988_v0 }
 0x14d   :  { %5631 = vmatmul.mubr.msk.f32.vlgmr.msra.gmra.mxu1 %vm275_vm1, %v6908_v40  ;;  %5636 = vmatpush3.msra.mxu0 %v6910_v41 }
 0x14e   :  { %5617 = vmatmul.mubr.msk.f32.gmra.mxu0 %vm275_vm1, %v6811_v13  ;;  %5637 = vmatprep.subr.mxu0 %v7988_v0 }
 0x14f   :  { %5619 = vmatprep.mubr.msk.f32.mxu0 %vm275_vm1, %v6824_v16  ;;  %5638 = vmatpush3.msra.mxu0 %v6917_v42 }
 0x150   :  { %5639 = vmatprep.subr.mxu0 %v7988_v0  ;;  %5645 = vmatpush3.msra.mxu1 %v6923_v43 }
 0x151   :  { %5640 = vmatpush3.msra.mxu0 %v6928_v44  ;;  %5646 = vmatprep.subr.mxu1 %v7988_v0 }
 0x152   :  { %5620 = vmatmul.mubr.msk.f32.gmra.mxu0 %vm275_vm1, %v6833_v19  ;;  %5647 = vmatpush3.msra.mxu1 %v6933_v45 }
 0x153   :  { %5641 = vmatprep.mubr.msk.f32.mxu0 %vm6639_vm0, %v7988_v0  ;;  %5648 = vmatprep.subr.mxu1 %v7988_v0 }
 0x154   :  { %5649 = vmatpush3.msra.mxu1 %v6939_v46  ;;  %5652 = vmatprep.mubr.msk.f32.mxu1 %vm6639_vm0, %v7988_v0 }
 0x155   :  { %5650 = vmatprep.subr.mxu1 %v7988_v0  ;;  %5655 = vmatprep.subr.mxu0 %v7988_v0 }
 0x156   :  { %5642 = vmatmul.mubr.msk.f32.vlgmr.msra.gmra.mxu0 %vm275_vm1, %v6908_v40  ;;  %5651 = vmatpush3.msra.mxu1 %v6947_v47 }
 0x157   :  { %5653 = vmatmul.mubr.msk.f32.vlgmr.msra.gmra.mxu1 %vm275_vm1, %v6908_v40  ;;  %5656 = vmatpush3.msra.mxu0 %v6857_v30 }
 0x158   :  { %5666 = vmatprep.subr.mxu1 %v7988_v0  ;;  %5657 = vmatprep.subr.mxu0 %v7988_v0 }
 0x159   :  { %5667 = vmatpush3.msra.mxu1 %v6891_v38  ;;  %5658 = vmatpush3.msra.mxu0 %v6872_v35 }
 0x15a   :  { %5668 = vmatprep.subr.mxu1 %v7988_v0  ;;  %5659 = vmatprep.subr.mxu0 %v7988_v0 }
 0x15b   :  { %5669 = vmatpush3.msra.mxu1 %v6910_v41  ;;  %5660 = vmatpush3.msra.mxu0 %v6882_v37 }
 0x15c   :  { %5670 = vmatprep.subr.mxu1 %v7988_v0  ;;  %5661 = vmatprep.subr.mxu0 %v7988_v0 }
 0x15d   :  { %5671 = vmatpush3.msra.mxu1 %v6917_v42  ;;  %5662 = vmatpush3.msra.mxu0 %v6896_v39 }
 0x15e   :  { %5672 = vmatprep.subr.mxu1 %v7988_v0  ;;  %5663 = vmatprep.mubr.msk.f32.mxu0 %vm6639_vm0, %v7988_v0 }
 0x15f   :  { %5673 = vmatpush3.msra.mxu1 %v6928_v44  ;;  %5674 = vmatprep.mubr.msk.f32.mxu1 %vm6639_vm0, %v7988_v0 }
 0x160   :  { %5677 = vmatprep.subr.mxu0 %v7988_v0  ;;  %5688 = vmatprep.subr.mxu1 %v7988_v0 }
 0x1fc   :  { %v6991_v53 = vpop.f32.mrf.mxu0  ;;  %v5592_v54 = vpop.f32.mrf.mxu1 }
 0x1fd   :  { %v6993_v55 = vadd.f32 %v5592_v54, %v5052_v52 }
 0x1fe   :  { %v366_v56 = vpop.f32.mrf.mxu0  ;;  %v484_v57 = vpop.f32.mrf.mxu1 }
 0x1ff   :  { %v367_v20 = vadd.f32 %v7026_v17, %v366_v56  ;;  %v485_v54 = vadd.f32 %v5052_v52, %v484_v57 }
 0x200   :  { %v6995_v58 = vpop.f32.mrf.mxu0 }
 0x201   :  { %v5595_v59 = vpop.f32.mrf.mxu1 }
 0x202   :  { %v6997_v60 = vadd.f32 %v5595_v59, %v5052_v52  ;;  %v6999_v61 = vpop.f32.mrf.mxu0 }
 0x203   :  { %v494_v62 = vpop.f32.mrf.mxu1 }
 0x204   :  { %v7001_v63 = vadd.f32 %v5052_v52, %v494_v62 }
 0x205   :  { %v5598_v2 = vpop.f32.mrf.mxu1 }
 0x206   :  { %v7006_v3 = vadd.f32 %v5598_v2, %v5052_v52  ;;  %v5612_v4 = vpop.f32.mrf.mxu0 }
 0x207   :  { %v7008_v5 = vadd.f32 %v5612_v4, %v5066_v1  ;;  %v504_v6 = vpop.f32.mrf.mxu1 }
 0x208   :  { %v7010_v7 = vadd.f32 %v5052_v52, %v504_v6  ;;  %v602_v8 = vpop.f32.mrf.mxu0 }
 0x209   :  { %v5601_v9 = vpop.f32.mrf.mxu1 }
 0x20a   :  { %v7012_v10 = vadd.f32 %v5601_v9, %v5052_v52  ;;  %v5615_v11 = vpop.f32.mrf.mxu0 }
 0x20b   :  { %v7014_v12 = vadd.f32 %v5615_v11, %v5066_v1  ;;  %v514_v13 = vpop.f32.mrf.mxu1 }
 0x20c   :  { %v7021_v15 = vadd.f32 %v5052_v52, %v514_v13  ;;  %v612_v16 = vpop.f32.mrf.mxu0 }
 0x20d   :  { %v7028_v18 = vadd.f32 %v5066_v1, %v612_v16  ;;  %v736_v19 = vpop.f32.mrf.mxu1  ;;  %v7049_v16 = vld [vmem:[%s7975_s11 + $0x2] ss:$0 sm:$0xff] }
 0x20e   :  { %v5618_v21 = vpop.f32.mrf.mxu0  ;;  %v737_v22 = vadd.f32 %v7019_v14, %v736_v19 }
 0x20f   :  { %v7032_v23 = vadd.f32 %v5618_v21, %v5066_v1  ;;  %v5632_v24 = vpop.f32.mrf.mxu1 }
 0x210   :  { %v892_v25 = vadd.f32 %v737_v22, %v367_v20  ;;  %v622_v26 = vpop.f32.mrf.mxu0  ;;  %v603_v20 = vadd.f32 %v5066_v1, %v602_v8 }
 0x211   :  { %v7034_v27 = vadd.f32 %v5066_v1, %v622_v26 }
 0x212   :  { %v5083_v28 = vmul.f32 -1.442695, %v892_v25  ;;  %v5621_v29 = vpop.f32.mrf.mxu0  ;;  %v7052_v25 = vld [vmem:[#allocation5] sm:$0xff] }
 0x213   :  { %v7036_v31 = vadd.f32 %v5621_v29, %v5066_v1  ;;  %v915_v26 = vsub.f32 1.0, %v7052_v25 }
 0x214   :  { %6251 = vpow2.f32 %v5083_v28  ;;  %v632_v32 = vpop.f32.mrf.mxu0 }
 0x215   :  { %v7043_v34 = vadd.f32 %v5066_v1, %v632_v32 }
 0x216   :  { %v812_v36 = vpop.f32.mrf.mxu0 }
 0x217   :  { %v813_v56 = vadd.f32 %v7041_v33, %v812_v36  ;;  %v888_v59 = vpop.f32.mrf.mxu1 }
 0x218   :  { %v5643_v62 = vpop.f32.mrf.mxu0  ;;  %v889_v52 = vadd.f32 %v7049_v16, %v888_v59 }
 0x219   :  { %v899_v2 = vadd.f32 %v813_v56, %v485_v54  ;;  %v5654_v4 = vpop.f32.mrf.mxu1  ;;  %v916_v54 = vmul.f32 %v915_v26, %v6908_v40  ;;  %v372_v62 = vadd.f32 %v6991_v53, %v7026_v17 }
 0x21b   :  { %v5084_v6 = vmul.f32 -1.442695, %v899_v2 }
 0x21d   :  { %6253 = vpow2.f32 %v5084_v6 }
 0x221   :  { %v6252_v9 = vpop.eup %6251 }
 0x222   :  { %v896_v11 = vadd.f32 1.0, %v6252_v9 }
 0x224   :  { %6255 = vrcp.f32 %v896_v11 }
 0x22a   :  { %v6254_v13 = vpop.eup %6253 }
 0x22b   :  { %v903_v19 = vadd.f32 1.0, %v6254_v13 }
 0x22d   :  { %6257 = vrcp.f32 %v903_v19 }
 0x231   :  { %v6256_v57 = vpop.eup %6255 }
 0x232   :  { %v906_v21 = vmul.f32 %v6256_v57, %v889_v52 }
 0x234   :  { %v907_v22 = vadd.f32 %v906_v21, %v603_v20 }
 0x236   :  { %6259 = vtanh.f32 %v907_v22 }
 0x23a   :  { %v6258_v24 = vpop.eup %6257 }
 0x23b   :  { %v909_v28 = vsub.f32 1.0, %v6258_v24  ;;  %v911_v32 = vmul.f32 %v6258_v24, %v6908_v40 }
 0x243   :  { %v6260_v29 = vpop.eup %6259 }
 0x244   :  { %v910_v36 = vmul.f32 %v6260_v29, %v909_v28 }
 0x246   :  { %v912_v56 = vadd.f32 %v911_v32, %v910_v36 }
 0x248   :  { %v914_v1 = vmul.f32 %v7052_v25, %v912_v56  ;;  %v7105_v56 = vld [vmem:[#allocation5 + $0x8] sm:$0xff] }
 0x24a   :  { %v7060_v8 = vadd.f32 %v916_v54, %v914_v1 }
 0x24c   :  { %5664 = vmatmul.mubr.msk.f32.vlgmr.msra.gmra.mxu0 %vm275_vm1, %v7060_v8  ;;  %5675 = vmatmul.mubr.msk.f32.vlgmr.msra.gmra.mxu1 %vm275_vm1, %v7060_v8 }
 0x24d   :  { %5678 = vmatpush3.msra.mxu0 %v6923_v43  ;;  %5685 = vmatprep.mubr.msk.f32.mxu0 %vm6639_vm0, %v7988_v0 }
 0x24e   :  { %5679 = vmatprep.subr.mxu0 %v7988_v0  ;;  %5689 = vmatpush3.msra.mxu1 %v6857_v30 }
 0x24f   :  { %5680 = vmatpush3.msra.mxu0 %v6933_v45  ;;  %5690 = vmatprep.subr.mxu1 %v7988_v0 }
 0x250   :  { %5681 = vmatprep.subr.mxu0 %v7988_v0  ;;  %5691 = vmatpush3.msra.mxu1 %v6872_v35 }
 0x251   :  { %5682 = vmatpush3.msra.mxu0 %v6939_v46  ;;  %5692 = vmatprep.subr.mxu1 %v7988_v0 }
 0x252   :  { %5683 = vmatprep.subr.mxu0 %v7988_v0  ;;  %5693 = vmatpush3.msra.mxu1 %v6882_v37 }
 0x253   :  { %5684 = vmatpush3.msra.mxu0 %v6947_v47  ;;  %5694 = vmatprep.subr.mxu1 %v7988_v0 }
 0x254   :  { %5686 = vmatmul.mubr.msk.f32.vlgmr.msra.gmra.mxu0 %vm275_vm1, %v7060_v8  ;;  %5699 = vmatprep.subr.mxu0 %v7988_v0 }
 0x255   :  { %5700 = vmatpush3.msra.mxu0 %v6891_v38  ;;  %5695 = vmatpush3.msra.mxu1 %v6896_v39 }
 0x256   :  { %5701 = vmatprep.subr.mxu0 %v7988_v0  ;;  %5696 = vmatprep.mubr.msk.f32.mxu1 %vm6639_vm0, %v7988_v0 }
 0x257   :  { %5702 = vmatpush3.msra.mxu0 %v6910_v41  ;;  %5707 = vmatprep.mubr.msk.f32.mxu0 %vm6639_vm0, %v7988_v0 }
 0x258   :  { %5703 = vmatprep.subr.mxu0 %v7988_v0  ;;  %5710 = vmatprep.subr.mxu1 %v7988_v0 }
 0x259   :  { %5704 = vmatpush3.msra.mxu0 %v6917_v42 }
 0x25a   :  { %5705 = vmatprep.subr.mxu0 %v7988_v0 }
 0x25b   :  { %5706 = vmatpush3.msra.mxu0 %v6928_v44 }
 0x25c   :  { %5721 = vmatprep.subr.mxu0 %v7988_v0 }
 0x30c   :  { %v987_v40 = vpop.f32.mrf.mxu0  ;;  %v1057_v59 = vpop.f32.mrf.mxu1 }
 0x30d   :  { %v988_v2 = vadd.f32 %v7019_v14, %v987_v40  ;;  %v1058_v13 = vadd.f32 %v7041_v33, %v1057_v59 }
 0x30e   :  { %v5665_v4 = vpop.f32.mrf.mxu0  ;;  %v5676_v6 = vpop.f32.mrf.mxu1 }
 0x30f   :  { %v1131_v9 = vadd.f32 %v988_v2, %v372_v62  ;;  %v1138_v52 = vadd.f32 %v1058_v13, %v6993_v55  ;;  %v7987_v62 = vsub.f32 1.0, %v7105_v56  ;;  %v377_v13 = vadd.f32 %v7026_v17, %v6999_v61 }
 0x311   :  { %v5088_v11 = vmul.f32 -1.442695, %v1131_v9  ;;  %v5089_v20 = vmul.f32 -1.442695, %v1138_v52  ;;  %v1156_v6 = vmul.f32 %v7987_v62, %v7060_v8 }
 0x313   :  { %6261 = vpow2.f32 %v5088_v11 }
 0x314   :  { %v1127_v19 = vpop.f32.mrf.mxu0  ;;  %6263 = vpow2.f32 %v5089_v20 }
 0x315   :  { %v1128_v28 = vadd.f32 %v7049_v16, %v1127_v19 }
 0x316   :  { %v5687_v57 = vpop.f32.mrf.mxu0 }
 0x320   :  { %v6262_v21 = vpop.eup %6261 }
 0x321   :  { %v1135_v22 = vadd.f32 1.0, %v6262_v21  ;;  %v6264_v24 = vpop.eup %6263 }
 0x322   :  { %v1142_v53 = vadd.f32 1.0, %v6264_v24 }
 0x323   :  { %6265 = vrcp.f32 %v1135_v22 }
 0x324   :  { %6267 = vrcp.f32 %v1142_v53 }
 0x330   :  { %v6266_v29 = vpop.eup %6265 }
 0x331   :  { %v1145_v32 = vmul.f32 %v6266_v29, %v1128_v28  ;;  %v6268_v54 = vpop.eup %6267 }
 0x332   :  { %v1148_v55 = vsub.f32 1.0, %v6268_v54  ;;  %v1150_v40 = vmul.f32 %v6268_v54, %v7060_v8 }
 0x333   :  { %v1146_v36 = vadd.f32 %v1145_v32, %v7008_v5 }
 0x335   :  { %6269 = vtanh.f32 %v1146_v36 }
 0x342   :  { %v6270_v1 = vpop.eup %6269 }
 0x343   :  { %v1149_v59 = vmul.f32 %v6270_v1, %v1148_v55 }
 0x345   :  { %v1151_v2 = vadd.f32 %v1150_v40, %v1149_v59 }
 0x347   :  { %v1154_v4 = vmul.f32 %v7105_v56, %v1151_v2 }
 0x349   :  { %v7113_v9 = vadd.f32 %v1156_v6, %v1154_v4  ;;  %v7158_v4 = vld [vmem:[#allocation5 + $0x10] sm:$0xff] }
 0x34b   :  { %5697 = vmatmul.mubr.msk.f32.vlgmr.msra.gmra.mxu1 %vm275_vm1, %v7113_v9  ;;  %5708 = vmatmul.mubr.msk.f32.vlgmr.msra.gmra.mxu0 %vm275_vm1, %v7113_v9 }
 0x34c   :  { %5711 = vmatpush3.msra.mxu1 %v6923_v43  ;;  %5718 = vmatprep.mubr.msk.f32.mxu1 %vm6639_vm0, %v7988_v0 }
 0x34d   :  { %5712 = vmatprep.subr.mxu1 %v7988_v0  ;;  %5722 = vmatpush3.msra.mxu0 %v6857_v30 }
 0x34e   :  { %5713 = vmatpush3.msra.mxu1 %v6933_v45  ;;  %5723 = vmatprep.subr.mxu0 %v7988_v0 }
 0x34f   :  { %5714 = vmatprep.subr.mxu1 %v7988_v0  ;;  %5724 = vmatpush3.msra.mxu0 %v6872_v35 }
 0x350   :  { %5715 = vmatpush3.msra.mxu1 %v6939_v46  ;;  %5725 = vmatprep.subr.mxu0 %v7988_v0 }
 0x351   :  { %5716 = vmatprep.subr.mxu1 %v7988_v0  ;;  %5726 = vmatpush3.msra.mxu0 %v6882_v37 }
 0x352   :  { %5717 = vmatpush3.msra.mxu1 %v6947_v47  ;;  %5727 = vmatprep.subr.mxu0 %v7988_v0 }
 0x353   :  { %5719 = vmatmul.mubr.msk.f32.vlgmr.msra.gmra.mxu1 %vm275_vm1, %v7113_v9  ;;  %5732 = vmatprep.subr.mxu1 %v7988_v0 }
 0x354   :  { %5733 = vmatpush3.msra.mxu1 %v6891_v38  ;;  %5728 = vmatpush3.msra.mxu0 %v6896_v39 }
 0x355   :  { %5734 = vmatprep.subr.mxu1 %v7988_v0  ;;  %5729 = vmatprep.mubr.msk.f32.mxu0 %vm6639_vm0, %v7988_v0 }
 0x356   :  { %5735 = vmatpush3.msra.mxu1 %v6910_v41  ;;  %5740 = vmatprep.mubr.msk.f32.mxu1 %vm6639_vm0, %v7988_v0 }
 0x357   :  { %5736 = vmatprep.subr.mxu1 %v7988_v0  ;;  %5743 = vmatprep.subr.mxu0 %v7988_v0 }
 0x358   :  { %5737 = vmatpush3.msra.mxu1 %v6917_v42 }
 0x359   :  { %5738 = vmatprep.subr.mxu1 %v7988_v0 }
 0x35a   :  { %5739 = vmatpush3.msra.mxu1 %v6928_v44 }
 0x35b   :  { %5754 = vmatprep.subr.mxu1 %v7988_v0 }
 0x40b   :  { %v1227_v5 = vpop.f32.mrf.mxu1  ;;  %v1297_v11 = vpop.f32.mrf.mxu0 }
 0x40c   :  { %v1228_v19 = vadd.f32 %v7019_v14, %v1227_v5  ;;  %v1298_v22 = vadd.f32 %v7041_v33, %v1297_v11 }
 0x40d   :  { %v5698_v52 = vpop.f32.mrf.mxu1  ;;  %v5709_v57 = vpop.f32.mrf.mxu0 }
 0x40e   :  { %v1371_v20 = vadd.f32 %v1228_v19, %v377_v13  ;;  %v1378_v53 = vadd.f32 %v1298_v22, %v7001_v63  ;;  %v7986_v13 = vsub.f32 1.0, %v7158_v4  ;;  %v382_v22 = vadd.f32 %v6995_v58, %v7026_v17 }
 0x410   :  { %v5093_v21 = vmul.f32 -1.442695, %v1371_v20  ;;  %v5094_v29 = vmul.f32 -1.442695, %v1378_v53  ;;  %v1396_v57 = vmul.f32 %v7986_v13, %v7113_v9 }
 0x412   :  { %6271 = vpow2.f32 %v5093_v21 }
 0x413   :  { %v1367_v24 = vpop.f32.mrf.mxu1  ;;  %6273 = vpow2.f32 %v5094_v29 }
 0x414   :  { %v1368_v55 = vadd.f32 %v7049_v16, %v1367_v24 }
 0x415   :  { %v5720_v28 = vpop.f32.mrf.mxu1 }
 0x41f   :  { %v6272_v32 = vpop.eup %6271 }
 0x420   :  { %v1375_v36 = vadd.f32 1.0, %v6272_v32  ;;  %v6274_v54 = vpop.eup %6273 }
 0x421   :  { %v1382_v61 = vadd.f32 1.0, %v6274_v54 }
 0x422   :  { %6275 = vrcp.f32 %v1375_v36 }
 0x423   :  { %6277 = vrcp.f32 %v1382_v61 }
 0x42f   :  { %v6276_v1 = vpop.eup %6275 }
 0x430   :  { %v1385_v40 = vmul.f32 %v6276_v1, %v1368_v55  ;;  %v6278_v2 = vpop.eup %6277 }
 0x431   :  { %v1388_v63 = vsub.f32 1.0, %v6278_v2  ;;  %v1390_v5 = vmul.f32 %v6278_v2, %v7113_v9 }
 0x432   :  { %v1386_v59 = vadd.f32 %v1385_v40, %v7028_v18 }
 0x434   :  { %6279 = vtanh.f32 %v1386_v59 }
 0x441   :  { %v6280_v6 = vpop.eup %6279 }
 0x442   :  { %v1389_v11 = vmul.f32 %v6280_v6, %v1388_v63 }
 0x444   :  { %v1391_v19 = vadd.f32 %v1390_v5, %v1389_v11 }
 0x446   :  { %v1394_v52 = vmul.f32 %v7158_v4, %v1391_v19 }
 0x448   :  { %v7166_v20 = vadd.f32 %v1396_v57, %v1394_v52  ;;  %v7211_v52 = vld [vmem:[#allocation5 + $0x18] sm:$0xff] }
 0x44a   :  { %5730 = vmatmul.mubr.msk.f32.vlgmr.msra.gmra.mxu0 %vm275_vm1, %v7166_v20  ;;  %5741 = vmatmul.mubr.msk.f32.vlgmr.msra.gmra.mxu1 %vm275_vm1, %v7166_v20 }
 0x44b   :  { %5744 = vmatpush3.msra.mxu0 %v6923_v43  ;;  %5751 = vmatprep.mubr.msk.f32.mxu0 %vm6639_vm0, %v7988_v0 }
 0x44c   :  { %5745 = vmatprep.subr.mxu0 %v7988_v0  ;;  %5755 = vmatpush3.msra.mxu1 %v6857_v30 }
 0x44d   :  { %5746 = vmatpush3.msra.mxu0 %v6933_v45  ;;  %5756 = vmatprep.subr.mxu1 %v7988_v0 }
 0x44e   :  { %5747 = vmatprep.subr.mxu0 %v7988_v0  ;;  %5757 = vmatpush3.msra.mxu1 %v6872_v35 }
 0x44f   :  { %5748 = vmatpush3.msra.mxu0 %v6939_v46  ;;  %5758 = vmatprep.subr.mxu1 %v7988_v0 }
 0x450   :  { %5749 = vmatprep.subr.mxu0 %v7988_v0  ;;  %5759 = vmatpush3.msra.mxu1 %v6882_v37 }
 0x451   :  { %5750 = vmatpush3.msra.mxu0 %v6947_v47  ;;  %5760 = vmatprep.subr.mxu1 %v7988_v0 }
 0x452   :  { %5752 = vmatmul.mubr.msk.f32.vlgmr.msra.gmra.mxu0 %vm275_vm1, %v7166_v20  ;;  %5765 = vmatprep.subr.mxu0 %v7988_v0 }
 0x453   :  { %5766 = vmatpush3.msra.mxu0 %v6891_v38  ;;  %5761 = vmatpush3.msra.mxu1 %v6896_v39 }
 0x454   :  { %5767 = vmatprep.subr.mxu0 %v7988_v0  ;;  %5762 = vmatprep.mubr.msk.f32.mxu1 %vm6639_vm0, %v7988_v0 }
 0x455   :  { %5768 = vmatpush3.msra.mxu0 %v6910_v41  ;;  %5773 = vmatprep.mubr.msk.f32.mxu0 %vm6639_vm0, %v7988_v0 }
 0x456   :  { %5769 = vmatprep.subr.mxu0 %v7988_v0  ;;  %5776 = vmatprep.subr.mxu1 %v7988_v0 }
 0x457   :  { %5770 = vmatpush3.msra.mxu0 %v6917_v42 }
 0x458   :  { %5771 = vmatprep.subr.mxu0 %v7988_v0 }
 0x459   :  { %5772 = vmatpush3.msra.mxu0 %v6928_v44 }
 0x45a   :  { %5787 = vmatprep.subr.mxu0 %v7988_v0 }
 0x50a   :  { %v1467_v18 = vpop.f32.mrf.mxu0  ;;  %v1537_v21 = vpop.f32.mrf.mxu1 }
 0x50b   :  { %v1468_v24 = vadd.f32 %v7019_v14, %v1467_v18  ;;  %v1538_v36 = vadd.f32 %v7041_v33, %v1537_v21 }
 0x50c   :  { %v5731_v53 = vpop.f32.mrf.mxu0  ;;  %v5742_v28 = vpop.f32.mrf.mxu1 }
 0x50d   :  { %v1611_v29 = vadd.f32 %v1468_v24, %v382_v22  ;;  %v1618_v61 = vadd.f32 %v1538_v36, %v6997_v60  ;;  %v7985_v22 = vsub.f32 1.0, %v7211_v52  ;;  %v387_v36 = vadd.f32 %v7026_v17, %v6982_v49 }
 0x50f   :  { %v5098_v32 = vmul.f32 -1.442695, %v1611_v29  ;;  %v5099_v1 = vmul.f32 -1.442695, %v1618_v61  ;;  %v1636_v28 = vmul.f32 %v7985_v22, %v7166_v20 }
 0x511   :  { %6281 = vpow2.f32 %v5098_v32 }
 0x512   :  { %v1607_v54 = vpop.f32.mrf.mxu0  ;;  %6283 = vpow2.f32 %v5099_v1 }
 0x513   :  { %v1608_v63 = vadd.f32 %v7049_v16, %v1607_v54 }
 0x514   :  { %v5753_v55 = vpop.f32.mrf.mxu0 }
 0x51e   :  { %v6282_v40 = vpop.eup %6281 }
 0x51f   :  { %v1615_v59 = vadd.f32 1.0, %v6282_v40  ;;  %v6284_v2 = vpop.eup %6283 }
 0x520   :  { %v1622_v58 = vadd.f32 1.0, %v6284_v2 }
 0x521   :  { %6285 = vrcp.f32 %v1615_v59 }
 0x522   :  { %6287 = vrcp.f32 %v1622_v58 }
 0x52e   :  { %v6286_v6 = vpop.eup %6285 }
 0x52f   :  { %v1625_v5 = vmul.f32 %v6286_v6, %v1608_v63  ;;  %v6288_v19 = vpop.eup %6287 }
 0x530   :  { %v1628_v60 = vsub.f32 1.0, %v6288_v19  ;;  %v1630_v18 = vmul.f32 %v6288_v19, %v7166_v20 }
 0x531   :  { %v1626_v11 = vadd.f32 %v1625_v5, %v7014_v12 }
 0x533   :  { %6289 = vtanh.f32 %v1626_v11 }
 0x540   :  { %v6290_v57 = vpop.eup %6289 }
 0x541   :  { %v1629_v21 = vmul.f32 %v6290_v57, %v1628_v60 }
 0x543   :  { %v1631_v24 = vadd.f32 %v1630_v18, %v1629_v21 }
 0x545   :  { %v1634_v53 = vmul.f32 %v7211_v52, %v1631_v24 }
 0x547   :  { %v7219_v29 = vadd.f32 %v1636_v28, %v1634_v53  ;;  %v7264_v53 = vld [vmem:[#allocation5 + $0x20] sm:$0xff] }
 0x549   :  { %5763 = vmatmul.mubr.msk.f32.vlgmr.msra.gmra.mxu1 %vm275_vm1, %v7219_v29  ;;  %5774 = vmatmul.mubr.msk.f32.vlgmr.msra.gmra.mxu0 %vm275_vm1, %v7219_v29 }
 0x54a   :  { %5777 = vmatpush3.msra.mxu1 %v6923_v43  ;;  %5784 = vmatprep.mubr.msk.f32.mxu1 %vm6639_vm0, %v7988_v0 }
 0x54b   :  { %5778 = vmatprep.subr.mxu1 %v7988_v0  ;;  %5788 = vmatpush3.msra.mxu0 %v6857_v30 }
 0x54c   :  { %5779 = vmatpush3.msra.mxu1 %v6933_v45  ;;  %5789 = vmatprep.subr.mxu0 %v7988_v0 }
 0x54d   :  { %5780 = vmatprep.subr.mxu1 %v7988_v0  ;;  %5790 = vmatpush3.msra.mxu0 %v6872_v35 }
 0x54e   :  { %5781 = vmatpush3.msra.mxu1 %v6939_v46  ;;  %5791 = vmatprep.subr.mxu0 %v7988_v0 }
 0x54f   :  { %5782 = vmatprep.subr.mxu1 %v7988_v0  ;;  %5792 = vmatpush3.msra.mxu0 %v6882_v37 }
 0x550   :  { %5783 = vmatpush3.msra.mxu1 %v6947_v47  ;;  %5793 = vmatprep.subr.mxu0 %v7988_v0 }
 0x551   :  { %5785 = vmatmul.mubr.msk.f32.vlgmr.msra.gmra.mxu1 %vm275_vm1, %v7219_v29  ;;  %5798 = vmatprep.subr.mxu1 %v7988_v0 }
 0x552   :  { %5799 = vmatpush3.msra.mxu1 %v6891_v38  ;;  %5794 = vmatpush3.msra.mxu0 %v6896_v39 }
 0x553   :  { %5800 = vmatprep.subr.mxu1 %v7988_v0  ;;  %5795 = vmatprep.mubr.msk.f32.mxu0 %vm6639_vm0, %v7988_v0 }
 0x554   :  { %5801 = vmatpush3.msra.mxu1 %v6910_v41  ;;  %5806 = vmatprep.mubr.msk.f32.mxu1 %vm6639_vm0, %v7988_v0 }
 0x555   :  { %5802 = vmatprep.subr.mxu1 %v7988_v0  ;;  %5809 = vmatprep.subr.mxu0 %v7988_v0 }
 0x556   :  { %5803 = vmatpush3.msra.mxu1 %v6917_v42 }
 0x557   :  { %5804 = vmatprep.subr.mxu1 %v7988_v0 }
 0x558   :  { %5805 = vmatpush3.msra.mxu1 %v6928_v44 }
 0x559   :  { %5820 = vmatprep.subr.mxu1 %v7988_v0 }
 0x609   :  { %v1707_v12 = vpop.f32.mrf.mxu1  ;;  %v1777_v32 = vpop.f32.mrf.mxu0 }
 0x60a   :  { %v1708_v54 = vadd.f32 %v7019_v14, %v1707_v12  ;;  %v1778_v59 = vadd.f32 %v7041_v33, %v1777_v32 }
 0x60b   :  { %v5764_v61 = vpop.f32.mrf.mxu1  ;;  %v5775_v55 = vpop.f32.mrf.mxu0 }
 0x60c   :  { %v1851_v1 = vadd.f32 %v1708_v54, %v387_v36  ;;  %v1858_v58 = vadd.f32 %v1778_v59, %v7010_v7  ;;  %v7984_v36 = vsub.f32 1.0, %v7264_v53 }
 0x60e   :  { %v5103_v40 = vmul.f32 -1.442695, %v1851_v1  ;;  %v5104_v6 = vmul.f32 -1.442695, %v1858_v58  ;;  %v1876_v55 = vmul.f32 %v7984_v36, %v7219_v29 }
 0x610   :  { %6291 = vpow2.f32 %v5103_v40  ;;  %v392_v40 = vadd.f32 %v6980_v48, %v7026_v17 }
 0x611   :  { %v1847_v2 = vpop.f32.mrf.mxu1  ;;  %6293 = vpow2.f32 %v5104_v6 }
 0x612   :  { %v1848_v60 = vadd.f32 %v7049_v16, %v1847_v2 }
 0x613   :  { %v5786_v63 = vpop.f32.mrf.mxu1 }
 0x61d   :  { %v6292_v5 = vpop.eup %6291 }
 0x61e   :  { %v1855_v11 = vadd.f32 1.0, %v6292_v5  ;;  %v6294_v19 = vpop.eup %6293 }
 0x61f   :  { %v1862_v49 = vadd.f32 1.0, %v6294_v19 }
 0x620   :  { %6295 = vrcp.f32 %v1855_v11 }
 0x621   :  { %6297 = vrcp.f32 %v1862_v49 }
 0x62d   :  { %v6296_v57 = vpop.eup %6295 }
 0x62e   :  { %v1865_v18 = vmul.f32 %v6296_v57, %v1848_v60  ;;  %v6298_v24 = vpop.eup %6297 }
 0x62f   :  { %v1868_v7 = vsub.f32 1.0, %v6298_v24  ;;  %v1870_v12 = vmul.f32 %v6298_v24, %v7219_v29 }
 0x630   :  { %v1866_v21 = vadd.f32 %v1865_v18, %v7034_v27 }
 0x632   :  { %6299 = vtanh.f32 %v1866_v21 }
 0x63f   :  { %v6300_v28 = vpop.eup %6299 }
 0x640   :  { %v1869_v32 = vmul.f32 %v6300_v28, %v1868_v7 }
 0x642   :  { %v1871_v54 = vadd.f32 %v1870_v12, %v1869_v32 }
 0x644   :  { %v1874_v61 = vmul.f32 %v7264_v53, %v1871_v54  ;;  %v7317_v54 = vld [vmem:[#allocation5 + $0x28] sm:$0xff] }
 0x646   :  { %v7272_v1 = vadd.f32 %v1876_v55, %v1874_v61 }
 0x648   :  { %5796 = vmatmul.mubr.msk.f32.vlgmr.msra.gmra.mxu0 %vm275_vm1, %v7272_v1  ;;  %5807 = vmatmul.mubr.msk.f32.vlgmr.msra.gmra.mxu1 %vm275_vm1, %v7272_v1 }
 0x649   :  { %5810 = vmatpush3.msra.mxu0 %v6923_v43  ;;  %5817 = vmatprep.mubr.msk.f32.mxu0 %vm6639_vm0, %v7988_v0 }
 0x64a   :  { %5811 = vmatprep.subr.mxu0 %v7988_v0  ;;  %5821 = vmatpush3.msra.mxu1 %v6857_v30 }
 0x64b   :  { %5812 = vmatpush3.msra.mxu0 %v6933_v45  ;;  %5822 = vmatprep.subr.mxu1 %v7988_v0 }
 0x64c   :  { %5813 = vmatprep.subr.mxu0 %v7988_v0  ;;  %5823 = vmatpush3.msra.mxu1 %v6872_v35 }
 0x64d   :  { %5814 = vmatpush3.msra.mxu0 %v6939_v46  ;;  %5824 = vmatprep.subr.mxu1 %v7988_v0 }
 0x64e   :  { %5815 = vmatprep.subr.mxu0 %v7988_v0  ;;  %5825 = vmatpush3.msra.mxu1 %v6882_v37 }
 0x64f   :  { %5816 = vmatpush3.msra.mxu0 %v6947_v47  ;;  %5826 = vmatprep.subr.mxu1 %v7988_v0 }
 0x650   :  { %5818 = vmatmul.mubr.msk.f32.vlgmr.msra.gmra.mxu0 %vm275_vm1, %v7272_v1  ;;  %5831 = vmatprep.subr.mxu0 %v7988_v0 }
 0x651   :  { %5832 = vmatpush3.msra.mxu0 %v6891_v38  ;;  %5827 = vmatpush3.msra.mxu1 %v6896_v39 }
 0x652   :  { %5833 = vmatprep.subr.mxu0 %v7988_v0  ;;  %5828 = vmatprep.mubr.msk.f32.mxu1 %vm6639_vm0, %v7988_v0 }
 0x653   :  { %5834 = vmatpush3.msra.mxu0 %v6910_v41  ;;  %5839 = vmatprep.mubr.msk.f32.mxu0 %vm6639_vm0, %v7988_v0 }
 0x654   :  { %5835 = vmatprep.subr.mxu0 %v7988_v0  ;;  %5842 = vmatprep.subr.mxu1 %v7988_v0 }
 0x655   :  { %5836 = vmatpush3.msra.mxu0 %v6917_v42 }
 0x656   :  { %5837 = vmatprep.subr.mxu0 %v7988_v0 }
 0x657   :  { %5838 = vmatpush3.msra.mxu0 %v6928_v44 }
 0x658   :  { %5853 = vmatprep.subr.mxu0 %v7988_v0 }
 0x708   :  { %v1947_v30 = vpop.f32.mrf.mxu0  ;;  %v2017_v27 = vpop.f32.mrf.mxu1 }
 0x709   :  { %v1948_v59 = vadd.f32 %v7019_v14, %v1947_v30  ;;  %v2018_v5 = vadd.f32 %v7041_v33, %v2017_v27  ;;  %v7983_v27 = vsub.f32 1.0, %v7317_v54 }
 0x70a   :  { %v5797_v2 = vpop.f32.mrf.mxu0  ;;  %v5808_v58 = vpop.f32.mrf.mxu1 }
 0x70b   :  { %v2091_v63 = vadd.f32 %v1948_v59, %v392_v40  ;;  %v2098_v19 = vadd.f32 %v2018_v5, %v7006_v3  ;;  %v2116_v2 = vmul.f32 %v7983_v27, %v7272_v1 }
 0x70d   :  { %v5108_v6 = vmul.f32 -1.442695, %v2091_v63  ;;  %v5109_v60 = vmul.f32 -1.442695, %v2098_v19 }
 0x70f   :  { %6301 = vpow2.f32 %v5108_v6 }
 0x710   :  { %v2087_v11 = vpop.f32.mrf.mxu0  ;;  %6303 = vpow2.f32 %v5109_v60 }
 0x711   :  { %v2088_v24 = vadd.f32 %v7049_v16, %v2087_v11 }
 0x712   :  { %v5819_v49 = vpop.f32.mrf.mxu0 }
 0x71c   :  { %v6302_v57 = vpop.eup %6301 }
 0x71d   :  { %v2095_v18 = vadd.f32 1.0, %v6302_v57  ;;  %v6304_v21 = vpop.eup %6303 }
 0x71e   :  { %v2102_v48 = vadd.f32 1.0, %v6304_v21 }
 0x71f   :  { %6305 = vrcp.f32 %v2095_v18  ;;  %v7368_v18 = vld [vmem:[#allocation5 + $0x30] sm:$0xff] }
 0x720   :  { %6307 = vrcp.f32 %v2102_v48 }
 0x72c   :  { %v6306_v7 = vpop.eup %6305 }
 0x72d   :  { %v2105_v28 = vmul.f32 %v6306_v7, %v2088_v24  ;;  %v6308_v32 = vpop.eup %6307  ;;  %v7982_v7 = vsub.f32 1.0, %v7368_v18 }
 0x72e   :  { %v2108_v3 = vsub.f32 1.0, %v6308_v32  ;;  %v2110_v55 = vmul.f32 %v6308_v32, %v7272_v1 }
 0x72f   :  { %v2106_v12 = vadd.f32 %v2105_v28, %v7032_v23  ;;  %v6411_v23 = vld [vmem:[#allocation11 + $0x18] sm:$0xff] }
 0x731   :  { %6309 = vtanh.f32 %v2106_v12 }
 0x73e   :  { %v6310_v61 = vpop.eup %6309 }
 0x73f   :  { %v2109_v30 = vmul.f32 %v6310_v61, %v2108_v3  ;;  %v6412_v3 = vld [vmem:[#allocation11 + $0x58] sm:$0xff]  ;;  %v2599_v61 = vld [vmem:[#allocation13 + $0x8] sm:$0xff] }
 0x741   :  { %v2111_v40 = vadd.f32 %v2110_v55, %v2109_v30  ;;  %v6413_v55 = vld [vmem:[#allocation11 + $0x50] sm:$0xff]  ;;  %v2598_v30 = vld [vmem:[#allocation13] sm:$0xff] }
 0x743   :  { %v2114_v59 = vmul.f32 %v7317_v54, %v2111_v40  ;;  %v6414_v40 = vld [vmem:[#allocation11 + $0x48] sm:$0xff] }
 0x745   :  { %v7325_v58 = vadd.f32 %v2116_v2, %v2114_v59  ;;  %v6415_v59 = vld [vmem:[#allocation11 + $0x40] sm:$0xff]  ;;  %v2721_v2 = vld [vmem:[#allocation13 + $0x38] sm:$0xff] }
 0x747   :  { %5829 = vmatmul.mubr.msk.f32.vlgmr.msra.gmra.mxu1 %vm275_vm1, %v7325_v58  ;;  %5840 = vmatmul.mubr.msk.f32.vlgmr.msra.gmra.mxu0 %vm275_vm1, %v7325_v58 }
 0x748   :  { %5843 = vmatpush3.msra.mxu1 %v6923_v43  ;;  %5850 = vmatprep.mubr.msk.f32.mxu1 %vm6639_vm0, %v7988_v0 }
 0x749   :  { %5844 = vmatprep.subr.mxu1 %v7988_v0  ;;  %5854 = vmatpush3.msra.mxu0 %v6411_v23  ;;  %v2720_v23 = vld [vmem:[#allocation13 + $0x30] sm:$0xff] }
 0x74a   :  { %5845 = vmatpush3.msra.mxu1 %v6933_v45  ;;  %5855 = vmatprep.subr.mxu0 %v7988_v0 }
 0x74b   :  { %5846 = vmatprep.subr.mxu1 %v7988_v0  ;;  %5856 = vmatpush3.msra.mxu0 %v6872_v35  ;;  %v2601_v35 = vld [vmem:[#allocation13 + $0x18] sm:$0xff] }
 0x74c   :  { %5847 = vmatpush3.msra.mxu1 %v6939_v46  ;;  %5857 = vmatprep.subr.mxu0 %v7988_v0 }
 0x74d   :  { %5848 = vmatprep.subr.mxu1 %v7988_v0  ;;  %5858 = vmatpush3.msra.mxu0 %v6882_v37 }
 0x74e   :  { %5849 = vmatpush3.msra.mxu1 %v6947_v47  ;;  %5859 = vmatprep.subr.mxu0 %v7988_v0 }
 0x74f   :  { %5851 = vmatmul.mubr.msk.f32.vlgmr.msra.gmra.mxu1 %vm275_vm1, %v7325_v58  ;;  %5864 = vmatprep.subr.mxu1 %v7988_v0 }
 0x750   :  { %5865 = vmatpush3.msra.mxu1 %v6891_v38  ;;  %5860 = vmatpush3.msra.mxu0 %v6896_v39  ;;  %v397_v39 = vadd.f32 %v7026_v17, %v6986_v51 }
 0x751   :  { %5866 = vmatprep.subr.mxu1 %v7988_v0  ;;  %5861 = vmatprep.mubr.msk.f32.mxu0 %vm6639_vm0, %v7988_v0 }
 0x752   :  { %5867 = vmatpush3.msra.mxu1 %v6910_v41  ;;  %5872 = vmatprep.mubr.msk.f32.mxu1 %vm6639_vm0, %v7988_v0 }
 0x753   :  { %5868 = vmatprep.subr.mxu1 %v7988_v0  ;;  %5875 = vmatprep.subr.mxu0 %v7988_v0 }
 0x754   :  { %5869 = vmatpush3.msra.mxu1 %v6917_v42 }
 0x755   :  { %5870 = vmatprep.subr.mxu1 %v7988_v0 }
 0x756   :  { %5871 = vmatpush3.msra.mxu1 %v6928_v44 }
 0x757   :  { %5886 = vmatprep.subr.mxu1 %v2601_v35 }
 0x807   :  { %v2187_v37 = vpop.f32.mrf.mxu1  ;;  %v2257_v38 = vpop.f32.mrf.mxu0 }
 0x808   :  { %v2188_v41 = vadd.f32 %v7019_v14, %v2187_v37  ;;  %v2258_v63 = vadd.f32 %v7041_v33, %v2257_v38  ;;  %v2718_v37 = vld [vmem:[#allocation13 + $0x20] sm:$0xff]  ;;  %v7418_v38 = vld [vmem:[#allocation14 + $0x18] sm:$0xff] }
 0x809   :  { %v5830_v43 = vpop.f32.mrf.mxu1  ;;  %v5841_v45 = vpop.f32.mrf.mxu0 }
 0x80a   :  { %v2331_v46 = vadd.f32 %v2188_v41, %v397_v39  ;;  %v2338_v6 = vadd.f32 %v2258_v63, %v7021_v15  ;;  %v7420_v39 = vld [vmem:[#allocation14 + $0x10] sm:$0xff]  ;;  %v2839_v41 = vld [vmem:[#allocation13 + $0x58] sm:$0xff]  ;;  %v7424_v45 = vld [vmem:[#allocation14 + $0x8] sm:$0xff] }
 0x80b   :  { %v2838_v43 = vld [vmem:[#allocation13 + $0x50] sm:$0xff]  ;;  %v2836_v63 = vld [vmem:[#allocation13 + $0x40] sm:$0xff] }
 0x80c   :  { %v5113_v47 = vmul.f32 -1.442695, %v2331_v46  ;;  %v5114_v5 = vmul.f32 -1.442695, %v2338_v6  ;;  %v2837_v46 = vld [vmem:[#allocation13 + $0x48] sm:$0xff] }
 0x80e   :  { %6311 = vpow2.f32 %v5113_v47  ;;  %v7430_v47 = vld [vmem:[#allocation14] sm:$0xff] }
 0x80f   :  { %v2327_v42 = vpop.f32.mrf.mxu1  ;;  %6313 = vpow2.f32 %v5114_v5 }
 0x810   :  { %v2328_v14 = vadd.f32 %v7049_v16, %v2327_v42  ;;  %v2356_v16 = vmul.f32 %v7982_v7, %v7325_v58 }
 0x811   :  { %v5852_v44 = vpop.f32.mrf.mxu1 }
 0x812   :  { %v6416_v44 = vld [vmem:[%s7973_s9] ss:$0 sm:$0xff] }
 0x813   :  { %v402_v5 = vadd.f32 %v6416_v44, %v6984_v50  ;;  %v7494_v44 = vld [vmem:[#allocation14 + $0x50] sm:$0xff] }
 0x81b   :  { %v6312_v11 = vpop.eup %6311 }
 0x81c   :  { %v2335_v19 = vadd.f32 1.0, %v6312_v11  ;;  %v6314_v49 = vpop.eup %6313  ;;  %v6417_v11 = vld [vmem:[%s7975_s11] ss:$0 sm:$0xff] }
 0x81d   :  { %v2342_v51 = vadd.f32 1.0, %v6314_v49 }
 0x81e   :  { %6315 = vrcp.f32 %v2335_v19 }
 0x81f   :  { %6317 = vrcp.f32 %v2342_v51 }
 0x82b   :  { %v6316_v17 = vpop.eup %6315 }
 0x82c   :  { %v2345_v60 = vmul.f32 %v6316_v17, %v2328_v14  ;;  %v6318_v33 = vpop.eup %6317 }
 0x82d   :  { %v2348_v15 = vsub.f32 1.0, %v6318_v33  ;;  %v2350_v48 = vmul.f32 %v6318_v33, %v7325_v58 }
 0x82e   :  { %v2346_v57 = vadd.f32 %v2345_v60, %v7043_v34  ;;  %v2600_v34 = vld [vmem:[#allocation13 + $0x10] sm:$0xff]  ;;  %v6418_v60 = vld [vmem:[%s7975_s11 + $0x1] ss:$0 sm:$0xff] }
 0x830   :  { %6319 = vtanh.f32 %v2346_v57 }
 0x83d   :  { %v6320_v21 = vpop.eup %6319 }
 0x83e   :  { %v2349_v24 = vmul.f32 %v6320_v21, %v2348_v15 }
 0x840   :  { %v2351_v28 = vadd.f32 %v2350_v48, %v2349_v24 }
 0x842   :  { %v2354_v12 = vmul.f32 %v7368_v18, %v2351_v28 }
 0x844   :  { %v7376_v32 = vadd.f32 %v2356_v16, %v2354_v12  ;;  %v6419_v16 = vld [vmem:[%s7975_s11 + $0x2] ss:$0 sm:$0xff] }
 0x846   :  { %5862 = vmatmul.mubr.msk.f32.vlgmr.msra.gmra.mxu0 %vm275_vm1, %v7376_v32  ;;  %5873 = vmatmul.mubr.msk.f32.vlgmr.msra.gmra.mxu1 %vm275_vm1, %v7376_v32 }
 0x847   :  { %5876 = vmatpush3.msra.mxu0 %v6412_v3  ;;  %5887 = vmatpush3.msra.mxu1 %v2601_v35  ;;  %v2719_v35 = vld [vmem:[#allocation13 + $0x28] sm:$0xff] }
 0x848   :  { %5877 = vmatprep.subr.mxu0 %v7988_v0  ;;  %5888 = vmatprep.subr.mxu1 %v2600_v34 }
 0x849   :  { %5894 = vmatprep.mubr.msk.f32.mxu1 %vm275_vm1, %v7060_v8  ;;  %5878 = vmatpush3.msra.mxu0 %v6413_v55 }
 0x84a   :  { %5889 = vmatpush3.msra.mxu1 %v2600_v34  ;;  %5879 = vmatprep.subr.mxu0 %v7988_v0 }
 0x84b   :  { %5890 = vmatprep.subr.mxu1 %v2599_v61  ;;  %5880 = vmatpush3.msra.mxu0 %v6414_v40 }
 0x84c   :  { %5891 = vmatpush3.msra.mxu1 %v2599_v61  ;;  %5881 = vmatprep.subr.mxu0 %v7988_v0 }
 0x84d   :  { %5892 = vmatprep.subr.mxu1 %v2598_v30  ;;  %5882 = vmatpush3.msra.mxu0 %v6415_v59 }
 0x84e   :  { %5883 = vmatprep.mubr.msk.f32.mxu0 %vm6639_vm0, %v7988_v0  ;;  %5893 = vmatpush3.msra.mxu1 %v2598_v30  ;;  %v7450_v30 = vld [vmem:[#allocation5 + $0x38] sm:$0xff] }
 0x84f   :  { %5884 = vmatmul.mubr.msk.f32.vlgmr.msra.gmra.mxu0 %vm275_vm1, %v7376_v32  ;;  %5895 = vmatmul.mubr.msk.f32.vlgmr.msra.gmra.mxu1 %vm275_vm1, %v7113_v9  ;;  %7993 = vst [vmem:[#allocation23_spill] sm:$0xff] %v7450_v30 }
 0x850   :  { %5906 = vmatprep.subr.mxu0 %v2721_v2  ;;  %5897 = vmatprep.mubr.msk.f32.mxu1 %vm275_vm1, %v7166_v20 }
 0x851   :  { %5907 = vmatpush3.msra.mxu0 %v2721_v2  ;;  %5914 = vmatprep.mubr.msk.f32.mxu0 %vm275_vm1, %v7060_v8 }
 0x852   :  { %5908 = vmatprep.subr.mxu0 %v2720_v23  ;;  %5926 = vmatprep.subr.mxu1 %v2839_v41 }
 0x853   :  { %5909 = vmatpush3.msra.mxu0 %v2720_v23  ;;  %5898 = vmatmul.mubr.msk.f32.gmra.mxu1 %vm275_vm1, %v7219_v29 }
 0x854   :  { %5910 = vmatprep.subr.mxu0 %v2719_v35  ;;  %5900 = vmatprep.mubr.msk.f32.mxu1 %vm275_vm1, %v7272_v1 }
 0x855   :  { %5911 = vmatpush3.msra.mxu0 %v2719_v35  ;;  %5927 = vmatpush3.msra.mxu1 %v2839_v41  ;;  %v7981_v35 = vsub.f32 1.0, %v7450_v30 }
 0x856   :  { %5912 = vmatprep.subr.mxu0 %v2718_v37  ;;  %5928 = vmatprep.subr.mxu1 %v2838_v43 }
 0x857   :  { %5913 = vmatpush3.msra.mxu0 %v2718_v37  ;;  %5901 = vmatmul.mubr.msk.f32.gmra.mxu1 %vm275_vm1, %v7325_v58 }
 0x858   :  { %5915 = vmatmul.mubr.msk.f32.vlgmr.msra.gmra.mxu0 %vm275_vm1, %v7113_v9  ;;  %5903 = vmatprep.mubr.msk.f32.mxu1 %vm275_vm1, %v7376_v32 }
 0x859   :  { %5917 = vmatprep.mubr.msk.f32.mxu0 %vm275_vm1, %v7166_v20  ;;  %5946 = vmatprep.subr.mxu0 %v7988_v0 }
 0x85a   :  { %5947 = vmatpush3.msra.mxu0 %v7418_v38  ;;  %5929 = vmatpush3.msra.mxu1 %v2838_v43  ;;  %v2596_v43 = vmul.f32 %v7981_v35, %v7376_v32 }
 0x85b   :  { %5948 = vmatprep.subr.mxu0 %v7988_v0  ;;  %5930 = vmatprep.subr.mxu1 %v2837_v46 }
 0x85c   :  { %5918 = vmatmul.mubr.msk.f32.gmra.mxu0 %vm275_vm1, %v7219_v29  ;;  %5931 = vmatpush3.msra.mxu1 %v2837_v46 }
 0x85d   :  { %5920 = vmatprep.mubr.msk.f32.mxu0 %vm275_vm1, %v7272_v1  ;;  %5949 = vmatpush3.msra.mxu0 %v7420_v39 }
 0x85e   :  { %5950 = vmatprep.subr.mxu0 %v7988_v0  ;;  %5932 = vmatprep.subr.mxu1 %v2836_v63 }
 0x85f   :  { %5951 = vmatpush3.msra.mxu0 %v7424_v45  ;;  %5933 = vmatpush3.msra.mxu1 %v2836_v63  ;;  %v7469_v63 = vld [vmem:[#allocation14 + $0x38] sm:$0xff] }
 0x860   :  { %5921 = vmatmul.mubr.msk.f32.gmra.mxu0 %vm275_vm1, %v7325_v58  ;;  %5952 = vmatprep.subr.mxu0 %v7988_v0 }
 0x861   :  { %5923 = vmatprep.mubr.msk.f32.mxu0 %vm275_vm1, %v7376_v32  ;;  %5953 = vmatpush3.msra.mxu0 %v7430_v47 }
 0x862   :  { %5957 = vmatprep.subr.mxu0 %v7988_v0  ;;  %5968 = vmatprep.subr.mxu1 %v7988_v0 }
 0x906   :  { %v2427_v42 = vpop.f32.mrf.mxu0  ;;  %v2497_v6 = vpop.f32.mrf.mxu1 }
 0x907   :  { %v2428_v19 = vadd.f32 %v6417_v11, %v2427_v42  ;;  %v2498_v57 = vadd.f32 %v6418_v60, %v2497_v6  ;;  %v7475_v42 = vld [vmem:[#allocation14 + $0x30] sm:$0xff]  ;;  %v7477_v6 = vld [vmem:[#allocation14 + $0x58] sm:$0xff] }
 0x908   :  { %v5863_v49 = vpop.f32.mrf.mxu0  ;;  %v5874_v51 = vpop.f32.mrf.mxu1 }
 0x909   :  { %v2571_v14 = vadd.f32 %v2428_v19, %v402_v5  ;;  %v2578_v33 = vadd.f32 %v2498_v57, %v7012_v10 }
 0x90b   :  { %v5118_v17 = vmul.f32 -1.442695, %v2571_v14  ;;  %v5119_v50 = vmul.f32 -1.442695, %v2578_v33 }
 0x90d   :  { %6321 = vpow2.f32 %v5118_v17 }
 0x90e   :  { %6323 = vpow2.f32 %v5119_v50 }
 0x90f   :  { %v2567_v15 = vpop.f32.mrf.mxu0 }
 0x910   :  { %v2568_v34 = vadd.f32 %v6419_v16, %v2567_v15 }
 0x911   :  { %v5885_v21 = vpop.f32.mrf.mxu0 }
 0x91a   :  { %v6322_v48 = vpop.eup %6321 }
 0x91b   :  { %v2575_v24 = vadd.f32 1.0, %v6322_v48  ;;  %v6324_v28 = vpop.eup %6323  ;;  %v5140_v48 = vld [vmem:[%s7977_s13 + $0x2] ss:$0 sm:$0xff] }
 0x91c   :  { %v2582_v12 = vadd.f32 1.0, %v6324_v28  ;;  %v7583_v28 = vld [vmem:[%s7977_s13] ss:$0 sm:$0xff] }
 0x91d   :  { %6325 = vrcp.f32 %v2575_v24  ;;  %v7578_v24 = vld [vmem:[%s7979_s15] ss:$0 sm:$0xff] }
 0x91e   :  { %6327 = vrcp.f32 %v2582_v12 }
 0x92a   :  { %v6326_v3 = vpop.eup %6325 }
 0x92b   :  { %v2585_v61 = vmul.f32 %v6326_v3, %v2568_v34  ;;  %v6328_v10 = vpop.eup %6327 }
 0x92c   :  { %v2588_v40 = vsub.f32 1.0, %v6328_v10  ;;  %v2590_v23 = vmul.f32 %v6328_v10, %v7376_v32 }
 0x92d   :  { %v2586_v55 = vadd.f32 %v2585_v61, %v7036_v31  ;;  %v7467_v31 = vld [vmem:[%s7969_s5 + $0x8] sm:$0xff] }
 0x92f   :  { %6329 = vtanh.f32 %v2586_v55 }
 0x93c   :  { %v6330_v59 = vpop.eup %6329 }
 0x93d   :  { %v2589_v2 = vmul.f32 %v6330_v59, %v2588_v40 }
 0x93f   :  { %v2591_v37 = vadd.f32 %v2590_v23, %v2589_v2 }
 0x941   :  { %v2594_v41 = vmul.f32 %v7450_v30, %v2591_v37 }
 0x943   :  { %v2597_v46 = vadd.f32 %v2596_v43, %v2594_v41  ;;  %v7594_v41 = vld [vmem:[%s7979_s15 + $0x1] ss:$0 sm:$0xff] }
 0x945   :  { %5904 = vmatmul.mubr.msk.f32.gmra.mxu1 %vm275_vm1, %v2597_v46  ;;  %5924 = vmatmul.mubr.msk.f32.gmra.mxu0 %vm275_vm1, %v2597_v46 }
 0x946   :  { %5934 = vmatprep.mubr.msk.f32.mxu1 %vm275_vm1, %v7060_v8  ;;  %5954 = vmatprep.mubr.msk.f32.mxu0 %vm6639_vm0, %v7988_v0  ;;  %v7483_v8 = vld [vmem:[#allocation14 + $0x28] sm:$0xff] }
 0x949   :  { %5935 = vmatmul.mubr.msk.f32.vlgmr.msra.gmra.mxu1 %vm275_vm1, %v7113_v9  ;;  %5955 = vmatmul.mubr.msk.f32.vlgmr.msra.gmra.mxu0 %vm275_vm1, %v7467_v31  ;;  %v7492_v9 = vld [vmem:[#allocation14 + $0x20] sm:$0xff] }
 0x94a   :  { %5958 = vmatpush3.msra.mxu0 %v7469_v63  ;;  %5937 = vmatprep.mubr.msk.f32.mxu1 %vm275_vm1, %v7166_v20  ;;  %v7503_v20 = vld [vmem:[#allocation14 + $0x48] sm:$0xff] }
 0x94b   :  { %5959 = vmatprep.subr.mxu0 %v7988_v0  ;;  %5965 = vmatprep.mubr.msk.f32.mxu0 %vm6639_vm0, %v7988_v0 }
 0x94c   :  { %5960 = vmatpush3.msra.mxu0 %v7475_v42  ;;  %5969 = vmatpush3.msra.mxu1 %v7477_v6 }
 0x94d   :  { %5961 = vmatprep.subr.mxu0 %v7988_v0  ;;  %5938 = vmatmul.mubr.msk.f32.gmra.mxu1 %vm275_vm1, %v7219_v29  ;;  %v7513_v29 = vld [vmem:[#allocation14 + $0x40] sm:$0xff] }
 0x94e   :  { %5962 = vmatpush3.msra.mxu0 %v7483_v8  ;;  %5940 = vmatprep.mubr.msk.f32.mxu1 %vm275_vm1, %v7272_v1  ;;  %v7544_v1 = vpop.f32.mrf.mxu1 }
 0x94f   :  { %5963 = vmatprep.subr.mxu0 %v7988_v0  ;;  %5970 = vmatprep.subr.mxu1 %v7988_v0 }
 0x950   :  { %5964 = vmatpush3.msra.mxu0 %v7492_v9  ;;  %5971 = vmatpush3.msra.mxu1 %v7494_v44 }
 0x951   :  { %5966 = vmatmul.mubr.msk.f32.vlgmr.msra.gmra.mxu0 %vm275_vm1, %v7467_v31  ;;  %5941 = vmatmul.mubr.msk.f32.gmra.mxu1 %vm275_vm1, %v7325_v58  ;;  %v7546_v58 = vpop.f32.mrf.mxu0 }
 0x952   :  { %5943 = vmatprep.mubr.msk.f32.mxu1 %vm275_vm1, %v7376_v32  ;;  %5972 = vmatprep.subr.mxu1 %v7988_v0  ;;  %v2678_v32 = vpop.f32.mrf.mxu1 }
 0x953   :  { %5973 = vmatpush3.msra.mxu1 %v7503_v20  ;;  %5979 = vmatprep.subr.mxu0 %v7988_v0  ;;  %v2796_v5 = vpop.f32.mrf.mxu0  ;;  %v2679_v34 = vadd.f32 %v7583_v28, %v2678_v32 }
 0x954   :  { %5974 = vmatprep.subr.mxu1 %v7988_v0  ;;  %5980 = vmatpush3.msra.mxu0 %v7418_v38  ;;  %v7548_v11 = vpop.f32.mrf.mxu1 }
 0x955   :  { %5944 = vmatmul.mubr.msk.f32.gmra.mxu1 %vm275_vm1, %v2597_v46  ;;  %5981 = vmatprep.subr.mxu0 %v7988_v0  ;;  %v7550_v19 = vpop.f32.mrf.mxu0  ;;  %v7601_v46 = vld [vmem:[%s7977_s13 + $0x1] ss:$0 sm:$0xff] }
 0x956   :  { %5975 = vmatpush3.msra.mxu1 %v7513_v29  ;;  %5976 = vmatprep.mubr.msk.f32.mxu1 %vm6639_vm0, %v7988_v0  ;;  %v7552_v49 = vpop.f32.mrf.mxu1 }
 0x957   :  { %5990 = vmatprep.subr.mxu1 %v7988_v0  ;;  %5982 = vmatpush3.msra.mxu0 %v7420_v39  ;;  %v7554_v51 = vpop.f32.mrf.mxu0 }
 0x958   :  { %5983 = vmatprep.subr.mxu0 %v7988_v0  ;;  %5987 = vmatprep.mubr.msk.f32.mxu0 %vm6639_vm0, %v7988_v0  ;;  %v7556_v14 = vpop.f32.mrf.mxu1 }
 0x959   :  { %5977 = vmatmul.mubr.msk.f32.vlgmr.msra.gmra.mxu1 %vm275_vm1, %v7467_v31  ;;  %5984 = vmatpush3.msra.mxu0 %v7424_v45  ;;  %v7558_v17 = vpop.f32.mrf.mxu0 }
 0x95a   :  { %5991 = vmatpush3.msra.mxu1 %v7469_v63  ;;  %5985 = vmatprep.subr.mxu0 %v7988_v0  ;;  %v7560_v60 = vpop.f32.mrf.mxu1 }
 0x95b   :  { %5992 = vmatprep.subr.mxu1 %v7988_v0  ;;  %5986 = vmatpush3.msra.mxu0 %v7430_v47  ;;  %v7562_v57 = vpop.f32.mrf.mxu0 }
 0x95c   :  { %5993 = vmatpush3.msra.mxu1 %v7475_v42  ;;  %5998 = vmatprep.mubr.msk.f32.mxu1 %vm6639_vm0, %v7988_v0 }
 0x95d   :  { %5994 = vmatprep.subr.mxu1 %v7988_v0  ;;  %6001 = vmatprep.subr.mxu0 %v7988_v0 }
 0x95e   :  { %5995 = vmatpush3.msra.mxu1 %v7483_v8 }
 0x95f   :  { %5996 = vmatprep.subr.mxu1 %v7988_v0 }
 0x960   :  { %5997 = vmatpush3.msra.mxu1 %v7492_v9 }
 0x961   :  { %6012 = vmatprep.subr.mxu1 %v7988_v0  ;;  %v3227_v0 = vmul.f32 %v7467_v31, %v915_v26  ;;  %v2684_v26 = vadd.f32 %v7544_v1, %v7583_v28 }
 0xa05   :  { %v7564_v33 = vpop.f32.mrf.mxu1  ;;  %v7566_v15 = vpop.f32.mrf.mxu0 }
 0xa07   :  { %v7568_v21 = vpop.f32.mrf.mxu1  ;;  %v7570_v50 = vpop.f32.mrf.mxu0 }
 0xa09   :  { %v5936_v12 = vpop.f32.mrf.mxu1  ;;  %v3049_v16 = vpop.f32.mrf.mxu0 }
 0xa0a   :  { %v7586_v3 = vadd.f32 %v5936_v12, %v5140_v48  ;;  %v3050_v61 = vadd.f32 %v7578_v24, %v3049_v16  ;;  %v2797_v16 = vadd.f32 %v7601_v46, %v2796_v5 }
 0xa0b   :  { %v2914_v55 = vpop.f32.mrf.mxu1  ;;  %v5956_v10 = vpop.f32.mrf.mxu0 }
 0xa0c   :  { %v3205_v40 = vadd.f32 %v3050_v61, %v2679_v34 }
 0xa0d   :  { %v5939_v59 = vpop.f32.mrf.mxu1 }
 0xa0e   :  { %v5158_v2 = vmul.f32 -1.442695, %v3205_v40  ;;  %v7589_v23 = vadd.f32 %v5939_v59, %v5140_v48 }
 0xa0f   :  { %v2924_v37 = vpop.f32.mrf.mxu1 }
 0xa10   :  { %6331 = vpow2.f32 %v5158_v2  ;;  %v7596_v43 = vadd.f32 %v5140_v48, %v2924_v37 }
 0xa11   :  { %v3125_v32 = vpop.f32.mrf.mxu0  ;;  %v5942_v12 = vpop.f32.mrf.mxu1 }
 0xa12   :  { %v3126_v34 = vadd.f32 %v7594_v41, %v3125_v32  ;;  %v7605_v61 = vadd.f32 %v5942_v12, %v5140_v48  ;;  %v7616_v12 = vld [vmem:[%s7979_s15 + $0x2] ss:$0 sm:$0xff]  ;;  %s6640_s15 = smov [#allocation16]  }
 0xa13   :  { %v2934_v10 = vpop.f32.mrf.mxu1  ;;  %v5967_v40 = vpop.f32.mrf.mxu0  ;;  %s5020_s23 = sshll.u32 %s6640_s15, 4  ;;  %s5021_s23 = int_to_ptr.vmem [resolvable:$true] %s5020_s23 }
 0xa14   :  { %v3212_v59 = vadd.f32 %v3126_v34, %v2797_v16  ;;  %v7607_v35 = vadd.f32 %v5140_v48, %v2934_v10  ;;  %v2915_v40 = vadd.f32 %v5140_v48, %v2914_v55  ;;  %s6596_s6 = scalar_lea.vmem %s5021_s23, 1024  ;;  %p6601_p13 = scmp.lt.s32.totalorder %s5021_s23, %s5021_s23 }
 0xa15   :  { %v5945_v2 = vpop.f32.mrf.mxu1  ;;  %p6597_p12 = scmp.ne.s32.totalorder %s5021_s23, %s6596_s6  ;;  %p6602_p0 = scmp.lt.s32.totalorder %s6596_s6, %s6596_s6 }
 0xa16   :  { %v5159_v37 = vmul.f32 -1.442695, %v3212_v59  ;;  %v7609_v7 = vadd.f32 %v5945_v2, %v5140_v48 }
 0xa17   :  { %v2944_v27 = vpop.f32.mrf.mxu1  ;;  %p6603_p1 = por %p6602_p0, %p6601_p13 }
 0xa18   :  { %7994 = vst [vmem:[#allocation24_spill] sm:$0xff] %v7609_v7  ;;  %v7611_v36 = vadd.f32 %v5140_v48, %v2944_v27  ;;  %6333 = vpow2.f32 %v5159_v37  ;;  %v7995_v48 = vmov 0.0  }
 0xa19   :  { %v3201_v22 = vpop.f32.mrf.mxu1  ;;  %p6604_p2 = pnand %p6603_p1, %p6597_p12 }
 0xa1a   :  { %v3202_v34 = vadd.f32 %v7616_v12, %v3201_v22 }
 0xa1b   :  { %v5978_v13 = vpop.f32.mrf.mxu1 }
 0xa1d   :  { %v6332_v5 = vpop.eup %6331 }
 0xa1e   :  { %v3209_v62 = vadd.f32 1.0, %v6332_v5 }
 0xa20   :  { %6335 = vrcp.f32 %v3209_v62 }
 0xa25   :  { %v6334_v32 = vpop.eup %6333 }
 0xa26   :  { %v3216_v16 = vadd.f32 1.0, %v6334_v32  ;;  %v6420_v32 = vld [vmem:[#allocation5] sm:$0xff] }
 0xa28   :  { %6337 = vrcp.f32 %v3216_v16 }
 0xa2d   :  { %v6336_v10 = vpop.eup %6335 }
 0xa2e   :  { %v3219_v27 = vmul.f32 %v6336_v10, %v3202_v34  ;;  %v2802_v10 = vadd.f32 %v7546_v58, %v7601_v46 }
 0xa30   :  { %v3220_v59 = vadd.f32 %v3219_v27, %v2915_v40 }
 0xa32   :  { %6339 = vtanh.f32 %v3220_v59 }
 0xa35   :  { %v6338_v2 = vpop.eup %6337 }
 0xa36   :  { %v3222_v13 = vsub.f32 1.0, %v6338_v2  ;;  %v3224_v62 = vmul.f32 %v6338_v2, %v7467_v31 }
 0xa3f   :  { %v6340_v37 = vpop.eup %6339 }
 0xa40   :  { %v3223_v5 = vmul.f32 %v6340_v37, %v3222_v13 }
 0xa42   :  { %v3225_v30 = vadd.f32 %v3224_v62, %v3223_v5 }
 0xa44   :  { %v3226_v7 = vmul.f32 %v6420_v32, %v3225_v30 }
 0xa46   :  { %v7623_v22 = vadd.f32 %v3227_v0, %v3226_v7 }
 0xa48   :  { %5988 = vmatmul.mubr.msk.f32.vlgmr.msra.gmra.mxu0 %vm275_vm1, %v7623_v22  ;;  %5999 = vmatmul.mubr.msk.f32.vlgmr.msra.gmra.mxu1 %vm275_vm1, %v7623_v22 }
 0xa49   :  { %6002 = vmatpush3.msra.mxu0 %v7477_v6  ;;  %6009 = vmatprep.mubr.msk.f32.mxu0 %vm6639_vm0, %v7995_v48 }
 0xa4a   :  { %6003 = vmatprep.subr.mxu0 %v7995_v48  ;;  %6013 = vmatpush3.msra.mxu1 %v7418_v38 }
 0xa4b   :  { %6004 = vmatpush3.msra.mxu0 %v7494_v44  ;;  %6014 = vmatprep.subr.mxu1 %v7995_v48 }
 0xa4c   :  { %6005 = vmatprep.subr.mxu0 %v7995_v48  ;;  %6015 = vmatpush3.msra.mxu1 %v7420_v39 }
 0xa4d   :  { %6006 = vmatpush3.msra.mxu0 %v7503_v20  ;;  %6016 = vmatprep.subr.mxu1 %v7995_v48 }
 0xa4e   :  { %6007 = vmatprep.subr.mxu0 %v7995_v48  ;;  %6017 = vmatpush3.msra.mxu1 %v7424_v45 }
 0xa4f   :  { %6008 = vmatpush3.msra.mxu0 %v7513_v29  ;;  %6018 = vmatprep.subr.mxu1 %v7995_v48 }
 0xa50   :  { %6010 = vmatmul.mubr.msk.f32.vlgmr.msra.gmra.mxu0 %vm275_vm1, %v7623_v22  ;;  %6023 = vmatprep.subr.mxu0 %v7995_v48 }
 0xa51   :  { %6024 = vmatpush3.msra.mxu0 %v7469_v63  ;;  %6019 = vmatpush3.msra.mxu1 %v7430_v47 }
 0xa52   :  { %6025 = vmatprep.subr.mxu0 %v7995_v48  ;;  %6020 = vmatprep.mubr.msk.f32.mxu1 %vm6639_vm0, %v7995_v48 }
 0xa53   :  { %6026 = vmatpush3.msra.mxu0 %v7475_v42  ;;  %6031 = vmatprep.mubr.msk.f32.mxu0 %vm6639_vm0, %v7995_v48 }
 0xa54   :  { %6027 = vmatprep.subr.mxu0 %v7995_v48  ;;  %6034 = vmatprep.subr.mxu1 %v7995_v48 }
 0xa55   :  { %6028 = vmatpush3.msra.mxu0 %v7483_v8 }
 0xa56   :  { %6029 = vmatprep.subr.mxu0 %v7995_v48 }
 0xa57   :  { %6030 = vmatpush3.msra.mxu0 %v7492_v9 }
 0xa58   :  { %6045 = vmatprep.subr.mxu0 %v7995_v48 }
 0xb08   :  { %v3298_v0 = vpop.f32.mrf.mxu0  ;;  %v3368_v25 = vpop.f32.mrf.mxu1 }
 0xb09   :  { %v3299_v7 = vadd.f32 %v7578_v24, %v3298_v0  ;;  %v3369_v34 = vadd.f32 %v7594_v41, %v3368_v25 }
 0xb0a   :  { %v5989_v30 = vpop.f32.mrf.mxu0  ;;  %v6000_v31 = vpop.f32.mrf.mxu1 }
 0xb0b   :  { %v3442_v55 = vadd.f32 %v3299_v7, %v2684_v26  ;;  %v3449_v27 = vadd.f32 %v3369_v34, %v2802_v10  ;;  %v7996_v10 = vsub.f32 1.0, %v7105_v56 }
 0xb0d   :  { %v5163_v16 = vmul.f32 -1.442695, %v3442_v55  ;;  %v5164_v2 = vmul.f32 -1.442695, %v3449_v27  ;;  %v3464_v27 = vmul.f32 %v7623_v22, %v7996_v10 }
 0xb0f   :  { %6341 = vpow2.f32 %v5163_v16  ;;  %v6421_v16 = vld [vmem:[#allocation5 + $0x8] sm:$0xff] }
 0xb10   :  { %v3438_v40 = vpop.f32.mrf.mxu0  ;;  %6343 = vpow2.f32 %v5164_v2 }
 0xb11   :  { %v3439_v5 = vadd.f32 %v7616_v12, %v3438_v40 }
 0xb12   :  { %v6011_v59 = vpop.f32.mrf.mxu0 }
 0xb13   :  { %v2689_v59 = vadd.f32 %v7583_v28, %v7552_v49 }
 0xb1c   :  { %v6342_v13 = vpop.eup %6341 }
 0xb1d   :  { %v3446_v37 = vadd.f32 1.0, %v6342_v13  ;;  %v6344_v1 = vpop.eup %6343 }
 0xb1e   :  { %v3453_v62 = vadd.f32 1.0, %v6344_v1 }
 0xb1f   :  { %6345 = vrcp.f32 %v3446_v37 }
 0xb20   :  { %6347 = vrcp.f32 %v3453_v62 }
 0xb2c   :  { %v6346_v32 = vpop.eup %6345 }
 0xb2d   :  { %v3456_v0 = vmul.f32 %v6346_v32, %v3439_v5  ;;  %v6348_v58 = vpop.eup %6347  ;;  %v2807_v32 = vadd.f32 %v7601_v46, %v7554_v51 }
 0xb2e   :  { %v3459_v26 = vsub.f32 1.0, %v6348_v58  ;;  %v3461_v30 = vmul.f32 %v6348_v58, %v7623_v22 }
 0xb2f   :  { %v3457_v25 = vadd.f32 %v3456_v0, %v7586_v3 }
 0xb31   :  { %6349 = vtanh.f32 %v3457_v25 }
 0xb3e   :  { %v6350_v7 = vpop.eup %6349 }
 0xb3f   :  { %v3460_v31 = vmul.f32 %v6350_v7, %v3459_v26 }
 0xb41   :  { %v3462_v55 = vadd.f32 %v3461_v30, %v3460_v31 }
 0xb43   :  { %v3463_v34 = vmul.f32 %v6421_v16, %v3462_v55 }
 0xb45   :  { %v7673_v40 = vadd.f32 %v3464_v27, %v3463_v34 }
 0xb47   :  { %6021 = vmatmul.mubr.msk.f32.vlgmr.msra.gmra.mxu1 %vm275_vm1, %v7673_v40  ;;  %6032 = vmatmul.mubr.msk.f32.vlgmr.msra.gmra.mxu0 %vm275_vm1, %v7673_v40 }
 0xb48   :  { %6035 = vmatpush3.msra.mxu1 %v7477_v6  ;;  %6042 = vmatprep.mubr.msk.f32.mxu1 %vm6639_vm0, %v7995_v48 }
 0xb49   :  { %6036 = vmatprep.subr.mxu1 %v7995_v48  ;;  %6046 = vmatpush3.msra.mxu0 %v7418_v38 }
 0xb4a   :  { %6037 = vmatpush3.msra.mxu1 %v7494_v44  ;;  %6047 = vmatprep.subr.mxu0 %v7995_v48 }
 0xb4b   :  { %6038 = vmatprep.subr.mxu1 %v7995_v48  ;;  %6048 = vmatpush3.msra.mxu0 %v7420_v39 }
 0xb4c   :  { %6039 = vmatpush3.msra.mxu1 %v7503_v20  ;;  %6049 = vmatprep.subr.mxu0 %v7995_v48 }
 0xb4d   :  { %6040 = vmatprep.subr.mxu1 %v7995_v48  ;;  %6050 = vmatpush3.msra.mxu0 %v7424_v45 }
 0xb4e   :  { %6041 = vmatpush3.msra.mxu1 %v7513_v29  ;;  %6051 = vmatprep.subr.mxu0 %v7995_v48 }
 0xb4f   :  { %6043 = vmatmul.mubr.msk.f32.vlgmr.msra.gmra.mxu1 %vm275_vm1, %v7673_v40  ;;  %6056 = vmatprep.subr.mxu1 %v7995_v48 }
 0xb50   :  { %6057 = vmatpush3.msra.mxu1 %v7469_v63  ;;  %6052 = vmatpush3.msra.mxu0 %v7430_v47 }
 0xb51   :  { %6058 = vmatprep.subr.mxu1 %v7995_v48  ;;  %6053 = vmatprep.mubr.msk.f32.mxu0 %vm6639_vm0, %v7995_v48 }
 0xb52   :  { %6059 = vmatpush3.msra.mxu1 %v7475_v42  ;;  %6064 = vmatprep.mubr.msk.f32.mxu1 %vm6639_vm0, %v7995_v48 }
 0xb53   :  { %6060 = vmatprep.subr.mxu1 %v7995_v48  ;;  %6067 = vmatprep.subr.mxu0 %v7995_v48 }
 0xb54   :  { %6061 = vmatpush3.msra.mxu1 %v7483_v8 }
 0xb55   :  { %6062 = vmatprep.subr.mxu1 %v7995_v48 }
 0xb56   :  { %6063 = vmatpush3.msra.mxu1 %v7492_v9 }
 0xb57   :  { %6078 = vmatprep.subr.mxu1 %v7995_v48 }
 0xc07   :  { %v3535_v56 = vpop.f32.mrf.mxu1  ;;  %v3605_v3 = vpop.f32.mrf.mxu0 }
 0xc08   :  { %v3536_v2 = vadd.f32 %v7578_v24, %v3535_v56  ;;  %v3606_v5 = vadd.f32 %v7594_v41, %v3605_v3 }
 0xc09   :  { %v6022_v13 = vpop.f32.mrf.mxu1  ;;  %v6033_v37 = vpop.f32.mrf.mxu0 }
 0xc0a   :  { %v3679_v1 = vadd.f32 %v3536_v2, %v2689_v59  ;;  %v3686_v25 = vadd.f32 %v3606_v5, %v2807_v32  ;;  %v6422_v13 = vld [vmem:[#allocation5 + $0x10] sm:$0xff]  ;;  %v2694_v32 = vadd.f32 %v7548_v11, %v7583_v28 }
 0xc0c   :  { %v5168_v62 = vmul.f32 -1.442695, %v3679_v1  ;;  %v5169_v26 = vmul.f32 -1.442695, %v3686_v25  ;;  %v7997_v1 = vsub.f32 1.0, %v7158_v4 }
 0xc0e   :  { %6351 = vpow2.f32 %v5168_v62  ;;  %v3701_v62 = vmul.f32 %v7673_v40, %v7997_v1 }
 0xc0f   :  { %v3675_v0 = vpop.f32.mrf.mxu1  ;;  %6353 = vpow2.f32 %v5169_v26 }
 0xc10   :  { %v3676_v55 = vadd.f32 %v7616_v12, %v3675_v0 }
 0xc11   :  { %v6044_v58 = vpop.f32.mrf.mxu1 }
 0xc1b   :  { %v6352_v7 = vpop.eup %6351 }
 0xc1c   :  { %v3683_v30 = vadd.f32 1.0, %v6352_v7  ;;  %v6354_v49 = vpop.eup %6353 }
 0xc1d   :  { %v3690_v31 = vadd.f32 1.0, %v6354_v49  ;;  %v2812_v49 = vadd.f32 %v7550_v19, %v7601_v46 }
 0xc1e   :  { %6355 = vrcp.f32 %v3683_v30 }
 0xc1f   :  { %6357 = vrcp.f32 %v3690_v31 }
 0xc2b   :  { %v6356_v16 = vpop.eup %6355 }
 0xc2c   :  { %v3693_v34 = vmul.f32 %v6356_v16, %v3676_v55  ;;  %v6358_v51 = vpop.eup %6357 }
 0xc2d   :  { %v3696_v27 = vsub.f32 1.0, %v6358_v51  ;;  %v3698_v3 = vmul.f32 %v6358_v51, %v7673_v40 }
 0xc2e   :  { %v3694_v10 = vadd.f32 %v3693_v34, %v7596_v43 }
 0xc30   :  { %6359 = vtanh.f32 %v3694_v10 }
 0xc3d   :  { %v6360_v56 = vpop.eup %6359 }
 0xc3e   :  { %v3697_v59 = vmul.f32 %v6360_v56, %v3696_v27 }
 0xc40   :  { %v3699_v2 = vadd.f32 %v3698_v3, %v3697_v59 }
 0xc42   :  { %v3700_v37 = vmul.f32 %v6422_v13, %v3699_v2 }
 0xc44   :  { %v7723_v5 = vadd.f32 %v3701_v62, %v3700_v37 }
 0xc46   :  { %6054 = vmatmul.mubr.msk.f32.vlgmr.msra.gmra.mxu0 %vm275_vm1, %v7723_v5  ;;  %6065 = vmatmul.mubr.msk.f32.vlgmr.msra.gmra.mxu1 %vm275_vm1, %v7723_v5 }
 0xc47   :  { %6068 = vmatpush3.msra.mxu0 %v7477_v6  ;;  %6075 = vmatprep.mubr.msk.f32.mxu0 %vm6639_vm0, %v7995_v48 }
 0xc48   :  { %6069 = vmatprep.subr.mxu0 %v7995_v48  ;;  %6079 = vmatpush3.msra.mxu1 %v7418_v38 }
 0xc49   :  { %6070 = vmatpush3.msra.mxu0 %v7494_v44  ;;  %6080 = vmatprep.subr.mxu1 %v7995_v48 }
 0xc4a   :  { %6071 = vmatprep.subr.mxu0 %v7995_v48  ;;  %6081 = vmatpush3.msra.mxu1 %v7420_v39 }
 0xc4b   :  { %6072 = vmatpush3.msra.mxu0 %v7503_v20  ;;  %6082 = vmatprep.subr.mxu1 %v7995_v48 }
 0xc4c   :  { %6073 = vmatprep.subr.mxu0 %v7995_v48  ;;  %6083 = vmatpush3.msra.mxu1 %v7424_v45 }
 0xc4d   :  { %6074 = vmatpush3.msra.mxu0 %v7513_v29  ;;  %6084 = vmatprep.subr.mxu1 %v7995_v48 }
 0xc4e   :  { %6076 = vmatmul.mubr.msk.f32.vlgmr.msra.gmra.mxu0 %vm275_vm1, %v7723_v5  ;;  %6089 = vmatprep.subr.mxu0 %v7995_v48 }
 0xc4f   :  { %6090 = vmatpush3.msra.mxu0 %v7469_v63  ;;  %6085 = vmatpush3.msra.mxu1 %v7430_v47 }
 0xc50   :  { %6091 = vmatprep.subr.mxu0 %v7995_v48  ;;  %6086 = vmatprep.mubr.msk.f32.mxu1 %vm6639_vm0, %v7995_v48 }
 0xc51   :  { %6092 = vmatpush3.msra.mxu0 %v7475_v42  ;;  %6097 = vmatprep.mubr.msk.f32.mxu0 %vm6639_vm0, %v7995_v48 }
 0xc52   :  { %6093 = vmatprep.subr.mxu0 %v7995_v48  ;;  %6100 = vmatprep.subr.mxu1 %v7995_v48 }
 0xc53   :  { %6094 = vmatpush3.msra.mxu0 %v7483_v8 }
 0xc54   :  { %6095 = vmatprep.subr.mxu0 %v7995_v48 }
 0xc55   :  { %6096 = vmatpush3.msra.mxu0 %v7492_v9 }
 0xc56   :  { %6111 = vmatprep.subr.mxu0 %v7995_v48 }
 0xd06   :  { %v3772_v4 = vpop.f32.mrf.mxu0  ;;  %v3842_v43 = vpop.f32.mrf.mxu1 }
 0xd07   :  { %v3773_v0 = vadd.f32 %v7578_v24, %v3772_v4  ;;  %v3843_v30 = vadd.f32 %v7594_v41, %v3842_v43  ;;  %v6423_v43 = vld [vmem:[#allocation5 + $0x18] sm:$0xff] }
 0xd08   :  { %v6055_v25 = vpop.f32.mrf.mxu0  ;;  %v6066_v58 = vpop.f32.mrf.mxu1 }
 0xd09   :  { %v3916_v26 = vadd.f32 %v3773_v0, %v2694_v32  ;;  %v3923_v55 = vadd.f32 %v3843_v30, %v2812_v49  ;;  %v7998_v0 = vsub.f32 1.0, %v7211_v52 }
 0xd0b   :  { %v5173_v7 = vmul.f32 -1.442695, %v3916_v26  ;;  %v5174_v34 = vmul.f32 -1.442695, %v3923_v55  ;;  %v3938_v25 = vmul.f32 %v7723_v5, %v7998_v0  ;;  %v2699_v26 = vadd.f32 %v7583_v28, %v7560_v60  ;;  %v6424_v0 = vld [vmem:[#allocation5 + $0x20] sm:$0xff] }
 0xd0d   :  { %6361 = vpow2.f32 %v5173_v7 }
 0xd0e   :  { %v3912_v31 = vpop.f32.mrf.mxu0  ;;  %6363 = vpow2.f32 %v5174_v34  ;;  %v2817_v34 = vadd.f32 %v7601_v46, %v7562_v57 }
 0xd0f   :  { %v3913_v56 = vadd.f32 %v7616_v12, %v3912_v31 }
 0xd10   :  { %v6077_v16 = vpop.f32.mrf.mxu0 }
 0xd1a   :  { %v6362_v10 = vpop.eup %6361 }
 0xd1b   :  { %v3920_v51 = vadd.f32 1.0, %v6362_v10  ;;  %v6364_v11 = vpop.eup %6363 }
 0xd1c   :  { %v3927_v27 = vadd.f32 1.0, %v6364_v11 }
 0xd1d   :  { %6365 = vrcp.f32 %v3920_v51 }
 0xd1e   :  { %6367 = vrcp.f32 %v3927_v27 }
 0xd2a   :  { %v6366_v3 = vpop.eup %6365 }
 0xd2b   :  { %v3930_v59 = vmul.f32 %v6366_v3, %v3913_v56  ;;  %v6368_v19 = vpop.eup %6367 }
 0xd2c   :  { %v3933_v13 = vsub.f32 1.0, %v6368_v19  ;;  %v3935_v1 = vmul.f32 %v6368_v19, %v7723_v5 }
 0xd2d   :  { %v3931_v2 = vadd.f32 %v3930_v59, %v7589_v23 }
 0xd2f   :  { %6369 = vtanh.f32 %v3931_v2 }
 0xd3c   :  { %v6370_v37 = vpop.eup %6369 }
 0xd3d   :  { %v3934_v62 = vmul.f32 %v6370_v37, %v3933_v13 }
 0xd3f   :  { %v3936_v4 = vadd.f32 %v3935_v1, %v3934_v62 }
 0xd41   :  { %v3937_v32 = vmul.f32 %v6423_v43, %v3936_v4 }
 0xd43   :  { %v7773_v58 = vadd.f32 %v3938_v25, %v3937_v32 }
 0xd45   :  { %6087 = vmatmul.mubr.msk.f32.vlgmr.msra.gmra.mxu1 %vm275_vm1, %v7773_v58  ;;  %6098 = vmatmul.mubr.msk.f32.vlgmr.msra.gmra.mxu0 %vm275_vm1, %v7773_v58 }
 0xd46   :  { %6101 = vmatpush3.msra.mxu1 %v7477_v6  ;;  %6108 = vmatprep.mubr.msk.f32.mxu1 %vm6639_vm0, %v7995_v48 }
 0xd47   :  { %6102 = vmatprep.subr.mxu1 %v7995_v48  ;;  %6112 = vmatpush3.msra.mxu0 %v7418_v38 }
 0xd48   :  { %6103 = vmatpush3.msra.mxu1 %v7494_v44  ;;  %6113 = vmatprep.subr.mxu0 %v7995_v48 }
 0xd49   :  { %6104 = vmatprep.subr.mxu1 %v7995_v48  ;;  %6114 = vmatpush3.msra.mxu0 %v7420_v39 }
 0xd4a   :  { %6105 = vmatpush3.msra.mxu1 %v7503_v20  ;;  %6115 = vmatprep.subr.mxu0 %v7995_v48 }
 0xd4b   :  { %6106 = vmatprep.subr.mxu1 %v7995_v48  ;;  %6116 = vmatpush3.msra.mxu0 %v7424_v45 }
 0xd4c   :  { %6107 = vmatpush3.msra.mxu1 %v7513_v29  ;;  %6117 = vmatprep.subr.mxu0 %v7995_v48 }
 0xd4d   :  { %6109 = vmatmul.mubr.msk.f32.vlgmr.msra.gmra.mxu1 %vm275_vm1, %v7773_v58  ;;  %6122 = vmatprep.subr.mxu1 %v7995_v48 }
 0xd4e   :  { %6123 = vmatpush3.msra.mxu1 %v7469_v63  ;;  %6118 = vmatpush3.msra.mxu0 %v7430_v47 }
 0xd4f   :  { %6124 = vmatprep.subr.mxu1 %v7995_v48  ;;  %6119 = vmatprep.mubr.msk.f32.mxu0 %vm6639_vm0, %v7995_v48 }
 0xd50   :  { %6125 = vmatpush3.msra.mxu1 %v7475_v42  ;;  %6130 = vmatprep.mubr.msk.f32.mxu1 %vm6639_vm0, %v7995_v48 }
 0xd51   :  { %6126 = vmatprep.subr.mxu1 %v7995_v48  ;;  %6133 = vmatprep.subr.mxu0 %v7995_v48 }
 0xd52   :  { %6127 = vmatpush3.msra.mxu1 %v7483_v8 }
 0xd53   :  { %6128 = vmatprep.subr.mxu1 %v7995_v48 }
 0xd54   :  { %6129 = vmatpush3.msra.mxu1 %v7492_v9 }
 0xd55   :  { %6144 = vmatprep.subr.mxu1 %v7995_v48 }
 0xe05   :  { %v4009_v52 = vpop.f32.mrf.mxu1  ;;  %v4079_v23 = vpop.f32.mrf.mxu0 }
 0xe06   :  { %v4010_v7 = vadd.f32 %v7578_v24, %v4009_v52  ;;  %v4080_v16 = vadd.f32 %v7594_v41, %v4079_v23  ;;  %v7999_v52 = vsub.f32 1.0, %v7264_v53 }
 0xe07   :  { %v6088_v30 = vpop.f32.mrf.mxu1  ;;  %v6099_v49 = vpop.f32.mrf.mxu0 }
 0xe08   :  { %v4153_v31 = vadd.f32 %v4010_v7, %v2699_v26  ;;  %v4160_v51 = vadd.f32 %v4080_v16, %v2817_v34  ;;  %v4175_v23 = vmul.f32 %v7773_v58, %v7999_v52 }
 0xe0a   :  { %v5178_v55 = vmul.f32 -1.442695, %v4153_v31  ;;  %v5179_v27 = vmul.f32 -1.442695, %v4160_v51  ;;  %v2822_v31 = vadd.f32 %v7558_v17, %v7601_v46 }
 0xe0c   :  { %6371 = vpow2.f32 %v5178_v55 }
 0xe0d   :  { %v4149_v10 = vpop.f32.mrf.mxu1  ;;  %6373 = vpow2.f32 %v5179_v27 }
 0xe0e   :  { %v4150_v2 = vadd.f32 %v7616_v12, %v4149_v10 }
 0xe0f   :  { %v6110_v11 = vpop.f32.mrf.mxu1 }
 0xe19   :  { %v6372_v56 = vpop.eup %6371 }
 0xe1a   :  { %v4157_v3 = vadd.f32 1.0, %v6372_v56  ;;  %v6374_v60 = vpop.eup %6373 }
 0xe1b   :  { %v4164_v59 = vadd.f32 1.0, %v6374_v60 }
 0xe1c   :  { %6375 = vrcp.f32 %v4157_v3 }
 0xe1d   :  { %6377 = vrcp.f32 %v4164_v59 }
 0xe29   :  { %v6376_v19 = vpop.eup %6375 }
 0xe2a   :  { %v4167_v13 = vmul.f32 %v6376_v19, %v4150_v2  ;;  %v6378_v57 = vpop.eup %6377 }
 0xe2b   :  { %v4170_v1 = vsub.f32 1.0, %v6378_v57  ;;  %v4172_v4 = vmul.f32 %v6378_v57, %v7773_v58 }
 0xe2c   :  { %v4168_v37 = vadd.f32 %v4167_v13, %v7607_v35 }
 0xe2e   :  { %6379 = vtanh.f32 %v4168_v37 }
 0xe3b   :  { %v6380_v62 = vpop.eup %6379 }
 0xe3c   :  { %v4171_v43 = vmul.f32 %v6380_v62, %v4170_v1  ;;  %v6425_v1 = vld [vmem:[#allocation5 + $0x28] sm:$0xff] }
 0xe3e   :  { %v4173_v32 = vadd.f32 %v4172_v4, %v4171_v43  ;;  %v8000_v4 = vsub.f32 1.0, %v7317_v54  ;;  %v6427_v54 = vld [vmem:[#allocation14 + $0x10] sm:$0xff] }
 0xe40   :  { %v4174_v25 = vmul.f32 %v6424_v0, %v4173_v32 }
 0xe42   :  { %v7823_v26 = vadd.f32 %v4175_v23, %v4174_v25 }
 0xe44   :  { %6120 = vmatmul.mubr.msk.f32.vlgmr.msra.gmra.mxu0 %vm275_vm1, %v7823_v26  ;;  %6131 = vmatmul.mubr.msk.f32.vlgmr.msra.gmra.mxu1 %vm275_vm1, %v7823_v26  ;;  %v4412_v43 = vmul.f32 %v7823_v26, %v8000_v4 }
 0xe45   :  { %6134 = vmatpush3.msra.mxu0 %v7477_v6  ;;  %6141 = vmatprep.mubr.msk.f32.mxu0 %vm6639_vm0, %v7995_v48 }
 0xe46   :  { %6135 = vmatprep.subr.mxu0 %v7995_v48  ;;  %6145 = vmatpush3.msra.mxu1 %v7418_v38 }
 0xe47   :  { %6136 = vmatpush3.msra.mxu0 %v7494_v44  ;;  %6146 = vmatprep.subr.mxu1 %v7995_v48 }
 0xe48   :  { %6137 = vmatprep.subr.mxu0 %v7995_v48  ;;  %6147 = vmatpush3.msra.mxu1 %v7420_v39  ;;  %v2704_v39 = vadd.f32 %v7556_v14, %v7583_v28 }
 0xe49   :  { %6138 = vmatpush3.msra.mxu0 %v7503_v20  ;;  %6148 = vmatprep.subr.mxu1 %v7995_v48 }
 0xe4a   :  { %6139 = vmatprep.subr.mxu0 %v7995_v48  ;;  %6149 = vmatpush3.msra.mxu1 %v7424_v45 }
 0xe4b   :  { %6140 = vmatpush3.msra.mxu0 %v7513_v29  ;;  %6150 = vmatprep.subr.mxu1 %v7995_v48 }
 0xe4c   :  { %6142 = vmatmul.mubr.msk.f32.vlgmr.msra.gmra.mxu0 %vm275_vm1, %v7823_v26  ;;  %6155 = vmatprep.subr.mxu0 %v7995_v48 }
 0xe4d   :  { %6156 = vmatpush3.msra.mxu0 %v7469_v63  ;;  %6151 = vmatpush3.msra.mxu1 %v7430_v47 }
 0xe4e   :  { %6157 = vmatprep.subr.mxu0 %v7995_v48  ;;  %6152 = vmatprep.mubr.msk.f32.mxu1 %vm6639_vm0, %v7995_v48 }
 0xe4f   :  { %6158 = vmatpush3.msra.mxu0 %v7475_v42  ;;  %6163 = vmatprep.mubr.msk.f32.mxu0 %vm6639_vm0, %v7995_v48 }
 0xe50   :  { %6159 = vmatprep.subr.mxu0 %v7995_v48  ;;  %6166 = vmatprep.subr.mxu1 %v7995_v48 }
 0xe51   :  { %6160 = vmatpush3.msra.mxu0 %v7483_v8 }
 0xe52   :  { %6161 = vmatprep.subr.mxu0 %v7995_v48 }
 0xe53   :  { %6162 = vmatpush3.msra.mxu0 %v7492_v9 }
 0xe54   :  { %6177 = vmatprep.subr.mxu0 %v7995_v48 }
 0xf04   :  { %v4246_v53 = vpop.f32.mrf.mxu0  ;;  %v4316_v38 = vpop.f32.mrf.mxu1 }
 0xf05   :  { %v4247_v45 = vadd.f32 %v7578_v24, %v4246_v53  ;;  %v4317_v49 = vadd.f32 %v7594_v41, %v4316_v38 }
 0xf06   :  { %v6121_v47 = vpop.f32.mrf.mxu0  ;;  %v6132_v35 = vpop.f32.mrf.mxu1 }
 0xf07   :  { %v4390_v7 = vadd.f32 %v4247_v45, %v2704_v39  ;;  %v4397_v16 = vadd.f32 %v4317_v49, %v2822_v31 }
 0xf09   :  { %v5183_v30 = vmul.f32 -1.442695, %v4390_v7  ;;  %v5184_v10 = vmul.f32 -1.442695, %v4397_v16 }
 0xf0b   :  { %6381 = vpow2.f32 %v5183_v30 }
 0xf0c   :  { %v4386_v55 = vpop.f32.mrf.mxu0  ;;  %6383 = vpow2.f32 %v5184_v10 }
 0xf0d   :  { %v4387_v56 = vadd.f32 %v7616_v12, %v4386_v55 }
 0xf0e   :  { %v6143_v34 = vpop.f32.mrf.mxu0 }
 0xf18   :  { %v6382_v51 = vpop.eup %6381 }
 0xf19   :  { %v4394_v11 = vadd.f32 1.0, %v6382_v51  ;;  %v6384_v14 = vpop.eup %6383 }
 0xf1a   :  { %v4401_v27 = vadd.f32 1.0, %v6384_v14 }
 0xf1b   :  { %6385 = vrcp.f32 %v4394_v11 }
 0xf1c   :  { %6387 = vrcp.f32 %v4401_v27  ;;  %v6430_v27 = vld [vmem:[#allocation5 + $0x30] sm:$0xff] }
 0xf28   :  { %v6386_v3 = vpop.eup %6385 }
 0xf29   :  { %v4404_v60 = vmul.f32 %v6386_v3, %v4387_v56  ;;  %v6388_v17 = vpop.eup %6387  ;;  %v8001_v3 = vsub.f32 1.0, %v7368_v18  ;;  %v6432_v18 = vld [vmem:[#allocation14 + $0x50] sm:$0xff] }
 0xf2a   :  { %v4407_v2 = vsub.f32 1.0, %v6388_v17  ;;  %v4409_v13 = vmul.f32 %v6388_v17, %v7823_v26  ;;  %v4890_v17 = vld [vmem:[#allocation8 + $0x10] sm:$0xff] }
 0xf2b   :  { %v4405_v59 = vadd.f32 %v4404_v60, %v7605_v61  ;;  %v6426_v61 = vld [vmem:[#allocation14 + $0x18] sm:$0xff] }
 0xf2d   :  { %6389 = vtanh.f32 %v4405_v59 }
 0xf3a   :  { %v6390_v19 = vpop.eup %6389 }
 0xf3b   :  { %v4408_v37 = vmul.f32 %v6390_v19, %v4407_v2  ;;  %v4889_v2 = vld [vmem:[#allocation8 + $0x8] sm:$0xff]  ;;  %v4888_v19 = vld [vmem:[#allocation8] sm:$0xff] }
 0xf3d   :  { %v4410_v57 = vadd.f32 %v4409_v13, %v4408_v37  ;;  %v6433_v13 = vld [vmem:[#allocation14 + $0x48] sm:$0xff]  ;;  %v6434_v37 = vld [vmem:[#allocation14 + $0x40] sm:$0xff] }
 0xf3f   :  { %v4411_v62 = vmul.f32 %v6425_v1, %v4410_v57 }
 0xf41   :  { %v7873_v32 = vadd.f32 %v4412_v43, %v4411_v62  ;;  %v5195_v43 = vld [vmem:[#allocation10] ss:$0 sm:$0xff] }
 0xf43   :  { %6153 = vmatmul.mubr.msk.f32.vlgmr.msra.gmra.mxu1 %vm275_vm1, %v7873_v32  ;;  %6164 = vmatmul.mubr.msk.f32.vlgmr.msra.gmra.mxu0 %vm275_vm1, %v7873_v32  ;;  %v4649_v60 = vmul.f32 %v7873_v32, %v8001_v3 }
 0xf44   :  { %6167 = vmatpush3.msra.mxu1 %v7477_v6  ;;  %6174 = vmatprep.mubr.msk.f32.mxu1 %vm6639_vm0, %v7995_v48  ;;  %v6428_v6 = vld [vmem:[#allocation14 + $0x8] sm:$0xff] }
 0xf45   :  { %6168 = vmatprep.subr.mxu1 %v7995_v48  ;;  %6178 = vmatpush3.msra.mxu0 %v6426_v61 }
 0xf46   :  { %6169 = vmatpush3.msra.mxu1 %v7494_v44  ;;  %6179 = vmatprep.subr.mxu0 %v7995_v48  ;;  %v6429_v44 = vld [vmem:[#allocation14] sm:$0xff] }
 0xf47   :  { %6170 = vmatprep.subr.mxu1 %v7995_v48  ;;  %6180 = vmatpush3.msra.mxu0 %v6427_v54 }
 0xf48   :  { %6171 = vmatpush3.msra.mxu1 %v7503_v20  ;;  %6181 = vmatprep.subr.mxu0 %v7995_v48 }
 0xf49   :  { %6172 = vmatprep.subr.mxu1 %v7995_v48  ;;  %6182 = vmatpush3.msra.mxu0 %v6428_v6 }
 0xf4a   :  { %6173 = vmatpush3.msra.mxu1 %v7513_v29  ;;  %6183 = vmatprep.subr.mxu0 %v7995_v48 }
 0xf4b   :  { %6175 = vmatmul.mubr.msk.f32.vlgmr.msra.gmra.mxu1 %vm275_vm1, %v7873_v32  ;;  %6188 = vmatprep.subr.mxu1 %v7995_v48 }
 0xf4c   :  { %6189 = vmatpush3.msra.mxu1 %v7469_v63  ;;  %6184 = vmatpush3.msra.mxu0 %v6429_v44  ;;  %v4891_v63 = vld [vmem:[#allocation8 + $0x18] sm:$0xff] }
 0xf4d   :  { %6190 = vmatprep.subr.mxu1 %v7995_v48  ;;  %6185 = vmatprep.mubr.msk.f32.mxu0 %vm6639_vm0, %v7995_v48 }
 0xf4e   :  { %6191 = vmatpush3.msra.mxu1 %v7475_v42  ;;  %6196 = vmatprep.mubr.msk.f32.mxu1 %vm6639_vm0, %v7995_v48  ;;  %v2709_v42 = vadd.f32 %v7583_v28, %v7568_v21 }
 0xf4f   :  { %6192 = vmatprep.subr.mxu1 %v7995_v48  ;;  %6199 = vmatprep.subr.mxu0 %v7995_v48 }
 0xf50   :  { %6193 = vmatpush3.msra.mxu1 %v7483_v8  ;;  %v2827_v8 = vadd.f32 %v7601_v46, %v7570_v50 }
 0xf51   :  { %6194 = vmatprep.subr.mxu1 %v7995_v48 }
 0xf52   :  { %6195 = vmatpush3.msra.mxu1 %v7492_v9 }
 0xf53   :  { %6210 = vmatprep.subr.mxu1 %v4891_v63 }
0x1003   :  { %v4483_v20 = vpop.f32.mrf.mxu1  ;;  %v4553_v29 = vpop.f32.mrf.mxu0 }
0x1004   :  { %v4484_v0 = vadd.f32 %v7578_v24, %v4483_v20  ;;  %v4554_v38 = vadd.f32 %v7594_v41, %v4553_v29 }
0x1005   :  { %v6154_v25 = vpop.f32.mrf.mxu1  ;;  %v6165_v52 = vpop.f32.mrf.mxu0 }
0x1006   :  { %v4627_v23 = vadd.f32 %v4484_v0, %v2709_v42  ;;  %v4634_v39 = vadd.f32 %v4554_v38, %v2827_v8 }
0x1008   :  { %v5188_v53 = vmul.f32 -1.442695, %v4627_v23  ;;  %v5189_v47 = vmul.f32 -1.442695, %v4634_v39  ;;  %v8002_v39 = vld [vmem:[#allocation24_spill] sm:$0xff] }
0x100a   :  { %6391 = vpow2.f32 %v5188_v53 }
0x100b   :  { %v4623_v9 = vpop.f32.mrf.mxu1  ;;  %6393 = vpow2.f32 %v5189_v47 }
0x100c   :  { %v4624_v49 = vadd.f32 %v7616_v12, %v4623_v9 }
0x100d   :  { %v6176_v45 = vpop.f32.mrf.mxu1 }
0x1017   :  { %v6392_v35 = vpop.eup %6391 }
0x1018   :  { %v4631_v7 = vadd.f32 1.0, %v6392_v35  ;;  %v6394_v21 = vpop.eup %6393 }
0x1019   :  { %v4638_v30 = vadd.f32 1.0, %v6394_v21 }
0x101a   :  { %6395 = vrcp.f32 %v4631_v7 }
0x101b   :  { %6397 = vrcp.f32 %v4638_v30 }
0x1027   :  { %v6396_v31 = vpop.eup %6395 }
0x1028   :  { %v4641_v55 = vmul.f32 %v6396_v31, %v4624_v49  ;;  %v6398_v50 = vpop.eup %6397  ;;  %v6435_v31 = vld [vmem:[#allocation5 + $0x38] sm:$0xff] }
0x1029   :  { %v4644_v34 = vsub.f32 1.0, %v6398_v50  ;;  %v4646_v51 = vmul.f32 %v6398_v50, %v7873_v32 }
0x102a   :  { %v4642_v16 = vadd.f32 %v4641_v55, %v7611_v36  ;;  %v6431_v36 = vld [vmem:[#allocation14 + $0x58] sm:$0xff] }
0x102c   :  { %6399 = vtanh.f32 %v4642_v16  ;;  %v8003_v16 = vld [vmem:[#allocation23_spill] sm:$0xff] }
0x102d   :  { %v8004_v50 = vsub.f32 1.0, %v8003_v16 }
0x1039   :  { %v6400_v10 = vpop.eup %6399 }
0x103a   :  { %v4645_v11 = vmul.f32 %v6400_v10, %v4644_v34 }
0x103c   :  { %v4647_v14 = vadd.f32 %v4646_v51, %v4645_v11 }
0x103e   :  { %v4648_v56 = vmul.f32 %v6430_v27, %v4647_v14 }
0x1040   :  { %v7918_v59 = vadd.f32 %v4649_v60, %v4648_v56 }
0x1042   :  { %6186 = vmatmul.mubr.msk.f32.vlgmr.msra.gmra.mxu0 %vm275_vm1, %v7918_v59  ;;  %6197 = vmatmul.mubr.msk.f32.vlgmr.msra.gmra.mxu1 %vm275_vm1, %v7918_v59  ;;  %v4886_v34 = vmul.f32 %v7918_v59, %v8004_v50 }
0x1043   :  { %6200 = vmatpush3.msra.mxu0 %v6431_v36  ;;  %6211 = vmatpush3.msra.mxu1 %v4891_v63 }
0x1044   :  { %6201 = vmatprep.subr.mxu0 %v7995_v48  ;;  %6212 = vmatprep.subr.mxu1 %v4890_v17 }
0x1045   :  { %6218 = vmatprep.mubr.msk.f32.mxu1 %vm275_vm1, %v7623_v22  ;;  %6202 = vmatpush3.msra.mxu0 %v6432_v18 }
0x1046   :  { %6213 = vmatpush3.msra.mxu1 %v4890_v17  ;;  %6203 = vmatprep.subr.mxu0 %v7995_v48 }
0x1047   :  { %6214 = vmatprep.subr.mxu1 %v4889_v2  ;;  %6204 = vmatpush3.msra.mxu0 %v6433_v13 }
0x1048   :  { %6215 = vmatpush3.msra.mxu1 %v4889_v2  ;;  %6205 = vmatprep.subr.mxu0 %v7995_v48 }
0x1049   :  { %6216 = vmatprep.subr.mxu1 %v4888_v19  ;;  %6206 = vmatpush3.msra.mxu0 %v6434_v37 }
0x104a   :  { %6207 = vmatprep.mubr.msk.f32.mxu0 %vm6639_vm0, %v7995_v48  ;;  %6217 = vmatpush3.msra.mxu1 %v4888_v19 }
0x104b   :  { %6208 = vmatmul.mubr.msk.f32.vlgmr.msra.gmra.mxu0 %vm275_vm1, %v7918_v59  ;;  %6219 = vmatmul.mubr.msk.f32.vlgmr.msra.gmra.mxu1 %vm275_vm1, %v7673_v40  ;;  %v2714_v40 = vadd.f32 %v7564_v33, %v7583_v28 }
0x104c   :  { %6221 = vmatprep.mubr.msk.f32.mxu1 %vm275_vm1, %v7723_v5 }
0x104f   :  { %6222 = vmatmul.mubr.msk.f32.gmra.mxu1 %vm275_vm1, %v7773_v58 }
0x1050   :  { %6224 = vmatprep.mubr.msk.f32.mxu1 %vm275_vm1, %v7823_v26  ;;  %v2832_v26 = vadd.f32 %v7566_v15, %v7601_v46 }
0x1053   :  { %6225 = vmatmul.mubr.msk.f32.gmra.mxu1 %vm275_vm1, %v7873_v32 }
0x1054   :  { %6227 = vmatprep.mubr.msk.f32.mxu1 %vm275_vm1, %v7918_v59 }
0x1102   :  { %v4720_v22 = vpop.f32.mrf.mxu0  ;;  %v4790_v48 = vpop.f32.mrf.mxu1 }
0x1103   :  { %v4721_v57 = vadd.f32 %v7578_v24, %v4720_v22  ;;  %v4791_v4 = vadd.f32 %v7594_v41, %v4790_v48 }
0x1104   :  { %v6187_v5 = vpop.f32.mrf.mxu0  ;;  %v6198_v1 = vpop.f32.mrf.mxu1 }
0x1105   :  { %v4864_v62 = vadd.f32 %v4721_v57, %v2714_v40  ;;  %v4871_v32 = vadd.f32 %v4791_v4, %v2832_v26 }
0x1107   :  { %v5193_v58 = vmul.f32 -1.442695, %v4864_v62  ;;  %v5194_v24 = vmul.f32 -1.442695, %v4871_v32 }
0x1109   :  { %6401 = vpow2.f32 %v5193_v58 }
0x110a   :  { %6403 = vpow2.f32 %v5194_v24 }
0x110b   :  { %v4860_v61 = vpop.f32.mrf.mxu0  ;;  %v6220_v54 = vpop.f32.mrf.mxu1 }
0x110c   :  { %v4974_v6 = vadd.f32 %v6220_v54, %v5195_v43  ;;  %v4861_v38 = vadd.f32 %v7616_v12, %v4860_v61 }
0x110d   :  { %v6209_v44 = vpop.f32.mrf.mxu0  ;;  %v4968_v63 = vpop.f32.mrf.mxu1 }
0x110e   :  { %5008 = vst [vmem:[#allocation16 + $0x8] sm:$0xff] %v4974_v6  ;;  %v4969_v33 = vadd.f32 %v5195_v43, %v4968_v63 }
0x110f   :  { %v6223_v28 = vpop.f32.mrf.mxu1 }
0x1110   :  { %5007 = vst [vmem:[#allocation16] sm:$0xff] %v4969_v33  ;;  %v4984_v20 = vadd.f32 %v6223_v28, %v5195_v43 }
0x1111   :  { %v4978_v29 = vpop.f32.mrf.mxu1 }
0x1112   :  { %5010 = vst [vmem:[#allocation16 + $0x18] sm:$0xff] %v4984_v20  ;;  %v4979_v41 = vadd.f32 %v5195_v43, %v4978_v29 }
0x1113   :  { %v6226_v42 = vpop.f32.mrf.mxu1 }
0x1114   :  { %5009 = vst [vmem:[#allocation16 + $0x10] sm:$0xff] %v4979_v41  ;;  %v4994_v15 = vadd.f32 %v6226_v42, %v5195_v43 }
0x1115   :  { %v4988_v46 = vpop.f32.mrf.mxu1 }
0x1116   :  { %v6402_v0 = vpop.eup %6401  ;;  %5012 = vst [vmem:[#allocation16 + $0x28] sm:$0xff] %v4994_v15  ;;  %v4989_v25 = vadd.f32 %v5195_v43, %v4988_v46 }
0x1117   :  { %v4868_v52 = vadd.f32 1.0, %v6402_v0  ;;  %v6404_v23 = vpop.eup %6403 }
0x1118   :  { %5011 = vst [vmem:[#allocation16 + $0x20] sm:$0xff] %v4989_v25  ;;  %v4875_v53 = vadd.f32 1.0, %v6404_v23 }
0x1119   :  { %6405 = vrcp.f32 %v4868_v52 }
0x111a   :  { %6407 = vrcp.f32 %v4875_v53 }
0x1126   :  { %v6406_v8 = vpop.eup %6405 }
0x1127   :  { %v4878_v9 = vmul.f32 %v6406_v8, %v4861_v38  ;;  %v6408_v47 = vpop.eup %6407 }
0x1128   :  { %v4881_v35 = vsub.f32 1.0, %v6408_v47  ;;  %v4883_v30 = vmul.f32 %v6408_v47, %v7918_v59 }
0x1129   :  { %v4879_v45 = vadd.f32 %v4878_v9, %v8002_v39 }
0x112b   :  { %6409 = vtanh.f32 %v4879_v45 }
0x1138   :  { %v6410_v7 = vpop.eup %6409 }
0x1139   :  { %v4882_v21 = vmul.f32 %v6410_v7, %v4881_v35 }
0x113b   :  { %v4884_v49 = vadd.f32 %v4883_v30, %v4882_v21 }
0x113d   :  { %v4885_v55 = vmul.f32 %v6435_v31, %v4884_v49 }
0x113f   :  { %v4887_v12 = vadd.f32 %v4886_v34, %v4885_v55 }
0x1141   :  { %6228 = vmatmul.mubr.msk.f32.gmra.mxu1 %vm275_vm1, %v4887_v12 }
0x1201   :  { %v6229_v10 = vpop.f32.mrf.mxu1 }
0x1202   :  { %v5004_v51 = vadd.f32 %v6229_v10, %v5195_v43 }
0x1203   :  { %v4998_v11 = vpop.f32.mrf.mxu1 }
0x1204   :  { %5014 = vst [vmem:[#allocation16 + $0x38] sm:$0xff] %v5004_v51  ;;  %v4999_v14 = vadd.f32 %v5195_v43, %v4998_v11 }
0x1206   :  { %5013 = vst [vmem:[#allocation16 + $0x30] sm:$0xff] %v4999_v14 }
0x1207   :  { %6607 = shalt.err (!%p6604_p2)
}
0x1208   :  { %5026 = dma.vmem_to_hbm [thread:$0]  %s5021_s23, 1024, %s7980_s16, [#allocation4], %s6630_s26, %s6630_s26, %s6631_s27  }
0x1209   :  { %6626 = dma.done.wait [#allocation4], 1024  }
0x120a   :  { %6627 = vsyncadd [#allocation4], 4294966272 }
0x120b   :  { %5030 = vsyncpa [#allocation3], 1 }
0x120c   :  { %5031 = vsyncpa [#allocation6], 1 }
0x120d   :  { %5032 = vsyncpa [#allocation9], 1 }
0x120e   :  { %5033 = vsyncpa [#allocation12], 1 }
0x120f   :  { %5034 = vsyncpa [#allocation15], 1 }
0x1210   :  { %5035 = vsyncpa [#allocation4], 1 }

</bundles_post_ra>
